<compile_context>
chip_gen: v6e
topology: v6e:2x2x1
jax: 0.10.0
libtpu: 0.0.40
codegen_flags: <defaults>
</compile_context>

<pallas_src>
import functools

import jax
import jax.numpy as jnp
from jax.experimental import pallas as pl
from jax.experimental.pallas import tpu as pltpu

NEG_INF = -1e30
RMS_EPS = 1e-8


# ---------------------------------------------------------------------------
# Kernel 1: fused RMSNorm + combined QKV projection
# ---------------------------------------------------------------------------
def rmsnorm_qkv_kernel(x_ref, g_ref, wqkv_ref, qkv_ref):
    x = x_ref[...].astype(jnp.float32)                       # (TM, dim)
    ms = jnp.mean(x * x, axis=-1, keepdims=True)             # mean(x^2)
    # RMSNorm: x / clamp(||x|| * dim^-0.5, eps) * gamma
    # (rsqrt(max(ms, eps^2)) == 1 / max(sqrt(ms), eps))
    inv = jax.lax.rsqrt(jnp.maximum(ms, RMS_EPS * RMS_EPS))
    xn = (x * inv * g_ref[...].astype(jnp.float32)).astype(jnp.bfloat16)
    qkv_ref[...] = jnp.dot(
        xn, wqkv_ref[...], preferred_element_type=jnp.float32
    ).astype(qkv_ref.dtype)


def rmsnorm_qkv(x_flat, gamma, wqkv_t, *, block_m):
    bn, dim = x_flat.shape
    three_inner = wqkv_t.shape[1]
    assert bn % block_m == 0
    return pl.pallas_call(
        rmsnorm_qkv_kernel,
        out_shape=jax.ShapeDtypeStruct((bn, three_inner), jnp.bfloat16),
        grid_spec=pltpu.PrefetchScalarGridSpec(
            num_scalar_prefetch=0,
            grid=(bn // block_m,),
            in_specs=[
                pl.BlockSpec((block_m, dim), lambda i: (i, 0)),
                pl.BlockSpec((1, dim), lambda i: (0, 0)),
                pl.BlockSpec((dim, three_inner), lambda i: (0, 0)),
            ],
            out_specs=pl.BlockSpec((block_m, three_inner), lambda i: (i, 0)),
        ),
        compiler_params=pltpu.CompilerParams(
            dimension_semantics=("parallel",)),
    )(x_flat, gamma, wqkv_t)


# ---------------------------------------------------------------------------
# Kernel 2: flash attention (online softmax), heads sliced via BlockSpec
# ---------------------------------------------------------------------------
def flash_attn_kernel(q_ref, k_ref, v_ref, o_ref, m_sc, l_sc, acc_sc):
    kv = pl.program_id(3)

    @pl.when(kv == 0)
    def _():
        m_sc[...] = jnp.full(m_sc.shape, NEG_INF, dtype=m_sc.dtype)
        l_sc[...] = jnp.zeros(l_sc.shape, dtype=l_sc.dtype)
        acc_sc[...] = jnp.zeros(acc_sc.shape, dtype=acc_sc.dtype)

    # q_ref: (1, TQ, D) bf16 (scale already folded into Wq), k/v: (1, TK, D)
    s = jnp.einsum("bqd,bkd->bqk", q_ref[...], k_ref[...],
                   preferred_element_type=jnp.float32)        # f32 scores

    m_prev = m_sc[...]
    m_new = jnp.maximum(m_prev, s.max(axis=-1, keepdims=True))
    alpha = jnp.exp(m_prev - m_new)                           # EUP
    p = jnp.exp(s - m_new)                                    # EUP
    l_sc[...] = alpha * l_sc[...] + p.sum(axis=-1, keepdims=True)
    acc_sc[...] = alpha * acc_sc[...] + jnp.einsum(
        "bqk,bkd->bqd", p.astype(v_ref.dtype), v_ref[...],
        preferred_element_type=jnp.float32)
    m_sc[...] = m_new

    @pl.when(kv == pl.num_programs(3) - 1)
    def _():
        inv_l = pl.reciprocal(l_sc[...], approx=True)         # EUP, ~free
        o_ref[...] = (acc_sc[...] * inv_l).astype(o_ref.dtype)
    # TODO(synk): mask / causal branches would gate whole kv tiles here with
    # pl.when and apply partial masks via jnp.where on the f32 score block.


def flash_attention(qkv, *, batch, seq, heads, dim_head, block_q, block_k):
    b, n = batch, seq
    inner = heads * dim_head
    assert qkv.shape == (b, n, 3 * inner)
    assert n % block_q == 0 and n % block_k == 0
    grid = (b, heads, n // block_q, n // block_k)   # KV axis last ("arbitrary")

    # The fused QKV slab has columns [ Q(inner) | K(inner) | V(inner) ]; with
    # a last-dim block of dim_head, head h of Q/K/V is block h / heads+h /
    # 2*heads+h.  Slicing heads here avoids any wrapper-side transpose.
    def q_map(bi, hi, qi, ki):
        return (bi, qi, hi)

    def k_map(bi, hi, qi, ki):
        return (bi, ki, heads + hi)

    def v_map(bi, hi, qi, ki):
        return (bi, ki, 2 * heads + hi)

    def o_map(bi, hi, qi, ki):
        return (bi, qi, hi)

    return pl.pallas_call(
        flash_attn_kernel,
        out_shape=jax.ShapeDtypeStruct((b, n, inner), jnp.bfloat16),
        grid_spec=pltpu.PrefetchScalarGridSpec(
            num_scalar_prefetch=0,
            grid=grid,
            in_specs=[
                pl.BlockSpec((1, block_q, dim_head), q_map),
                pl.BlockSpec((1, block_k, dim_head), k_map),
                pl.BlockSpec((1, block_k, dim_head), v_map),
            ],
            out_specs=pl.BlockSpec((1, block_q, dim_head), o_map),
            scratch_shapes=[
                pltpu.VMEM((1, block_q, 1), jnp.float32),        # running max
                pltpu.VMEM((1, block_q, 1), jnp.float32),        # running sum
                pltpu.VMEM((1, block_q, dim_head), jnp.float32),  # f32 acc
            ],
        ),
        compiler_params=pltpu.CompilerParams(
            dimension_semantics=("parallel", "parallel", "parallel",
                                 "arbitrary")),
    )(qkv, qkv, qkv)


# ---------------------------------------------------------------------------
# Kernel 3: output projection (+ bias)
# ---------------------------------------------------------------------------
def out_proj_kernel(x_ref, w_ref, b_ref, o_ref):
    o_ref[...] = (jnp.dot(x_ref[...], w_ref[...],
                          preferred_element_type=jnp.float32)
                  + b_ref[...].astype(jnp.float32)).astype(o_ref.dtype)


def out_proj(x_flat, wo_t, bias, *, block_m):
    bn, inner = x_flat.shape
    dim = wo_t.shape[1]
    assert bn % block_m == 0
    return pl.pallas_call(
        out_proj_kernel,
        out_shape=jax.ShapeDtypeStruct((bn, dim), jnp.float32),
        grid_spec=pltpu.PrefetchScalarGridSpec(
            num_scalar_prefetch=0,
            grid=(bn // block_m,),
            in_specs=[
                pl.BlockSpec((block_m, inner), lambda i: (i, 0)),
                pl.BlockSpec((inner, dim), lambda i: (0, 0)),
                pl.BlockSpec((1, dim), lambda i: (0, 0)),
            ],
            out_specs=pl.BlockSpec((block_m, dim), lambda i: (i, 0)),
        ),
        compiler_params=pltpu.CompilerParams(
            dimension_semantics=("parallel",)),
    )(x_flat, wo_t, bias)


# ---------------------------------------------------------------------------
# Full forward wrapper (matches Attention.forward default path)
# ---------------------------------------------------------------------------
def attention_forward(x, params, *, heads, dim_head,
                      block_m=256, block_q=256, block_k=512):
    # TODO(synk): optional mask / context (cross-attention) / rotary pos_emb /
    # null_kv / dropout branches of the PyTorch module are not wired in.
    b, n, dim = x.shape
    inner = heads * dim_head
    scale = dim_head ** -0.5

    block_m = min(block_m, b * n)
    block_q = min(block_q, n)
    block_k = min(block_k, n)

    # Pre-transpose weights (nn.Linear computes x @ W.T), fold the attention
    # scale into the Q columns, and fuse [Wq | Wk | Wv] into one weight.
    wq_t = (params["wq"].T * scale).astype(jnp.bfloat16)      # (dim, inner)
    wkv_t = params["wkv"].T.astype(jnp.bfloat16)              # (dim, 2*inner)
    wqkv_t = jnp.concatenate([wq_t, wkv_t], axis=1)           # (dim, 3*inner)
    wo_t = params["wo"].T.astype(jnp.bfloat16)
    gamma = params["gamma"].reshape(1, dim).astype(jnp.float32)
    bo = params["bo"].reshape(1, dim).astype(jnp.float32)

    x_flat = x.reshape(b * n, dim).astype(jnp.float32)

    qkv_flat = rmsnorm_qkv(x_flat, gamma, wqkv_t, block_m=block_m)
    qkv = qkv_flat.reshape(b, n, 3 * inner)                   # free reshape

    o = flash_attention(qkv, batch=b, seq=n, heads=heads, dim_head=dim_head,
                        block_q=block_q, block_k=block_k)     # (b, n, inner)

    y = out_proj(o.reshape(b * n, inner), wo_t, bo, block_m=block_m)
    return y.reshape(b, n, dim)


# ---------------------------------------------------------------------------
# Pure-JAX reference (mirrors the PyTorch module, default path)
# ---------------------------------------------------------------------------
def reference_forward(x, params, *, heads, dim_head):
    b, n, dim = x.shape
    scale = dim_head ** -0.5
    xf = x.astype(jnp.float32)
    norm = jnp.sqrt(jnp.sum(xf * xf, axis=-1, keepdims=True)) * (dim ** -0.5)
    xn = xf / jnp.maximum(norm, RMS_EPS) * params["gamma"]
    q = xn @ params["wq"].T
    kv = xn @ params["wkv"].T
    k, v = jnp.split(kv, 2, axis=-1)

    def split_heads(t):
        return t.reshape(b, n, heads, dim_head).transpose(0, 2, 1, 3)

    q, k, v = map(split_heads, (q, k, v))
    q = q * scale
    sim = jnp.einsum("bhid,bhjd->bhij", q, k)
    attn = jax.nn.softmax(sim, axis=-1)
    out = jnp.einsum("bhij,bhjd->bhid", attn, v)
    out = out.transpose(0, 2, 1, 3).reshape(b, n, heads * dim_head)
    return out @ params["wo"].T + params["bo"]


if __name__ == "__main__":
    key = jax.random.PRNGKey(0)
    batch, seq, dim = 2, 256, 64
    heads, dim_head = 2, 128          # dim_head=128 -> lane-dense head dim
    inner = heads * dim_head

    k0, k1, k2, k3, k4, k5 = jax.random.split(key, 6)

    def bf16_roundtrip(a):
        # Weights are bf16 on the MXU path; round-trip so kernel and reference
        # start from identical values.
        return a.astype(jnp.bfloat16).astype(jnp.float32)

    x = jax.random.normal(k0, (batch, seq, dim), dtype=jnp.float32)
    params = {
        "gamma": 1.0 + 0.1 * jax.random.normal(k1, (dim,), dtype=jnp.float32),
        "wq": bf16_roundtrip(
            jax.random.normal(k2, (inner, dim), dtype=jnp.float32) * dim ** -0.5),
        "wkv": bf16_roundtrip(
            jax.random.normal(k3, (2 * inner, dim), dtype=jnp.float32) * dim ** -0.5),
        "wo": bf16_roundtrip(
            jax.random.normal(k4, (dim, inner), dtype=jnp.float32) * inner ** -0.5),
        "bo": 0.02 * jax.random.normal(k5, (dim,), dtype=jnp.float32),
    }

    fwd = jax.jit(functools.partial(attention_forward,
                                    heads=heads, dim_head=dim_head))
    out = jax.block_until_ready(fwd(x, params))

    ref = reference_forward(x, params, heads=heads, dim_head=dim_head)
    err = float(jnp.max(jnp.abs(out - ref)))
    if not (err < 5e-2):
        raise AssertionError(f"max abs error {err} too large")
    print("KERNEL_OK")
</pallas_src>

<mosaic_0001>
module attributes {stable_mosaic.version = 11 : i64} {
  func.func @flash_attn_kernel(%arg0: i32, %arg1: i32, %arg2: i32, %arg3: i32, %arg4: memref<1x256x128xbf16, #tpu.memory_space<vmem>>, %arg5: memref<1x256x128xbf16, #tpu.memory_space<vmem>>, %arg6: memref<1x256x128xbf16, #tpu.memory_space<vmem>>, %arg7: memref<1x256x128xbf16, #tpu.memory_space<vmem>>, %arg8: memref<1x256x1xf32, #tpu.memory_space<vmem>>, %arg9: memref<1x256x1xf32, #tpu.memory_space<vmem>>, %arg10: memref<1x256x128xf32, #tpu.memory_space<vmem>>) attributes {dimension_semantics = [#tpu.dimension_semantics<parallel>, #tpu.dimension_semantics<parallel>, #tpu.dimension_semantics<parallel>, #tpu.dimension_semantics<arbitrary>], iteration_bounds = array<i64: 2, 2, 1, 1>, scalar_prefetch = 0 : i64, scratch_operands = 3 : i64, tpu.core_type = #tpu.core_type<tc>, window_params = [{transform_indices = @transform_0, window_bounds = array<i64: 1, 256, 128>}, {transform_indices = @transform_1, window_bounds = array<i64: 1, 256, 128>}, {transform_indices = @transform_2, window_bounds = array<i64: 1, 256, 128>}, {transform_indices = @transform_3, window_bounds = array<i64: 1, 256, 128>}]} {
    %c0_i32 = arith.constant 0 : i32
    %0 = arith.cmpi eq, %arg3, %c0_i32 : i32
    %1 = arith.extui %0 : i1 to i32
    %c0_i32_0 = arith.constant 0 : i32
    %2 = arith.cmpi ne, %1, %c0_i32_0 : i32
    scf.if %2 {
      %cst_32 = arith.constant -1.000000e+30 : f32
      %33 = vector.broadcast %cst_32 : f32 to vector<1x256x1xf32>
      %c0_33 = arith.constant 0 : index
      %c0_34 = arith.constant 0 : index
      %c0_35 = arith.constant 0 : index
      %34 = vector.load %arg8[%c0_33, %c0_34, %c0_35] : memref<1x256x1xf32, #tpu.memory_space<vmem>>, vector<1x256x1xf32>
      tpu.vector_store %arg8[%c0_33, %c0_34, %c0_35], %33 {strides = array<i32>} : memref<1x256x1xf32, #tpu.memory_space<vmem>>, vector<1x256x1xf32>,
      %cst_36 = arith.constant 0.000000e+00 : f32
      %35 = vector.broadcast %cst_36 : f32 to vector<1x256x1xf32>
      %c0_37 = arith.constant 0 : index
      %c0_38 = arith.constant 0 : index
      %c0_39 = arith.constant 0 : index
      %36 = vector.load %arg9[%c0_37, %c0_38, %c0_39] : memref<1x256x1xf32, #tpu.memory_space<vmem>>, vector<1x256x1xf32>
      tpu.vector_store %arg9[%c0_37, %c0_38, %c0_39], %35 {strides = array<i32>} : memref<1x256x1xf32, #tpu.memory_space<vmem>>, vector<1x256x1xf32>,
      %cst_40 = arith.constant 0.000000e+00 : f32
      %37 = vector.broadcast %cst_40 : f32 to vector<1x256x128xf32>
      %c0_41 = arith.constant 0 : index
      %c0_42 = arith.constant 0 : index
      %c0_43 = arith.constant 0 : index
      %38 = vector.load %arg10[%c0_41, %c0_42, %c0_43] : memref<1x256x128xf32, #tpu.memory_space<vmem>>, vector<1x256x128xf32>
      tpu.vector_store %arg10[%c0_41, %c0_42, %c0_43], %37 {strides = array<i32>} : memref<1x256x128xf32, #tpu.memory_space<vmem>>, vector<1x256x128xf32>,
    } else {
    }
    %c0 = arith.constant 0 : index
    %c0_1 = arith.constant 0 : index
    %c0_2 = arith.constant 0 : index
    %3 = vector.load %arg4[%c0, %c0_1, %c0_2] : memref<1x256x128xbf16, #tpu.memory_space<vmem>>, vector<1x256x128xbf16>
    %c0_3 = arith.constant 0 : index
    %c0_4 = arith.constant 0 : index
    %c0_5 = arith.constant 0 : index
    %4 = vector.load %arg5[%c0_3, %c0_4, %c0_5] : memref<1x256x128xbf16, #tpu.memory_space<vmem>>, vector<1x256x128xbf16>
    "tpu.trace_start"() <{level = 10 : i32, message = "bqd,bkd->bqk"}> : () -> ()
    %cst = arith.constant dense<0.000000e+00> : vector<1x256x256xf32>
    %5 = tpu.matmul %3, %4, %cst {dimension_numbers = #tpu.dot_dimension_numbers<[2], [2], [1], [1], [0, 0, 0, 1, 1, 1], [0], [0]>} : vector<1x256x128xbf16>, vector<1x256x128xbf16>, vector<1x256x256xf32> -> vector<1x256x256xf32>
    "tpu.trace_stop"() : () -> ()
    %c0_6 = arith.constant 0 : index
    %c0_7 = arith.constant 0 : index
    %c0_8 = arith.constant 0 : index
    %6 = vector.load %arg8[%c0_6, %c0_7, %c0_8] : memref<1x256x1xf32, #tpu.memory_space<vmem>>, vector<1x256x1xf32>
    %cst_9 = arith.constant dense<0xFF800000> : vector<1x256xf32>
    %7 = vector.multi_reduction <maximumf>, %5, %cst_9 [2] : vector<1x256x256xf32> to vector<1x256xf32>
    %8 = vector.shape_cast %7 : vector<1x256xf32> to vector<1x256x1xf32>
    %9 = arith.maximumf %6, %8 : vector<1x256x1xf32>
    %10 = arith.subf %6, %9 : vector<1x256x1xf32>
    %11 = math.exp %10 : vector<1x256x1xf32>
    %12 = vector.broadcast %9 : vector<1x256x1xf32> to vector<1x256x256xf32>
    %13 = arith.subf %5, %12 : vector<1x256x256xf32>
    %14 = math.exp %13 : vector<1x256x256xf32>
    %c0_10 = arith.constant 0 : index
    %c0_11 = arith.constant 0 : index
    %c0_12 = arith.constant 0 : index
    %15 = vector.load %arg9[%c0_10, %c0_11, %c0_12] : memref<1x256x1xf32, #tpu.memory_space<vmem>>, vector<1x256x1xf32>
    %16 = arith.mulf %11, %15 : vector<1x256x1xf32>
    %cst_13 = arith.constant dense<0.000000e+00> : vector<1x256xf32>
    %17 = vector.multi_reduction <add>, %14, %cst_13 [2] : vector<1x256x256xf32> to vector<1x256xf32>
    %18 = vector.shape_cast %17 : vector<1x256xf32> to vector<1x256x1xf32>
    %19 = arith.addf %16, %18 : vector<1x256x1xf32>
    %c0_14 = arith.constant 0 : index
    %c0_15 = arith.constant 0 : index
    %c0_16 = arith.constant 0 : index
    %20 = vector.load %arg9[%c0_14, %c0_15, %c0_16] : memref<1x256x1xf32, #tpu.memory_space<vmem>>, vector<1x256x1xf32>
    tpu.vector_store %arg9[%c0_14, %c0_15, %c0_16], %19 {strides = array<i32>} : memref<1x256x1xf32, #tpu.memory_space<vmem>>, vector<1x256x1xf32>,
    %c0_17 = arith.constant 0 : index
    %c0_18 = arith.constant 0 : index
    %c0_19 = arith.constant 0 : index
    %21 = vector.load %arg10[%c0_17, %c0_18, %c0_19] : memref<1x256x128xf32, #tpu.memory_space<vmem>>, vector<1x256x128xf32>
    %22 = vector.broadcast %11 : vector<1x256x1xf32> to vector<1x256x128xf32>
    %23 = arith.mulf %22, %21 : vector<1x256x128xf32>
    %24 = arith.truncf %14 : vector<1x256x256xf32> to vector<1x256x256xbf16>
    %c0_20 = arith.constant 0 : index
    %c0_21 = arith.constant 0 : index
    %c0_22 = arith.constant 0 : index
    %25 = vector.load %arg6[%c0_20, %c0_21, %c0_22] : memref<1x256x128xbf16, #tpu.memory_space<vmem>>, vector<1x256x128xbf16>
    "tpu.trace_start"() <{level = 10 : i32, message = "bqk,bkd->bqd"}> : () -> ()
    %cst_23 = arith.constant dense<0.000000e+00> : vector<1x256x128xf32>
    %26 = tpu.matmul %24, %25, %cst_23 {dimension_numbers = #tpu.dot_dimension_numbers<[2], [1], [1], [2], [0, 0, 0, 1, 1, 2], [0], [0]>} : vector<1x256x256xbf16>, vector<1x256x128xbf16>, vector<1x256x128xf32> -> vector<1x256x128xf32>
    "tpu.trace_stop"() : () -> ()
    %27 = arith.addf %23, %26 : vector<1x256x128xf32>
    %c0_24 = arith.constant 0 : index
    %c0_25 = arith.constant 0 : index
    %c0_26 = arith.constant 0 : index
    %28 = vector.load %arg10[%c0_24, %c0_25, %c0_26] : memref<1x256x128xf32, #tpu.memory_space<vmem>>, vector<1x256x128xf32>
    tpu.vector_store %arg10[%c0_24, %c0_25, %c0_26], %27 {strides = array<i32>} : memref<1x256x128xf32, #tpu.memory_space<vmem>>, vector<1x256x128xf32>,
    %c0_27 = arith.constant 0 : index
    %c0_28 = arith.constant 0 : index
    %c0_29 = arith.constant 0 : index
    %29 = vector.load %arg8[%c0_27, %c0_28, %c0_29] : memref<1x256x1xf32, #tpu.memory_space<vmem>>, vector<1x256x1xf32>
    tpu.vector_store %arg8[%c0_27, %c0_28, %c0_29], %9 {strides = array<i32>} : memref<1x256x1xf32, #tpu.memory_space<vmem>>, vector<1x256x1xf32>,
    %c0_i32_30 = arith.constant 0 : i32
    %30 = arith.cmpi eq, %arg3, %c0_i32_30 : i32
    %31 = arith.extui %30 : i1 to i32
    %c0_i32_31 = arith.constant 0 : i32
    %32 = arith.cmpi ne, %31, %c0_i32_31 : i32
    scf.if %32 {
      %c0_32 = arith.constant 0 : index
      %c0_33 = arith.constant 0 : index
      %c0_34 = arith.constant 0 : index
      %33 = vector.load %arg9[%c0_32, %c0_33, %c0_34] : memref<1x256x1xf32, #tpu.memory_space<vmem>>, vector<1x256x1xf32>
      %34 = tpu.reciprocal %33 {approx = true} : vector<1x256x1xf32> -> vector<1x256x1xf32>
      %c0_35 = arith.constant 0 : index
      %c0_36 = arith.constant 0 : index
      %c0_37 = arith.constant 0 : index
      %35 = vector.load %arg10[%c0_35, %c0_36, %c0_37] : memref<1x256x128xf32, #tpu.memory_space<vmem>>, vector<1x256x128xf32>
      %36 = vector.broadcast %34 : vector<1x256x1xf32> to vector<1x256x128xf32>
      %37 = arith.mulf %35, %36 : vector<1x256x128xf32>
      %38 = arith.truncf %37 : vector<1x256x128xf32> to vector<1x256x128xbf16>
      %c0_38 = arith.constant 0 : index
      %c0_39 = arith.constant 0 : index
      %c0_40 = arith.constant 0 : index
      %39 = vector.load %arg7[%c0_38, %c0_39, %c0_40] : memref<1x256x128xbf16, #tpu.memory_space<vmem>>, vector<1x256x128xbf16>
      tpu.vector_store %arg7[%c0_38, %c0_39, %c0_40], %38 {strides = array<i32>} : memref<1x256x128xbf16, #tpu.memory_space<vmem>>, vector<1x256x128xbf16>,
    } else {
    }
    return
  }
  func.func @transform_0(%arg0: i32, %arg1: i32, %arg2: i32, %arg3: i32) -> (i32, i32, i32) {
    %c0_i32 = arith.constant 0 : i32
    return %arg0, %arg2, %arg1 : i32, i32, i32
  }
  func.func @transform_1(%arg0: i32, %arg1: i32, %arg2: i32, %arg3: i32) -> (i32, i32, i32) {
    %c2_i32 = arith.constant 2 : i32
    %0 = arith.addi %c2_i32, %arg1 : i32
    %c0_i32 = arith.constant 0 : i32
    return %arg0, %arg3, %0 : i32, i32, i32
  }
  func.func @transform_2(%arg0: i32, %arg1: i32, %arg2: i32, %arg3: i32) -> (i32, i32, i32) {
    %c4_i32 = arith.constant 4 : i32
    %0 = arith.addi %c4_i32, %arg1 : i32
    %c0_i32 = arith.constant 0 : i32
    return %arg0, %arg3, %0 : i32, i32, i32
  }
  func.func @transform_3(%arg0: i32, %arg1: i32, %arg2: i32, %arg3: i32) -> (i32, i32, i32) {
    %c0_i32 = arith.constant 0 : i32
    return %arg0, %arg2, %arg1 : i32, i32, i32
  }
}

module attributes {stable_mosaic.version = 11 : i64} {
  func.func @rmsnorm_qkv_kernel(%arg0: i32, %arg1: memref<256x64xf32, #tpu.memory_space<vmem>>, %arg2: memref<1x64xf32, #tpu.memory_space<vmem>>, %arg3: memref<64x768xbf16, #tpu.memory_space<vmem>>, %arg4: memref<256x768xbf16, #tpu.memory_space<vmem>>) attributes {dimension_semantics = [#tpu.dimension_semantics<parallel>], iteration_bounds = array<i64: 2>, scalar_prefetch = 0 : i64, scratch_operands = 0 : i64, tpu.core_type = #tpu.core_type<tc>, window_params = [{transform_indices = @transform_0, window_bounds = array<i64: 256, 64>}, {pipeline_mode = #tpu.pipeline_mode<synchronous>, transform_indices = @transform_1, window_bounds = array<i64: 1, 64>}, {pipeline_mode = #tpu.pipeline_mode<synchronous>, transform_indices = @transform_2, window_bounds = array<i64: 64, 768>}, {transform_indices = @transform_3, window_bounds = array<i64: 256, 768>}]} {
    %c0 = arith.constant 0 : index
    %c0_0 = arith.constant 0 : index
    %0 = vector.load %arg1[%c0, %c0_0] : memref<256x64xf32, #tpu.memory_space<vmem>>, vector<256x64xf32>
    %1 = arith.mulf %0, %0 : vector<256x64xf32>
    %cst = arith.constant dense<0.000000e+00> : vector<256xf32>
    %2 = vector.multi_reduction <add>, %1, %cst [1] : vector<256x64xf32> to vector<256xf32>
    %3 = vector.shape_cast %2 : vector<256xf32> to vector<256x1xf32>
    %cst_1 = arith.constant 6.400000e+01 : f32
    %4 = vector.broadcast %cst_1 : f32 to vector<256x1xf32>
    %5 = arith.divf %3, %4 : vector<256x1xf32>
    %cst_2 = arith.constant 1.000000e-16 : f32
    %6 = vector.broadcast %cst_2 : f32 to vector<256x1xf32>
    %7 = arith.maximumf %5, %6 : vector<256x1xf32>
    %8 = math.rsqrt %7 : vector<256x1xf32>
    %9 = vector.broadcast %8 : vector<256x1xf32> to vector<256x64xf32>
    %10 = arith.mulf %0, %9 : vector<256x64xf32>
    %c0_3 = arith.constant 0 : index
    %c0_4 = arith.constant 0 : index
    %11 = vector.load %arg2[%c0_3, %c0_4] : memref<1x64xf32, #tpu.memory_space<vmem>>, vector<1x64xf32>
    %12 = vector.broadcast %11 : vector<1x64xf32> to vector<256x64xf32>
    %13 = arith.mulf %10, %12 : vector<256x64xf32>
    %14 = arith.truncf %13 : vector<256x64xf32> to vector<256x64xbf16>
    %c0_5 = arith.constant 0 : index
    %c0_6 = arith.constant 0 : index
    %15 = vector.load %arg3[%c0_5, %c0_6] : memref<64x768xbf16, #tpu.memory_space<vmem>>, vector<64x768xbf16>
    %cst_7 = arith.constant dense<0.000000e+00> : vector<256x768xf32>
    %16 = tpu.matmul %14, %15, %cst_7 {dimension_numbers = #tpu.dot_dimension_numbers<[1], [0], [0], [1], [0, 0, 1, 1], [], []>} : vector<256x64xbf16>, vector<64x768xbf16>, vector<256x768xf32> -> vector<256x768xf32>
    %17 = arith.truncf %16 : vector<256x768xf32> to vector<256x768xbf16>
    %c0_8 = arith.constant 0 : index
    %c0_9 = arith.constant 0 : index
    %18 = vector.load %arg4[%c0_8, %c0_9] : memref<256x768xbf16, #tpu.memory_space<vmem>>, vector<256x768xbf16>
    tpu.vector_store %arg4[%c0_8, %c0_9], %17 {strides = array<i32>} : memref<256x768xbf16, #tpu.memory_space<vmem>>, vector<256x768xbf16>,
    return
  }
  func.func @transform_0(%arg0: i32) -> (i32, i32) {
    %c0_i32 = arith.constant 0 : i32
    %c0_i32_0 = arith.constant 0 : i32
    return %arg0, %c0_i32 : i32, i32
  }
  func.func @transform_1(%arg0: i32) -> (i32, i32) {
    %c0_i32 = arith.constant 0 : i32
    %c0_i32_0 = arith.constant 0 : i32
    %c0_i32_1 = arith.constant 0 : i32
    return %c0_i32, %c0_i32_0 : i32, i32
  }
  func.func @transform_2(%arg0: i32) -> (i32, i32) {
    %c0_i32 = arith.constant 0 : i32
    %c0_i32_0 = arith.constant 0 : i32
    %c0_i32_1 = arith.constant 0 : i32
    return %c0_i32, %c0_i32_0 : i32, i32
  }
  func.func @transform_3(%arg0: i32) -> (i32, i32) {
    %c0_i32 = arith.constant 0 : i32
    %c0_i32_0 = arith.constant 0 : i32
    return %arg0, %c0_i32 : i32, i32
  }
}

module attributes {stable_mosaic.version = 11 : i64} {
  func.func @out_proj_kernel(%arg0: i32, %arg1: memref<256x256xbf16, #tpu.memory_space<vmem>>, %arg2: memref<256x64xbf16, #tpu.memory_space<vmem>>, %arg3: memref<1x64xf32, #tpu.memory_space<vmem>>, %arg4: memref<256x64xf32, #tpu.memory_space<vmem>>) attributes {dimension_semantics = [#tpu.dimension_semantics<parallel>], iteration_bounds = array<i64: 2>, scalar_prefetch = 0 : i64, scratch_operands = 0 : i64, tpu.core_type = #tpu.core_type<tc>, window_params = [{transform_indices = @transform_0, window_bounds = array<i64: 256, 256>}, {pipeline_mode = #tpu.pipeline_mode<synchronous>, transform_indices = @transform_1, window_bounds = array<i64: 256, 64>}, {pipeline_mode = #tpu.pipeline_mode<synchronous>, transform_indices = @transform_2, window_bounds = array<i64: 1, 64>}, {transform_indices = @transform_3, window_bounds = array<i64: 256, 64>}]} {
    %c0 = arith.constant 0 : index
    %c0_0 = arith.constant 0 : index
    %0 = vector.load %arg1[%c0, %c0_0] : memref<256x256xbf16, #tpu.memory_space<vmem>>, vector<256x256xbf16>
    %c0_1 = arith.constant 0 : index
    %c0_2 = arith.constant 0 : index
    %1 = vector.load %arg2[%c0_1, %c0_2] : memref<256x64xbf16, #tpu.memory_space<vmem>>, vector<256x64xbf16>
    %cst = arith.constant dense<0.000000e+00> : vector<256x64xf32>
    %2 = tpu.matmul %0, %1, %cst {dimension_numbers = #tpu.dot_dimension_numbers<[1], [0], [0], [1], [0, 0, 1, 1], [], []>} : vector<256x256xbf16>, vector<256x64xbf16>, vector<256x64xf32> -> vector<256x64xf32>
    %c0_3 = arith.constant 0 : index
    %c0_4 = arith.constant 0 : index
    %3 = vector.load %arg3[%c0_3, %c0_4] : memref<1x64xf32, #tpu.memory_space<vmem>>, vector<1x64xf32>
    %4 = vector.broadcast %3 : vector<1x64xf32> to vector<256x64xf32>
    %5 = arith.addf %2, %4 : vector<256x64xf32>
    %c0_5 = arith.constant 0 : index
    %c0_6 = arith.constant 0 : index
    %6 = vector.load %arg4[%c0_5, %c0_6] : memref<256x64xf32, #tpu.memory_space<vmem>>, vector<256x64xf32>
    tpu.vector_store %arg4[%c0_5, %c0_6], %5 {strides = array<i32>} : memref<256x64xf32, #tpu.memory_space<vmem>>, vector<256x64xf32>,
    return
  }
  func.func @transform_0(%arg0: i32) -> (i32, i32) {
    %c0_i32 = arith.constant 0 : i32
    %c0_i32_0 = arith.constant 0 : i32
    return %arg0, %c0_i32 : i32, i32
  }
  func.func @transform_1(%arg0: i32) -> (i32, i32) {
    %c0_i32 = arith.constant 0 : i32
    %c0_i32_0 = arith.constant 0 : i32
    %c0_i32_1 = arith.constant 0 : i32
    return %c0_i32, %c0_i32_0 : i32, i32
  }
  func.func @transform_2(%arg0: i32) -> (i32, i32) {
    %c0_i32 = arith.constant 0 : i32
    %c0_i32_0 = arith.constant 0 : i32
    %c0_i32_1 = arith.constant 0 : i32
    return %c0_i32, %c0_i32_0 : i32, i32
  }
  func.func @transform_3(%arg0: i32) -> (i32, i32) {
    %c0_i32 = arith.constant 0 : i32
    %c0_i32_0 = arith.constant 0 : i32
    return %arg0, %c0_i32 : i32, i32
  }
}

</mosaic_0001>

<bundles_post_ra>
// kernel: attention_forward.5
= control target key start
LH: loop header
LB: loop body
LE: loop exit
PB: predicated region body
PF: predicated region fallthrough
CT: control target
= control target key end

     0   :  { %s1045_s12 = smov 0   ;;  %s1254_s0 = inlined_call_operand.vmem [shape: bf16[512,256], index: 0, kind: input, shape index: {}]   ;;  %s1255_s1 = inlined_call_operand.vmem [shape: bf16[256,64], index: 1, kind: input, shape index: {}]   ;;  %s1256_s2 = inlined_call_operand.vmem [shape: f32[1,64], index: 2, kind: input, shape index: {}]   ;;  %s1257_s3 = inlined_call_operand.vmem [shape: f32[512,64], index: 3, kind: output, shape index: {}]  }
   0x1 LB: > { %s755_s13 = sadd.s32 4294967295, %s1023_s12   ;;  %p759_p0 = scmp.ge.s32.totalorder %s1023_s12, 1  ;;  %s1023_s12 = sphi %s1045_s12, %s13_s12  }
   0x2   : > { %p139_p1 = scmp.lt.s32.totalorder %s1023_s12, 3 }
   0x4   : > { %p140_p2 = pnand %p759_p0, %p139_p1 }
   0x5   : > { %s760_s16 = sshll.u32 (!%p140_p2), %s755_s13, 5 }
   0x6   : > { %143 = sbr.rel (%p140_p2) target bundleno = 304 (0x130), region = 32  ;;  %p165_p3 = scmp.lt.s32.totalorder (!%p140_p2), %s760_s16, 63 }
   0xb   : > { %v953_v0 = vld [vmem:[%s1255_s1 + $0x78] sm:$0xff]   ;;  %v955_v2 = vld [vmem:[%s1255_s1 + $0x70] sm:$0xff]   ;;  %v957_v4 = vld [vmem:[%s1255_s1 + $0x68] sm:$0xff]   ;;  %s1259_s16 = smov (!%p165_p3, %s760_s16), 63  ;;  %vm666_vm0 = vcmask 523264  }
   0xc   : > { %v954_v1 = vld [vmem:[%s1255_s1 + $0x38] sm:$0xff]   ;;  %817 = vmatprep.subr.bf16.mxu0 %v953_v0  ;;  %929 = vmatprep.subr.bf16.mxu1 %v953_v0  ;;  %v956_v3 = vld [vmem:[%s1255_s1 + $0x30] sm:$0xff]   ;;  %v958_v5 = vld [vmem:[%s1255_s1 + $0x28] sm:$0xff]   ;;  %s816_s4 = sshll.u32 %s1259_s16, 3 }
   0xd   : > { %818 = vmatpush3.bf16.msra.mxu0 %v954_v1  ;;  %937 = vmatpush3.bf16.msra.mxu1 %v954_v1  ;;  %v959_v6 = vld [vmem:[%s1255_s1 + $0x60] sm:$0xff]   ;;  %v961_v8 = vld [vmem:[%s1255_s1 + $0x58] sm:$0xff]   ;;  %s1088_s9 = scalar_lea.vmem %s1254_s0, %s816_s4  ;;  %v963_v10 = vld [vmem:[%s1255_s1 + $0x50] sm:$0xff]   ;;  %s1153_s30 = scalar_lea.vmem %s1257_s3, %s816_s4 }
   0xe   : > { %819 = vmatprep.subr.bf16.mxu0 %v955_v2  ;;  %930 = vmatprep.subr.bf16.mxu1 %v955_v2  ;;  %v960_v7 = vld [vmem:[%s1255_s1 + $0x20] sm:$0xff]   ;;  %v962_v9 = vld [vmem:[%s1255_s1 + $0x18] sm:$0xff]   ;;  %v964_v13 = vld [vmem:[%s1255_s1 + $0x10] sm:$0xff]  }
   0xf   : > { %v971_v11 = vld [vmem:[%s1088_s9 + $0x4] ss:$8 sps:$4 sm:$0xff]   ;;  %v969_v18 = vld [vmem:[%s1088_s9] ss:$8 sps:$4 sm:$0xff]   ;;  %v975_v20 = vld [vmem:[%s1088_s9 + $0x14] ss:$8 sps:$4 sm:$0xff]  }
  0x10   : > { %v974_v12 = vld [vmem:[%s1088_s9 + $0x84] ss:$8 sps:$4 sm:$0xff]   ;;  %537 = vmatprep.mubr.bf16.mxu0 %v971_v11  ;;  %v972_v19 = vld [vmem:[%s1088_s9 + $0x80] ss:$8 sps:$4 sm:$0xff]   ;;  %v977_v21 = vld [vmem:[%s1088_s9 + $0x94] ss:$8 sps:$4 sm:$0xff]  }
  0x11   : > { %820 = vmatpush3.bf16.msra.mxu0 %v956_v3  ;;  %938 = vmatpush3.bf16.msra.mxu1 %v956_v3  ;;  %v965_v14 = vld [vmem:[%s1255_s1 + $0x48] sm:$0xff]   ;;  %v967_v16 = vld [vmem:[%s1255_s1 + $0x40] sm:$0xff]   ;;  %v979_v22 = vld [vmem:[%s1088_s9 + $0x10] ss:$8 sps:$4 sm:$0xff]  }
  0x12   : > { %821 = vmatprep.subr.bf16.mxu0 %v957_v4  ;;  %931 = vmatprep.subr.bf16.mxu1 %v957_v4  ;;  %v966_v15 = vld [vmem:[%s1255_s1 + $0x8] sm:$0xff]   ;;  %v968_v17 = vld [vmem:[%s1255_s1] sm:$0xff]   ;;  %v980_v23 = vld [vmem:[%s1088_s9 + $0x90] ss:$8 sps:$4 sm:$0xff]  }
  0x13   : > { %601 = vmatprep.mubr.bf16.mxu1 %v974_v12  ;;  %v981_v24 = vld [vmem:[%s1088_s9 + $0x24] ss:$8 sps:$4 sm:$0xff]   ;;  %v985_v26 = vld [vmem:[%s1088_s9 + $0x20] ss:$8 sps:$4 sm:$0xff]   ;;  %v987_v28 = vld [vmem:[%s1088_s9 + $0x34] ss:$8 sps:$4 sm:$0xff]  }
  0x14   : > { %v983_v25 = vld [vmem:[%s1088_s9 + $0xa4] ss:$8 sps:$4 sm:$0xff]   ;;  %v986_v27 = vld [vmem:[%s1088_s9 + $0xa0] ss:$8 sps:$4 sm:$0xff]   ;;  %v989_v29 = vld [vmem:[%s1088_s9 + $0xb4] ss:$8 sps:$4 sm:$0xff]  }
  0x15   : > { %822 = vmatpush3.bf16.msra.mxu0 %v958_v5  ;;  %939 = vmatpush3.bf16.msra.mxu1 %v958_v5  ;;  %v991_v30 = vld [vmem:[%s1088_s9 + $0x30] ss:$8 sps:$4 sm:$0xff]   ;;  %v993_v32 = vld [vmem:[%s1088_s9 + $0x44] ss:$8 sps:$4 sm:$0xff]   ;;  %v997_v34 = vld [vmem:[%s1088_s9 + $0x40] ss:$8 sps:$4 sm:$0xff]  }
  0x16   : > { %823 = vmatprep.subr.bf16.mxu0 %v959_v6  ;;  %932 = vmatprep.subr.bf16.mxu1 %v959_v6  ;;  %v992_v31 = vld [vmem:[%s1088_s9 + $0xb0] ss:$8 sps:$4 sm:$0xff]   ;;  %v995_v33 = vld [vmem:[%s1088_s9 + $0xc4] ss:$8 sps:$4 sm:$0xff]   ;;  %v998_v35 = vld [vmem:[%s1088_s9 + $0xc0] ss:$8 sps:$4 sm:$0xff]  }
  0x17   : > { %v999_v36 = vld [vmem:[%s1088_s9 + $0x54] ss:$8 sps:$4 sm:$0xff]   ;;  %v1003_v38 = vld [vmem:[%s1088_s9 + $0x50] ss:$8 sps:$4 sm:$0xff]   ;;  %v1005_v40 = vld [vmem:[%s1088_s9 + $0x64] ss:$8 sps:$4 sm:$0xff]  }
  0x18   : > { %v1001_v37 = vld [vmem:[%s1088_s9 + $0xd4] ss:$8 sps:$4 sm:$0xff]   ;;  %v1004_v39 = vld [vmem:[%s1088_s9 + $0xd0] ss:$8 sps:$4 sm:$0xff]   ;;  %v1007_v41 = vld [vmem:[%s1088_s9 + $0xe4] ss:$8 sps:$4 sm:$0xff]  }
  0x19   : > { %824 = vmatpush3.bf16.msra.mxu0 %v960_v7  ;;  %940 = vmatpush3.bf16.msra.mxu1 %v960_v7  ;;  %v1009_v42 = vld [vmem:[%s1088_s9 + $0x60] ss:$8 sps:$4 sm:$0xff]   ;;  %v1011_v44 = vld [vmem:[%s1088_s9 + $0x74] ss:$8 sps:$4 sm:$0xff]   ;;  %v1015_v46 = vld [vmem:[%s1088_s9 + $0x70] ss:$8 sps:$4 sm:$0xff]  }
  0x1a   : > { %825 = vmatprep.subr.bf16.mxu0 %v961_v8  ;;  %933 = vmatprep.subr.bf16.mxu1 %v961_v8  ;;  %v1010_v43 = vld [vmem:[%s1088_s9 + $0xe0] ss:$8 sps:$4 sm:$0xff]   ;;  %v1013_v45 = vld [vmem:[%s1088_s9 + $0xf4] ss:$8 sps:$4 sm:$0xff]   ;;  %v1016_v47 = vld [vmem:[%s1088_s9 + $0xf0] ss:$8 sps:$4 sm:$0xff]  }
  0x1b   : > { %v1146_v50 = vld [vmem:[%s1256_s2] ss:$0 sm:$0xff] }
  0x1d   : > { %826 = vmatpush3.bf16.msra.mxu0 %v962_v9  ;;  %941 = vmatpush3.bf16.msra.mxu1 %v962_v9 }
  0x1e   : > { %827 = vmatprep.subr.bf16.mxu0 %v963_v10  ;;  %934 = vmatprep.subr.bf16.mxu1 %v963_v10 }
  0x21   : > { %828 = vmatpush3.bf16.msra.mxu0 %v964_v13  ;;  %942 = vmatpush3.bf16.msra.mxu1 %v964_v13 }
  0x22   : > { %829 = vmatprep.subr.bf16.mxu0 %v965_v14  ;;  %935 = vmatprep.subr.bf16.mxu1 %v965_v14 }
  0x25   : > { %830 = vmatpush3.bf16.msra.mxu0 %v966_v15  ;;  %943 = vmatpush3.bf16.msra.mxu1 %v966_v15 }
  0x26   : > { %831 = vmatprep.subr.bf16.mxu0 %v967_v16  ;;  %936 = vmatprep.subr.bf16.mxu1 %v967_v16 }
  0x29   : > { %832 = vmatpush3.bf16.msra.mxu0 %v968_v17  ;;  %944 = vmatpush3.bf16.msra.mxu1 %v968_v17 }
  0x2c   : > { %538 = vmatmul.mubr.bf16.vlgmr.msra.gmra.mxu0 %v969_v18  ;;  %602 = vmatmul.mubr.bf16.vlgmr.msra.gmra.mxu1 %v972_v19 }
  0x2d   : > { %545 = vmatprep.mubr.bf16.mxu0 %v975_v20  ;;  %609 = vmatprep.mubr.bf16.mxu1 %v977_v21 }
  0x34   : > { %546 = vmatmul.mubr.bf16.gmra.mxu0 %v979_v22  ;;  %610 = vmatmul.mubr.bf16.gmra.mxu1 %v980_v23 }
  0x35   : > { %553 = vmatprep.mubr.bf16.mxu0 %v981_v24  ;;  %617 = vmatprep.mubr.bf16.mxu1 %v983_v25 }
  0x3c   : > { %554 = vmatmul.mubr.bf16.gmra.mxu0 %v985_v26  ;;  %618 = vmatmul.mubr.bf16.gmra.mxu1 %v986_v27 }
  0x3d   : > { %561 = vmatprep.mubr.bf16.mxu0 %v987_v28  ;;  %625 = vmatprep.mubr.bf16.mxu1 %v989_v29 }
  0x44   : > { %562 = vmatmul.mubr.bf16.gmra.mxu0 %v991_v30  ;;  %626 = vmatmul.mubr.bf16.gmra.mxu1 %v992_v31 }
  0x45   : > { %569 = vmatprep.mubr.bf16.mxu0 %v993_v32  ;;  %633 = vmatprep.mubr.bf16.mxu1 %v995_v33 }
  0x4c   : > { %570 = vmatmul.mubr.bf16.gmra.mxu0 %v997_v34  ;;  %634 = vmatmul.mubr.bf16.gmra.mxu1 %v998_v35 }
  0x4d   : > { %577 = vmatprep.mubr.bf16.mxu0 %v999_v36  ;;  %641 = vmatprep.mubr.bf16.mxu1 %v1001_v37 }
  0x54   : > { %578 = vmatmul.mubr.bf16.gmra.mxu0 %v1003_v38  ;;  %642 = vmatmul.mubr.bf16.gmra.mxu1 %v1004_v39 }
  0x55   : > { %585 = vmatprep.mubr.bf16.mxu0 %v1005_v40  ;;  %649 = vmatprep.mubr.bf16.mxu1 %v1007_v41 }
  0x5c   : > { %586 = vmatmul.mubr.bf16.gmra.mxu0 %v1009_v42  ;;  %650 = vmatmul.mubr.bf16.gmra.mxu1 %v1010_v43 }
  0x5d   : > { %593 = vmatprep.mubr.bf16.mxu0 %v1011_v44  ;;  %657 = vmatprep.mubr.bf16.mxu1 %v1013_v45 }
  0x64   : > { %594 = vmatmul.mubr.bf16.gmra.mxu0 %v1015_v46  ;;  %658 = vmatmul.mubr.bf16.gmra.mxu1 %v1016_v47 }
  0xec   : > { %v833_v48 = vpop.f32.mrf.mxu0  ;;  %v881_v49 = vpop.f32.mrf.mxu1 }
  0xee   : > { %v834_v51 = vpop.f32.mrf.mxu0  ;;  %v882_v52 = vpop.f32.mrf.mxu1 }
  0xef   : > { %v835_v53 = vadd.f32 %v834_v51, %v833_v48  ;;  %v883_v54 = vadd.f32 %v882_v52, %v881_v49 }
  0xf0   : > { %v836_v55 = vpop.f32.mrf.mxu0  ;;  %v884_v56 = vpop.f32.mrf.mxu1 }
  0xf1   : > { %v540_v57 = vadd.f32 %v835_v53, %v1146_v50  ;;  %v604_v58 = vadd.f32 %v883_v54, %v1146_v50 }
  0xf2   : > { %v837_v59 = vpop.f32.mrf.mxu0  ;;  %v885_v60 = vpop.f32.mrf.mxu1 }
  0xf3   : > { %667 = vst.msk [vmem:[%s1153_s30] sm:$0xff] %vm666_vm0, %v540_v57  ;;  %683 = vst.msk [vmem:[%s1153_s30 + $0x80] sm:$0xff] %vm666_vm0, %v604_v58  ;;  %v838_v61 = vadd.f32 %v837_v59, %v836_v55  ;;  %v886_v62 = vadd.f32 %v885_v60, %v884_v56 }
  0xf4   : > { %v839_v63 = vpop.f32.mrf.mxu0  ;;  %v887_v0 = vpop.f32.mrf.mxu1 }
  0xf5   : > { %v543_v1 = vadd.f32 %v838_v61, %v1146_v50  ;;  %v607_v2 = vadd.f32 %v886_v62, %v1146_v50 }
  0xf6   : > { %v840_v3 = vpop.f32.mrf.mxu0  ;;  %v888_v4 = vpop.f32.mrf.mxu1 }
  0xf7   : > { %668 = vst.msk [vmem:[%s1153_s30 + $0x8] sm:$0xff] %vm666_vm0, %v543_v1  ;;  %684 = vst.msk [vmem:[%s1153_s30 + $0x88] sm:$0xff] %vm666_vm0, %v607_v2  ;;  %v841_v5 = vadd.f32 %v840_v3, %v839_v63  ;;  %v889_v6 = vadd.f32 %v888_v4, %v887_v0 }
  0xf8   : > { %v842_v7 = vpop.f32.mrf.mxu0  ;;  %v890_v8 = vpop.f32.mrf.mxu1 }
  0xf9   : > { %v548_v9 = vadd.f32 %v841_v5, %v1146_v50  ;;  %v612_v10 = vadd.f32 %v889_v6, %v1146_v50 }
  0xfa   : > { %v843_v11 = vpop.f32.mrf.mxu0  ;;  %v891_v12 = vpop.f32.mrf.mxu1 }
  0xfb   : > { %669 = vst.msk [vmem:[%s1153_s30 + $0x10] sm:$0xff] %vm666_vm0, %v548_v9  ;;  %685 = vst.msk [vmem:[%s1153_s30 + $0x90] sm:$0xff] %vm666_vm0, %v612_v10  ;;  %v844_v13 = vadd.f32 %v843_v11, %v842_v7  ;;  %v892_v14 = vadd.f32 %v891_v12, %v890_v8 }
  0xfc   : > { %v845_v15 = vpop.f32.mrf.mxu0  ;;  %v893_v16 = vpop.f32.mrf.mxu1 }
  0xfd   : > { %v551_v17 = vadd.f32 %v844_v13, %v1146_v50  ;;  %v615_v18 = vadd.f32 %v892_v14, %v1146_v50 }
  0xfe   : > { %v846_v19 = vpop.f32.mrf.mxu0  ;;  %v894_v20 = vpop.f32.mrf.mxu1 }
  0xff   : > { %670 = vst.msk [vmem:[%s1153_s30 + $0x18] sm:$0xff] %vm666_vm0, %v551_v17  ;;  %686 = vst.msk [vmem:[%s1153_s30 + $0x98] sm:$0xff] %vm666_vm0, %v615_v18  ;;  %v847_v21 = vadd.f32 %v846_v19, %v845_v15  ;;  %v895_v22 = vadd.f32 %v894_v20, %v893_v16 }
 0x100   : > { %v848_v23 = vpop.f32.mrf.mxu0  ;;  %v896_v24 = vpop.f32.mrf.mxu1 }
 0x101   : > { %v556_v25 = vadd.f32 %v847_v21, %v1146_v50  ;;  %v620_v26 = vadd.f32 %v895_v22, %v1146_v50 }
 0x102   : > { %v849_v27 = vpop.f32.mrf.mxu0  ;;  %v897_v28 = vpop.f32.mrf.mxu1 }
 0x103   : > { %671 = vst.msk [vmem:[%s1153_s30 + $0x20] sm:$0xff] %vm666_vm0, %v556_v25  ;;  %687 = vst.msk [vmem:[%s1153_s30 + $0xa0] sm:$0xff] %vm666_vm0, %v620_v26  ;;  %v850_v29 = vadd.f32 %v849_v27, %v848_v23  ;;  %v898_v30 = vadd.f32 %v897_v28, %v896_v24 }
 0x104   : > { %v851_v31 = vpop.f32.mrf.mxu0  ;;  %v899_v32 = vpop.f32.mrf.mxu1 }
 0x105   : > { %v559_v33 = vadd.f32 %v850_v29, %v1146_v50  ;;  %v623_v34 = vadd.f32 %v898_v30, %v1146_v50 }
 0x106   : > { %v852_v35 = vpop.f32.mrf.mxu0  ;;  %v900_v36 = vpop.f32.mrf.mxu1 }
 0x107   : > { %672 = vst.msk [vmem:[%s1153_s30 + $0x28] sm:$0xff] %vm666_vm0, %v559_v33  ;;  %688 = vst.msk [vmem:[%s1153_s30 + $0xa8] sm:$0xff] %vm666_vm0, %v623_v34  ;;  %v853_v37 = vadd.f32 %v852_v35, %v851_v31  ;;  %v901_v38 = vadd.f32 %v900_v36, %v899_v32 }
 0x108   : > { %v854_v39 = vpop.f32.mrf.mxu0  ;;  %v902_v40 = vpop.f32.mrf.mxu1 }
 0x109   : > { %v564_v41 = vadd.f32 %v853_v37, %v1146_v50  ;;  %v628_v42 = vadd.f32 %v901_v38, %v1146_v50 }
 0x10a   : > { %v855_v43 = vpop.f32.mrf.mxu0  ;;  %v903_v44 = vpop.f32.mrf.mxu1 }
 0x10b   : > { %673 = vst.msk [vmem:[%s1153_s30 + $0x30] sm:$0xff] %vm666_vm0, %v564_v41  ;;  %689 = vst.msk [vmem:[%s1153_s30 + $0xb0] sm:$0xff] %vm666_vm0, %v628_v42  ;;  %v856_v45 = vadd.f32 %v855_v43, %v854_v39  ;;  %v904_v46 = vadd.f32 %v903_v44, %v902_v40 }
 0x10c   : > { %v857_v47 = vpop.f32.mrf.mxu0  ;;  %v905_v48 = vpop.f32.mrf.mxu1 }
 0x10d   : > { %v567_v49 = vadd.f32 %v856_v45, %v1146_v50  ;;  %v631_v51 = vadd.f32 %v904_v46, %v1146_v50 }
 0x10e   : > { %v858_v52 = vpop.f32.mrf.mxu0  ;;  %v906_v53 = vpop.f32.mrf.mxu1 }
 0x10f   : > { %674 = vst.msk [vmem:[%s1153_s30 + $0x38] sm:$0xff] %vm666_vm0, %v567_v49  ;;  %690 = vst.msk [vmem:[%s1153_s30 + $0xb8] sm:$0xff] %vm666_vm0, %v631_v51  ;;  %v859_v54 = vadd.f32 %v858_v52, %v857_v47  ;;  %v907_v55 = vadd.f32 %v906_v53, %v905_v48 }
 0x110   : > { %v860_v56 = vpop.f32.mrf.mxu0  ;;  %v908_v57 = vpop.f32.mrf.mxu1 }
 0x111   : > { %v572_v58 = vadd.f32 %v859_v54, %v1146_v50  ;;  %v636_v59 = vadd.f32 %v907_v55, %v1146_v50 }
 0x112   : > { %v861_v60 = vpop.f32.mrf.mxu0  ;;  %v909_v61 = vpop.f32.mrf.mxu1 }
 0x113   : > { %675 = vst.msk [vmem:[%s1153_s30 + $0x40] sm:$0xff] %vm666_vm0, %v572_v58  ;;  %691 = vst.msk [vmem:[%s1153_s30 + $0xc0] sm:$0xff] %vm666_vm0, %v636_v59  ;;  %v862_v62 = vadd.f32 %v861_v60, %v860_v56  ;;  %v910_v63 = vadd.f32 %v909_v61, %v908_v57 }
 0x114   : > { %v863_v0 = vpop.f32.mrf.mxu0  ;;  %v911_v1 = vpop.f32.mrf.mxu1 }
 0x115   : > { %v575_v2 = vadd.f32 %v862_v62, %v1146_v50  ;;  %v639_v3 = vadd.f32 %v910_v63, %v1146_v50 }
 0x116   : > { %v864_v4 = vpop.f32.mrf.mxu0  ;;  %v912_v5 = vpop.f32.mrf.mxu1 }
 0x117   : > { %676 = vst.msk [vmem:[%s1153_s30 + $0x48] sm:$0xff] %vm666_vm0, %v575_v2  ;;  %692 = vst.msk [vmem:[%s1153_s30 + $0xc8] sm:$0xff] %vm666_vm0, %v639_v3  ;;  %v865_v6 = vadd.f32 %v864_v4, %v863_v0  ;;  %v913_v7 = vadd.f32 %v912_v5, %v911_v1 }
 0x118   : > { %v866_v8 = vpop.f32.mrf.mxu0  ;;  %v914_v9 = vpop.f32.mrf.mxu1 }
 0x119   : > { %v580_v10 = vadd.f32 %v865_v6, %v1146_v50  ;;  %v644_v11 = vadd.f32 %v913_v7, %v1146_v50 }
 0x11a   : > { %v867_v12 = vpop.f32.mrf.mxu0  ;;  %v915_v13 = vpop.f32.mrf.mxu1 }
 0x11b   : > { %677 = vst.msk [vmem:[%s1153_s30 + $0x50] sm:$0xff] %vm666_vm0, %v580_v10  ;;  %693 = vst.msk [vmem:[%s1153_s30 + $0xd0] sm:$0xff] %vm666_vm0, %v644_v11  ;;  %v868_v14 = vadd.f32 %v867_v12, %v866_v8  ;;  %v916_v15 = vadd.f32 %v915_v13, %v914_v9 }
 0x11c   : > { %v869_v16 = vpop.f32.mrf.mxu0  ;;  %v917_v17 = vpop.f32.mrf.mxu1 }
 0x11d   : > { %v583_v18 = vadd.f32 %v868_v14, %v1146_v50  ;;  %v647_v19 = vadd.f32 %v916_v15, %v1146_v50 }
 0x11e   : > { %v870_v20 = vpop.f32.mrf.mxu0  ;;  %v918_v21 = vpop.f32.mrf.mxu1 }
 0x11f   : > { %678 = vst.msk [vmem:[%s1153_s30 + $0x58] sm:$0xff] %vm666_vm0, %v583_v18  ;;  %694 = vst.msk [vmem:[%s1153_s30 + $0xd8] sm:$0xff] %vm666_vm0, %v647_v19  ;;  %v871_v22 = vadd.f32 %v870_v20, %v869_v16  ;;  %v919_v23 = vadd.f32 %v918_v21, %v917_v17 }
 0x120   : > { %v872_v24 = vpop.f32.mrf.mxu0  ;;  %v920_v25 = vpop.f32.mrf.mxu1 }
 0x121   : > { %v588_v26 = vadd.f32 %v871_v22, %v1146_v50  ;;  %v652_v27 = vadd.f32 %v919_v23, %v1146_v50 }
 0x122   : > { %v873_v28 = vpop.f32.mrf.mxu0  ;;  %v921_v29 = vpop.f32.mrf.mxu1 }
 0x123   : > { %679 = vst.msk [vmem:[%s1153_s30 + $0x60] sm:$0xff] %vm666_vm0, %v588_v26  ;;  %695 = vst.msk [vmem:[%s1153_s30 + $0xe0] sm:$0xff] %vm666_vm0, %v652_v27  ;;  %v874_v30 = vadd.f32 %v873_v28, %v872_v24  ;;  %v922_v31 = vadd.f32 %v921_v29, %v920_v25 }
 0x124   : > { %v875_v32 = vpop.f32.mrf.mxu0  ;;  %v923_v33 = vpop.f32.mrf.mxu1 }
 0x125   : > { %v591_v34 = vadd.f32 %v874_v30, %v1146_v50  ;;  %v655_v35 = vadd.f32 %v922_v31, %v1146_v50 }
 0x126   : > { %v876_v36 = vpop.f32.mrf.mxu0  ;;  %v924_v37 = vpop.f32.mrf.mxu1 }
 0x127   : > { %680 = vst.msk [vmem:[%s1153_s30 + $0x68] sm:$0xff] %vm666_vm0, %v591_v34  ;;  %696 = vst.msk [vmem:[%s1153_s30 + $0xe8] sm:$0xff] %vm666_vm0, %v655_v35  ;;  %v877_v38 = vadd.f32 %v876_v36, %v875_v32  ;;  %v925_v39 = vadd.f32 %v924_v37, %v923_v33 }
 0x128   : > { %v878_v40 = vpop.f32.mrf.mxu0  ;;  %v926_v41 = vpop.f32.mrf.mxu1 }
 0x129   : > { %v596_v42 = vadd.f32 %v877_v38, %v1146_v50  ;;  %v660_v43 = vadd.f32 %v925_v39, %v1146_v50 }
 0x12a   : > { %v879_v44 = vpop.f32.mrf.mxu0  ;;  %v927_v45 = vpop.f32.mrf.mxu1 }
 0x12b   : > { %681 = vst.msk [vmem:[%s1153_s30 + $0x70] sm:$0xff] %vm666_vm0, %v596_v42  ;;  %697 = vst.msk [vmem:[%s1153_s30 + $0xf0] sm:$0xff] %vm666_vm0, %v660_v43  ;;  %v880_v46 = vadd.f32 %v879_v44, %v878_v40  ;;  %v928_v47 = vadd.f32 %v927_v45, %v926_v41 }
 0x12d   : > { %v599_v48 = vadd.f32 %v880_v46, %v1146_v50  ;;  %v663_v49 = vadd.f32 %v928_v47, %v1146_v50 }
 0x12f   : > { %682 = vst.msk [vmem:[%s1153_s30 + $0x78] sm:$0xff] %vm666_vm0, %v599_v48  ;;  %698 = vst.msk [vmem:[%s1153_s30 + $0xf8] sm:$0xff] %vm666_vm0, %v663_v49 }
 0x130 PF: > { %s13_s12 = sadd.s32 1, %s1023_s12  }
 0x131   : > { %p10_p4 = scmp.ge.s32.totalorder %s13_s12, 4  }
 0x133   :  { %12 = sbr.rel (!%p10_p4) target bundleno = 1 (0x1), region = 62 }

// kernel: attention_forward.3
= control target key start
LH: loop header
LB: loop body
LE: loop exit
PB: predicated region body
PF: predicated region fallthrough
CT: control target
= control target key end

     0   :  { %s2446_s12 = smov 0   ;;  %s3061_s0 = inlined_call_operand.vmem [shape: f32[512,64], index: 0, kind: input, shape index: {}]   ;;  %s3062_s1 = inlined_call_operand.vmem [shape: f32[1,64], index: 1, kind: input, shape index: {}]   ;;  %s3063_s2 = inlined_call_operand.vmem [shape: bf16[64,768], index: 2, kind: input, shape index: {}]   ;;  %s3064_s3 = inlined_call_operand.vmem [shape: bf16[512,768], index: 3, kind: output, shape index: {}]  }
   0x1 LB: > { %s2023_s13 = sadd.s32 4294967295, %s2423_s12   ;;  %p2027_p0 = scmp.ge.s32.totalorder %s2423_s12, 1  ;;  %s2423_s12 = sphi %s2446_s12, %s13_s12  }
   0x2   : > { %p138_p1 = scmp.lt.s32.totalorder %s2423_s12, 3 }
   0x4   : > { %p139_p2 = pnand %p2027_p0, %p138_p1 }
   0x5   : > { %s2028_s14 = sshll.u32 (!%p139_p2), %s2023_s13, 5 }
   0x6   : > { %142 = sbr.rel (%p139_p2) target bundleno = 571 (0x23b), region = 32  ;;  %p164_p3 = scmp.lt.s32.totalorder (!%p139_p2), %s2028_s14, 63 }
   0xb   : > { %s3066_s14 = smov (!%p164_p3, %s2028_s14), 63  ;;  %vm241_vm0 = vcmask 523264   ;;  %v2317_v46 = vld [vmem:[%s3063_s2 + $0x94] ss:$24 sps:$4 sm:$0xff]   ;;  %v2319_v49 = vld [vmem:[%s3063_s2 + $0x90] ss:$24 sps:$4 sm:$0xff]  }
   0xc   : > { %s2029_s15 = sshll.u32 %s3066_s14, 3  ;;  %722 = vmatprep.subr.bf16.mxu0 %v2317_v46  ;;  %2299 = vmatprep.subr.bf16.mxu1 %v2317_v46  ;;  %v2320_v54 = vld [vmem:[%s3063_s2 + $0x64] ss:$24 sps:$4 sm:$0xff]   ;;  %v2322_v57 = vld [vmem:[%s3063_s2 + $0x60] ss:$24 sps:$4 sm:$0xff]   ;;  %s2307_s19 = smul.u32 24, %s3066_s14 }
   0xd   : > { %s2460_s18 = scalar_lea.vmem %s3061_s0, %s2029_s15  ;;  %723 = vmatpush1.bf16.msra.mxu0 %v2319_v49  ;;  %2303 = vmatpush1.bf16.msra.mxu1 %v2319_v49  ;;  %v2323_v62 = vld [vmem:[%s3063_s2 + $0x34] ss:$24 sps:$4 sm:$0xff]  }
   0xe   : > { %v2463_v0 = vld [vmem:[%s2460_s18 + $0x80] sm:$0xff]  ;;  %v2469_v2 = vld [vmem:[%s2460_s18 + $0x88] sm:$0xff]  ;;  %v2483_v8 = vld [vmem:[%s2460_s18 + $0x18] sm:$0xff]  ;;  %724 = vmatprep.subr.bf16.mxu0 %v2320_v54  ;;  %2300 = vmatprep.subr.bf16.mxu1 %v2320_v54  ;;  %s2960_s22 = scalar_lea.vmem %s3064_s3, %s2307_s19 }
   0xf   : > { %v2466_v1 = vld [vmem:[%s2460_s18] sm:$0xff]  ;;  %v225_v3 = vmul.f32 %v2463_v0, %v2463_v0  ;;  %v226_v5 = vmul.f32 %v2469_v2, %v2469_v2  ;;  %v2478_v6 = vld [vmem:[%s2460_s18 + $0x8] sm:$0xff]  ;;  %v2486_v9 = vld [vmem:[%s2460_s18 + $0x10] sm:$0xff]  ;;  %v212_v14 = vmul.f32 %v2483_v8, %v2483_v8 }
  0x10   : > { %v209_v4 = vmul.f32 %v2466_v1, %v2466_v1  ;;  %v210_v7 = vmul.f32 %v2478_v6, %v2478_v6  ;;  %v211_v15 = vmul.f32 %v2486_v9, %v2486_v9  ;;  %v2497_v16 = vld [vmem:[%s2460_s18 + $0x98] sm:$0xff]  ;;  %v2500_v17 = vld [vmem:[%s2460_s18 + $0x90] sm:$0xff]  ;;  %v2509_v22 = vld [vmem:[%s2460_s18 + $0x28] sm:$0xff] }
  0x11   : > { %v290_v10 = vsel %vm241_vm0, %v225_v3, 0.0  ;;  %v293_v12 = vsel %vm241_vm0, %v226_v5, 0.0  ;;  %v251_v18 = vsel %vm241_vm0, %v212_v14, 0.0  ;;  %v228_v20 = vmul.f32 %v2497_v16, %v2497_v16  ;;  %v2512_v23 = vld [vmem:[%s2460_s18 + $0x20] sm:$0xff]  ;;  %v2521_v28 = vld [vmem:[%s2460_s18 + $0xa8] sm:$0xff]  ;;  %v2533_v34 = vld [vmem:[%s2460_s18 + $0x38] sm:$0xff]  ;;  %725 = vmatpush1.bf16.msra.mxu0 %v2322_v57  ;;  %2304 = vmatpush1.bf16.msra.mxu1 %v2322_v57 }
  0x12   : > { %v242_v11 = vsel %vm241_vm0, %v209_v4, 0.0  ;;  %291 = vadd.xlane.f32.xlu1 %v290_v10  ;;  %v245_v13 = vsel %vm241_vm0, %v210_v7, 0.0  ;;  %v248_v19 = vsel %vm241_vm0, %v211_v15, 0.0  ;;  %v227_v21 = vmul.f32 %v2500_v17, %v2500_v17  ;;  %v2524_v29 = vld [vmem:[%s2460_s18 + $0xa0] sm:$0xff]  ;;  %v2536_v35 = vld [vmem:[%s2460_s18 + $0x30] sm:$0xff]  ;;  %v2545_v40 = vld [vmem:[%s2460_s18 + $0xb8] sm:$0xff]  ;;  %726 = vmatprep.subr.bf16.mxu0 %v2323_v62 }
  0x13   : > { %243 = vadd.xlane.f32.xlu0 %v242_v11  ;;  %v299_v24 = vsel %vm241_vm0, %v228_v20, 0.0  ;;  %v214_v26 = vmul.f32 %v2509_v22, %v2509_v22  ;;  %v213_v27 = vmul.f32 %v2512_v23, %v2512_v23  ;;  %v230_v32 = vmul.f32 %v2521_v28, %v2521_v28  ;;  %v2548_v41 = vld [vmem:[%s2460_s18 + $0xb0] sm:$0xff]  ;;  %v2560_v47 = vld [vmem:[%s2460_s18 + $0x48] sm:$0xff]  ;;  %v2563_v48 = vld [vmem:[%s2460_s18 + $0x40] sm:$0xff]  ;;  %2301 = vmatprep.subr.bf16.mxu1 %v2323_v62 }
  0x14   : > { %v296_v25 = vsel %vm241_vm0, %v227_v21, 0.0  ;;  %v229_v33 = vmul.f32 %v2524_v29, %v2524_v29  ;;  %v216_v38 = vmul.f32 %v2533_v34, %v2533_v34  ;;  %v215_v39 = vmul.f32 %v2536_v35, %v2536_v35  ;;  %v2578_v55 = vld [vmem:[%s2460_s18 + $0xc8] sm:$0xff]  ;;  %v2581_v56 = vld [vmem:[%s2460_s18 + $0xc0] sm:$0xff]  ;;  %v2596_v63 = vld [vmem:[%s2460_s18 + $0x58] sm:$0xff] }
  0x15   : > { %v257_v30 = vsel %vm241_vm0, %v214_v26, 0.0  ;;  %v254_v31 = vsel %vm241_vm0, %v213_v27, 0.0  ;;  %v305_v36 = vsel %vm241_vm0, %v230_v32, 0.0  ;;  %v232_v44 = vmul.f32 %v2545_v40, %v2545_v40  ;;  %v2599_v3 = vld [vmem:[%s2460_s18 + $0x50] sm:$0xff]  ;;  %v2328_v15 = vld [vmem:[%s3063_s2] ss:$24 sps:$4 sm:$0xff]  }
  0x16   : > { %294 = vadd.xlane.f32.xlu1 %v293_v12  ;;  %v302_v37 = vsel %vm241_vm0, %v229_v33, 0.0  ;;  %v263_v42 = vsel %vm241_vm0, %v216_v38, 0.0  ;;  %v260_v43 = vsel %vm241_vm0, %v215_v39, 0.0  ;;  %v231_v45 = vmul.f32 %v2548_v41, %v2548_v41  ;;  %v2325_v4 = vld [vmem:[%s3063_s2 + $0x30] ss:$24 sps:$4 sm:$0xff]   ;;  %v2611_v12 = vld [vmem:[%s2460_s18 + $0xd8] sm:$0xff] }
  0x17   : > { %246 = vadd.xlane.f32.xlu0 %v245_v13  ;;  %v311_v50 = vsel %vm241_vm0, %v232_v44, 0.0  ;;  %v218_v52 = vmul.f32 %v2560_v47, %v2560_v47  ;;  %v217_v53 = vmul.f32 %v2563_v48, %v2563_v48  ;;  %v234_v60 = vmul.f32 %v2578_v55, %v2578_v55  ;;  %727 = vmatpush1.bf16.msra.mxu0 %v2325_v4  ;;  %v2326_v13 = vld [vmem:[%s3063_s2 + $0x4] ss:$24 sps:$4 sm:$0xff]   ;;  %v2617_v14 = vld [vmem:[%s2460_s18 + $0xd0] sm:$0xff] }
  0x18   : > { %v308_v51 = vsel %vm241_vm0, %v231_v45, 0.0  ;;  %v233_v61 = vmul.f32 %v2581_v56, %v2581_v56  ;;  %v220_v10 = vmul.f32 %v2596_v63, %v2596_v63  ;;  %v219_v11 = vmul.f32 %v2599_v3, %v2599_v3  ;;  %2305 = vmatpush1.bf16.msra.mxu1 %v2325_v4  ;;  %728 = vmatprep.subr.bf16.mxu0 %v2326_v13  ;;  %v2331_v27 = vld [vmem:[%s3063_s2 + $0x9c] ss:$24 sps:$4 sm:$0xff]   ;;  %v2652_v38 = vld [vmem:[%s2460_s18 + $0xe0] sm:$0xff] }
  0x19   : > { %v269_v58 = vsel %vm241_vm0, %v218_v52, 0.0  ;;  %v266_v59 = vsel %vm241_vm0, %v217_v53, 0.0  ;;  %v317_v5 = vsel %vm241_vm0, %v234_v60, 0.0  ;;  %2302 = vmatprep.subr.bf16.mxu1 %v2326_v13  ;;  %v235_v21 = vmul.f32 %v2617_v14, %v2617_v14  ;;  %v2661_v45 = vld [vmem:[%s2460_s18 + $0x78] sm:$0xff]  ;;  %v2664_v46 = vld [vmem:[%s2460_s18 + $0x70] sm:$0xff] }
  0x1a   : > { %252 = vadd.xlane.f32.xlu1 %v251_v18  ;;  %v314_v7 = vsel %vm241_vm0, %v233_v61, 0.0  ;;  %v236_v18 = vmul.f32 %v2611_v12, %v2611_v12  ;;  %v272_v20 = vsel %vm241_vm0, %v219_v11, 0.0  ;;  %v2425_v26 = vmov 0   ;;  %v2673_v53 = vld [vmem:[%s2460_s18 + $0xf8] sm:$0xff]  ;;  %v2676_v54 = vld [vmem:[%s2460_s18 + $0xf0] sm:$0xff] }
  0x1b   : > { %249 = vadd.xlane.f32.xlu0 %v248_v19  ;;  %v275_v19 = vsel %vm241_vm0, %v220_v10, 0.0  ;;  %729 = vmatpush1.bf16.msra.mxu0 %v2328_v15  ;;  %v320_v32 = vsel %vm241_vm0, %v235_v21, 0.0  ;;  %v237_v44 = vmul.f32 %v2652_v38, %v2652_v38  ;;  %v223_v52 = vmul.f32 %v2664_v46, %v2664_v46 }
  0x1c   : > { %2306 = vmatpush1.bf16.msra.mxu1 %v2328_v15  ;;  %746 = vmatprep.mubr.bf16.mxu0 %v2425_v26  ;;  %v239_v60 = vmul.f32 %v2676_v54, %v2676_v54 }
  0x1d   : > { %826 = vmatprep.mubr.bf16.mxu1 %v2425_v26  ;;  %915 = vmatprep.subr.bf16.mxu1 %v2331_v27 }
  0x1e   : > { %300 = vadd.xlane.f32.xlu1 %v299_v24  ;;  %v2629_v24 = vld [vmem:[%s2460_s18 + $0x68] sm:$0xff]  ;;  %v332_v62 = vsel %vm241_vm0, %v239_v60, 0.0 }
  0x1f   : > { %297 = vadd.xlane.f32.xlu0 %v296_v25  ;;  %v2632_v25 = vld [vmem:[%s2460_s18 + $0x60] sm:$0xff]  ;;  %v222_v33 = vmul.f32 %v2629_v24, %v2629_v24 }
  0x21   : > { %v281_v39 = vsel %vm241_vm0, %v222_v33, 0.0 }
  0x22   : > { %258 = vadd.xlane.f32.xlu1 %v257_v30  ;;  %v2334_v30 = vld [vmem:[%s3063_s2 + $0xa4] ss:$24 sps:$4 sm:$0xff]  }
  0x23   : > { %255 = vadd.xlane.f32.xlu0 %v254_v31  ;;  %v323_v31 = vsel %vm241_vm0, %v236_v18, 0.0  ;;  %1108 = vmatprep.subr.bf16.mxu0 %v2334_v30 }
  0x26   : > { %306 = vadd.xlane.f32.xlu1 %v305_v36  ;;  %v221_v36 = vmul.f32 %v2632_v25, %v2632_v25 }
  0x27   : > { %303 = vadd.xlane.f32.xlu0 %v302_v37  ;;  %v2649_v37 = vld [vmem:[%s2460_s18 + $0xe8] sm:$0xff] }
  0x2a   : > { %264 = vadd.xlane.f32.xlu1 %v263_v42  ;;  %v278_v42 = vsel %vm241_vm0, %v221_v36, 0.0 }
  0x2b   : > { %261 = vadd.xlane.f32.xlu0 %v260_v43  ;;  %v238_v43 = vmul.f32 %v2649_v37, %v2649_v37 }
  0x2d   : > { %v329_v49 = vsel %vm241_vm0, %v238_v43, 0.0 }
  0x2e   : > { %312 = vadd.xlane.f32.xlu1 %v311_v50  ;;  %v326_v50 = vsel %vm241_vm0, %v237_v44, 0.0 }
  0x2f   : > { %309 = vadd.xlane.f32.xlu0 %v308_v51  ;;  %v224_v51 = vmul.f32 %v2661_v45, %v2661_v45 }
  0x31   : > { %v287_v57 = vsel %vm241_vm0, %v224_v51, 0.0 }
  0x32   : > { %270 = vadd.xlane.f32.xlu1 %v269_v58  ;;  %v284_v58 = vsel %vm241_vm0, %v223_v52, 0.0 }
  0x33   : > { %267 = vadd.xlane.f32.xlu0 %v266_v59  ;;  %v240_v59 = vmul.f32 %v2673_v53, %v2673_v53 }
  0x35   : > { %v335_v61 = vsel %vm241_vm0, %v240_v59, 0.0 }
  0x36   : > { %318 = vadd.xlane.f32.xlu1 %v317_v5 }
  0x37   : > { %315 = vadd.xlane.f32.xlu0 %v314_v7 }
  0x3a   : > { %276 = vadd.xlane.f32.xlu1 %v275_v19 }
  0x3b   : > { %273 = vadd.xlane.f32.xlu0 %v272_v20 }
  0x3e   : > { %324 = vadd.xlane.f32.xlu1 %v323_v31 }
  0x3f   : > { %321 = vadd.xlane.f32.xlu0 %v320_v32 }
  0x42   : > { %282 = vadd.xlane.f32.xlu1 %v281_v39 }
  0x43   : > { %279 = vadd.xlane.f32.xlu0 %v278_v42 }
  0x46   : > { %330 = vadd.xlane.f32.xlu1 %v329_v49 }
  0x47   : > { %327 = vadd.xlane.f32.xlu0 %v326_v50 }
  0x4a   : > { %288 = vadd.xlane.f32.xlu1 %v287_v57 }
  0x4b   : > { %285 = vadd.xlane.f32.xlu0 %v284_v58 }
  0x4e   : > { %336 = vadd.xlane.f32.xlu1 %v335_v61 }
  0x4f   : > { %333 = vadd.xlane.f32.xlu0 %v332_v62 }
  0x9b   : > { %v292_v4 = vpop.xlane.xlu1 %291 }
  0x9c   : > { %v244_v5 = vpop.xlane.xlu0 %243  ;;  %v355_v7 = vmul.f32 0.015625, %v292_v4 }
  0x9d   : > { %v339_v10 = vmul.f32 0.015625, %v244_v5 }
  0x9e   : > { %v387_v11 = vmax.f32 %v355_v7, 1e-16 }
  0x9f   : > { %v371_v13 = vmax.f32 %v339_v10, 1e-16  ;;  %v295_v15 = vpop.xlane.xlu1 %294 }
  0xa0   : > { %v247_v18 = vpop.xlane.xlu0 %246  ;;  %2353 = vrsqrt.f32 %v387_v11  ;;  %v356_v19 = vmul.f32 0.015625, %v295_v15  ;;  %v2690_v15 = vld [vmem:[%s3062_s1] ss:$0 sm:$0xff] }
  0xa1   : > { %v340_v20 = vmul.f32 0.015625, %v247_v18  ;;  %2355 = vrsqrt.f32 %v371_v13 }
  0xa2   : > { %v388_v21 = vmax.f32 %v356_v19, 1e-16 }
  0xa3   : > { %v372_v27 = vmax.f32 %v340_v20, 1e-16  ;;  %v253_v30 = vpop.xlane.xlu1 %252 }
  0xa4   : > { %v250_v31 = vpop.xlane.xlu0 %249  ;;  %2357 = vrsqrt.f32 %v388_v21  ;;  %v342_v32 = vmul.f32 0.015625, %v253_v30 }
  0xa5   : > { %v341_v33 = vmul.f32 0.015625, %v250_v31  ;;  %2359 = vrsqrt.f32 %v372_v27 }
  0xa6   : > { %v374_v36 = vmax.f32 %v342_v32, 1e-16 }
  0xa7   : > { %v373_v39 = vmax.f32 %v341_v33, 1e-16  ;;  %v301_v42 = vpop.xlane.xlu1 %300 }
  0xa8   : > { %v298_v43 = vpop.xlane.xlu0 %297  ;;  %2361 = vrsqrt.f32 %v374_v36  ;;  %v358_v44 = vmul.f32 0.015625, %v301_v42 }
  0xa9   : > { %v357_v49 = vmul.f32 0.015625, %v298_v43  ;;  %2363 = vrsqrt.f32 %v373_v39 }
  0xaa   : > { %v390_v50 = vmax.f32 %v358_v44, 1e-16 }
  0xab   : > { %v389_v51 = vmax.f32 %v357_v49, 1e-16  ;;  %v259_v52 = vpop.xlane.xlu1 %258 }
  0xac   : > { %v256_v57 = vpop.xlane.xlu0 %255  ;;  %2365 = vrsqrt.f32 %v390_v50  ;;  %v344_v58 = vmul.f32 0.015625, %v259_v52 }
  0xad   : > { %v343_v59 = vmul.f32 0.015625, %v256_v57  ;;  %v2354_v60 = vpop.eup %2353  ;;  %2367 = vrsqrt.f32 %v389_v51  ;;  %v2332_v51 = vld [vmem:[%s3063_s2 + $0xa0] ss:$24 sps:$4 sm:$0xff]  }
  0xae   : > { %v2356_v61 = vpop.eup %2355  ;;  %v376_v62 = vmax.f32 %v344_v58, 1e-16  ;;  %v451_v10 = vmul.f32 %v2354_v60, %v2463_v0 }
  0xaf   : > { %v375_v4 = vmax.f32 %v343_v59, 1e-16  ;;  %v307_v5 = vpop.xlane.xlu1 %306  ;;  %v435_v19 = vmul.f32 %v2356_v61, %v2466_v1  ;;  %v2329_v1 = vld [vmem:[%s3063_s2 + $0x98] ss:$24 sps:$4 sm:$0xff]  }
  0xb0   : > { %v304_v7 = vpop.xlane.xlu0 %303  ;;  %2369 = vrsqrt.f32 %v376_v62  ;;  %v360_v11 = vmul.f32 0.015625, %v307_v5  ;;  %v490_v33 = vmul.f32 %v2690_v15, %v451_v10  ;;  %v2337_v62 = vld [vmem:[%s3063_s2 + $0x6c] ss:$24 sps:$4 sm:$0xff]  }
  0xb1   : > { %v359_v13 = vmul.f32 0.015625, %v304_v7  ;;  %v2358_v18 = vpop.eup %2357  ;;  %2371 = vrsqrt.f32 %v375_v4  ;;  %v474_v44 = vmul.f32 %v2690_v15, %v435_v19  ;;  %v2340_v7 = vld [vmem:[%s3063_s2 + $0x74] ss:$24 sps:$4 sm:$0xff]  }
  0xb2   : > { %v2360_v20 = vpop.eup %2359  ;;  %v392_v21 = vmax.f32 %v360_v11, 1e-16  ;;  %v452_v30 = vmul.f32 %v2358_v18, %v2469_v2 }
  0xb3   : > { %v391_v27 = vmax.f32 %v359_v13, 1e-16  ;;  %v265_v31 = vpop.xlane.xlu1 %264  ;;  %v436_v0 = vmul.f32 %v2360_v20, %v2478_v6  ;;  %v2343_v20 = vld [vmem:[%s3063_s2 + $0x3c] ss:$24 sps:$4 sm:$0xff]  }
  0xb4   : > { %v262_v32 = vpop.xlane.xlu0 %261  ;;  %2373 = vrsqrt.f32 %v392_v21  ;;  %v346_v36 = vmul.f32 0.015625, %v265_v31  ;;  %v491_v42 = vmul.f32 %v2690_v15, %v452_v30 }
  0xb5   : > { %v345_v39 = vmul.f32 0.015625, %v262_v32  ;;  %v2362_v43 = vpop.eup %2361  ;;  %2375 = vrsqrt.f32 %v391_v27  ;;  %v475_v2 = vmul.f32 %v2690_v15, %v436_v0  ;;  %v2346_v0 = vld [vmem:[%s3063_s2 + $0x44] ss:$24 sps:$4 sm:$0xff]  }
  0xb6   : > { %v2364_v49 = vpop.eup %2363  ;;  %v378_v50 = vmax.f32 %v346_v36, 1e-16  ;;  %v2705_v52 = vpack.c.bf16 %v491_v42, %v490_v33  ;;  %v438_v61 = vmul.f32 %v2362_v43, %v2483_v8  ;;  %v2335_v8 = vld [vmem:[%s3063_s2 + $0x68] ss:$24 sps:$4 sm:$0xff]  }
  0xb7   : > { %v377_v6 = vmax.f32 %v345_v39, 1e-16  ;;  %v313_v57 = vpop.xlane.xlu1 %312  ;;  %v2707_v59 = vpack.c.bf16 %v475_v2, %v474_v44  ;;  %v437_v60 = vmul.f32 %v2364_v49, %v2486_v9  ;;  %v2338_v9 = vld [vmem:[%s3063_s2 + $0x70] ss:$24 sps:$4 sm:$0xff]  }
  0xb8   : > { %v310_v58 = vpop.xlane.xlu0 %309  ;;  %2377 = vrsqrt.f32 %v378_v50  ;;  %v362_v4 = vmul.f32 0.015625, %v313_v57  ;;  %2065 = vmatmul.mubr.msk.bf16.vlgmr.msra.gmra.mxu1 %vm241_vm0, %v2705_v52  ;;  %v477_v31 = vmul.f32 %v2690_v15, %v438_v61  ;;  %v2341_v57 = vld [vmem:[%s3063_s2 + $0x38] ss:$24 sps:$4 sm:$0xff]   ;;  %v2349_v61 = vld [vmem:[%s3063_s2 + $0xc] ss:$24 sps:$4 sm:$0xff]  }
  0xb9   : > { %v361_v5 = vmul.f32 0.015625, %v310_v58  ;;  %v2366_v10 = vpop.eup %2365  ;;  %2379 = vrsqrt.f32 %v377_v6  ;;  %2057 = vmatmul.mubr.msk.bf16.vlgmr.msra.gmra.mxu0 %vm241_vm0, %v2707_v59  ;;  %916 = vmatpush1.bf16.msra.mxu1 %v2329_v1  ;;  %v476_v30 = vmul.f32 %v2690_v15, %v437_v60  ;;  %v2344_v58 = vld [vmem:[%s3063_s2 + $0x40] ss:$24 sps:$4 sm:$0xff]  }
  0xba   : > { %v2368_v11 = vpop.eup %2367  ;;  %v394_v13 = vmax.f32 %v362_v4, 1e-16  ;;  %1109 = vmatpush1.bf16.msra.mxu0 %v2332_v51  ;;  %836 = vmatprep.mubr.bf16.mxu1 %v2425_v26  ;;  %v454_v19 = vmul.f32 %v2366_v10, %v2497_v16 }
  0xbb   : > { %v393_v18 = vmax.f32 %v361_v5, 1e-16  ;;  %v271_v21 = vpop.xlane.xlu1 %270  ;;  %756 = vmatprep.mubr.bf16.mxu0 %v2425_v26  ;;  %v453_v32 = vmul.f32 %v2368_v11, %v2500_v17  ;;  %917 = vmatprep.subr.bf16.mxu1 %v2337_v62  ;;  %v2742_v50 = vpack.c.bf16 %v477_v31, %v476_v30 }
  0xbc   : > { %v268_v27 = vpop.xlane.xlu0 %267  ;;  %2381 = vrsqrt.f32 %v394_v13  ;;  %v348_v16 = vmul.f32 0.015625, %v271_v21  ;;  %v493_v36 = vmul.f32 %v2690_v15, %v454_v19  ;;  %1110 = vmatprep.subr.bf16.mxu0 %v2340_v7  ;;  %v2347_v19 = vld [vmem:[%s3063_s2 + $0x8] ss:$24 sps:$4 sm:$0xff]  }
  0xbd   : > { %v347_v33 = vmul.f32 0.015625, %v268_v27  ;;  %v2370_v39 = vpop.eup %2369  ;;  %2383 = vrsqrt.f32 %v393_v18  ;;  %v492_v42 = vmul.f32 %v2690_v15, %v453_v32  ;;  %918 = vmatpush1.bf16.msra.mxu1 %v2335_v8 }
  0xbe   : > { %v2372_v43 = vpop.eup %2371  ;;  %v380_v1 = vmax.f32 %v348_v16, 1e-16  ;;  %v440_v17 = vmul.f32 %v2370_v39, %v2509_v22  ;;  %1111 = vmatpush1.bf16.msra.mxu0 %v2338_v9  ;;  %919 = vmatprep.subr.bf16.mxu1 %v2343_v20  ;;  %v2350_v20 = vld [vmem:[%s3063_s2 + $0x10] ss:$24 sps:$4 sm:$0xff]  }
  0xbf   : > { %v379_v44 = vmax.f32 %v347_v33, 1e-16  ;;  %v319_v2 = vpop.xlane.xlu1 %318  ;;  %v2744_v6 = vpack.c.bf16 %v493_v36, %v492_v42  ;;  %v439_v51 = vmul.f32 %v2372_v43, %v2512_v23  ;;  %1112 = vmatprep.subr.bf16.mxu0 %v2346_v0  ;;  %v2352_v23 = vld [vmem:[%s3063_s2 + $0x14] ss:$24 sps:$4 sm:$0xff]  }
  0xc0   : > { %v316_v49 = vpop.xlane.xlu0 %315  ;;  %2385 = vrsqrt.f32 %v380_v1  ;;  %v364_v22 = vmul.f32 0.015625, %v319_v2  ;;  %v479_v4 = vmul.f32 %v2690_v15, %v440_v17 }
  0xc1   : > { %v363_v60 = vmul.f32 0.015625, %v316_v49  ;;  %v2374_v62 = vpop.eup %2373  ;;  %2387 = vrsqrt.f32 %v379_v44  ;;  %2058 = vmatmul.mubr.msk.bf16.gmra.mxu0 %vm241_vm0, %v2742_v50  ;;  %2066 = vmatmul.mubr.msk.bf16.gmra.mxu1 %vm241_vm0, %v2744_v6  ;;  %v478_v8 = vmul.f32 %v2690_v15, %v439_v51 }
  0xc2   : > { %v2376_v5 = vpop.eup %2375  ;;  %v396_v7 = vmax.f32 %v364_v22, 1e-16  ;;  %766 = vmatprep.mubr.bf16.mxu0 %v2425_v26  ;;  %846 = vmatprep.mubr.bf16.mxu1 %v2425_v26  ;;  %v456_v9 = vmul.f32 %v2374_v62, %v2521_v28 }
  0xc3   : > { %v395_v10 = vmax.f32 %v363_v60, 1e-16  ;;  %v277_v11 = vpop.xlane.xlu1 %276  ;;  %v455_v18 = vmul.f32 %v2376_v5, %v2524_v29  ;;  %920 = vmatpush1.bf16.msra.mxu1 %v2341_v57  ;;  %1113 = vmatpush1.bf16.msra.mxu0 %v2344_v58  ;;  %v2777_v16 = vpack.c.bf16 %v479_v4, %v478_v8 }
  0xc4   : > { %v274_v13 = vpop.xlane.xlu0 %273  ;;  %2389 = vrsqrt.f32 %v396_v7  ;;  %v350_v21 = vmul.f32 0.015625, %v277_v11  ;;  %v495_v30 = vmul.f32 %v2690_v15, %v456_v9  ;;  %921 = vmatprep.subr.bf16.mxu1 %v2349_v61  ;;  %1114 = vmatprep.subr.bf16.mxu0 %v2352_v23 }
  0xc5   : > { %v349_v27 = vmul.f32 0.015625, %v274_v13  ;;  %v2378_v28 = vpop.eup %2377  ;;  %2391 = vrsqrt.f32 %v395_v10  ;;  %v494_v29 = vmul.f32 %v2690_v15, %v455_v18 }
  0xc6   : > { %v2380_v31 = vpop.eup %2379  ;;  %v382_v32 = vmax.f32 %v350_v21, 1e-16  ;;  %v442_v43 = vmul.f32 %v2378_v28, %v2533_v34 }
  0xc7   : > { %v381_v0 = vmax.f32 %v349_v27, 1e-16  ;;  %v325_v33 = vpop.xlane.xlu1 %324  ;;  %v2779_v39 = vpack.c.bf16 %v495_v30, %v494_v29  ;;  %v441_v42 = vmul.f32 %v2380_v31, %v2536_v35  ;;  %922 = vmatpush1.bf16.msra.mxu1 %v2347_v19  ;;  %1115 = vmatpush1.bf16.msra.mxu0 %v2350_v20 }
  0xc8   : > { %v322_v36 = vpop.xlane.xlu0 %321  ;;  %2393 = vrsqrt.f32 %v382_v32  ;;  %v366_v1 = vmul.f32 0.015625, %v325_v33  ;;  %v481_v22 = vmul.f32 %v2690_v15, %v442_v43 }
  0xc9   : > { %v365_v44 = vmul.f32 0.015625, %v322_v36  ;;  %v2382_v17 = vpop.eup %2381  ;;  %2395 = vrsqrt.f32 %v381_v0  ;;  %2059 = vmatmul.mubr.msk.bf16.gmra.mxu0 %vm241_vm0, %v2777_v16  ;;  %2067 = vmatmul.mubr.msk.bf16.gmra.mxu1 %vm241_vm0, %v2779_v39  ;;  %v480_v58 = vmul.f32 %v2690_v15, %v441_v42 }
  0xca   : > { %v2384_v2 = vpop.eup %2383  ;;  %v398_v49 = vmax.f32 %v366_v1, 1e-16  ;;  %776 = vmatprep.mubr.bf16.mxu0 %v2425_v26  ;;  %856 = vmatprep.mubr.bf16.mxu1 %v2425_v26  ;;  %v458_v34 = vmul.f32 %v2382_v17, %v2545_v40 }
  0xcb   : > { %v397_v51 = vmax.f32 %v365_v44, 1e-16  ;;  %v283_v35 = vpop.xlane.xlu1 %282  ;;  %v457_v60 = vmul.f32 %v2384_v2, %v2548_v41  ;;  %v2795_v11 = vpack.c.bf16 %v481_v22, %v480_v58 }
  0xcc   : > { %v280_v57 = vpop.xlane.xlu0 %279  ;;  %2397 = vrsqrt.f32 %v398_v49  ;;  %v352_v61 = vmul.f32 0.015625, %v283_v35  ;;  %v497_v62 = vmul.f32 %v2690_v15, %v458_v34 }
  0xcd   : > { %v351_v23 = vmul.f32 0.015625, %v280_v57  ;;  %v2386_v4 = vpop.eup %2385  ;;  %2399 = vrsqrt.f32 %v397_v51  ;;  %v496_v5 = vmul.f32 %v2690_v15, %v457_v60 }
  0xce   : > { %v2388_v7 = vpop.eup %2387  ;;  %v384_v10 = vmax.f32 %v352_v61, 1e-16  ;;  %v444_v18 = vmul.f32 %v2386_v4, %v2560_v47 }
  0xcf   : > { %v383_v40 = vmax.f32 %v351_v23, 1e-16  ;;  %v331_v8 = vpop.xlane.xlu1 %330  ;;  %v2797_v13 = vpack.c.bf16 %v497_v62, %v496_v5  ;;  %v443_v41 = vmul.f32 %v2388_v7, %v2563_v48 }
  0xd0   : > { %v328_v9 = vpop.xlane.xlu0 %327  ;;  %2401 = vrsqrt.f32 %v384_v10  ;;  %v368_v19 = vmul.f32 0.015625, %v331_v8  ;;  %v483_v32 = vmul.f32 %v2690_v15, %v444_v18 }
  0xd1   : > { %v367_v20 = vmul.f32 0.015625, %v328_v9  ;;  %v2390_v21 = vpop.eup %2389  ;;  %2403 = vrsqrt.f32 %v383_v40  ;;  %2060 = vmatmul.mubr.msk.bf16.gmra.mxu0 %vm241_vm0, %v2795_v11  ;;  %2068 = vmatmul.mubr.msk.bf16.gmra.mxu1 %vm241_vm0, %v2797_v13  ;;  %v482_v31 = vmul.f32 %v2690_v15, %v443_v41 }
  0xd2   : > { %v2392_v27 = vpop.eup %2391  ;;  %v400_v30 = vmax.f32 %v368_v19, 1e-16  ;;  %786 = vmatprep.mubr.bf16.mxu0 %v2425_v26  ;;  %866 = vmatprep.mubr.bf16.mxu1 %v2425_v26  ;;  %v460_v47 = vmul.f32 %v2390_v21, %v2578_v55 }
  0xd3   : > { %v399_v28 = vmax.f32 %v367_v20, 1e-16  ;;  %v289_v48 = vpop.xlane.xlu1 %288  ;;  %v459_v0 = vmul.f32 %v2392_v27, %v2581_v56  ;;  %v2813_v51 = vpack.c.bf16 %v483_v32, %v482_v31 }
  0xd4   : > { %v286_v29 = vpop.xlane.xlu0 %285  ;;  %2405 = vrsqrt.f32 %v400_v30  ;;  %v354_v33 = vmul.f32 0.015625, %v289_v48  ;;  %v499_v42 = vmul.f32 %v2690_v15, %v460_v47 }
  0xd5   : > { %v353_v36 = vmul.f32 0.015625, %v286_v29  ;;  %v2394_v43 = vpop.eup %2393  ;;  %2407 = vrsqrt.f32 %v399_v28  ;;  %v498_v1 = vmul.f32 %v2690_v15, %v459_v0 }
  0xd6   : > { %v2396_v44 = vpop.eup %2395  ;;  %v386_v17 = vmax.f32 %v354_v33, 1e-16  ;;  %v446_v35 = vmul.f32 %v2394_v43, %v2596_v63 }
  0xd7   : > { %v385_v55 = vmax.f32 %v353_v36, 1e-16  ;;  %v337_v2 = vpop.xlane.xlu1 %336  ;;  %v2815_v34 = vpack.c.bf16 %v499_v42, %v498_v1  ;;  %v445_v56 = vmul.f32 %v2396_v44, %v2599_v3 }
  0xd8   : > { %v334_v49 = vpop.xlane.xlu0 %333  ;;  %2409 = vrsqrt.f32 %v386_v17  ;;  %v370_v57 = vmul.f32 0.015625, %v337_v2  ;;  %v485_v62 = vmul.f32 %v2690_v15, %v446_v35 }
  0xd9   : > { %v369_v58 = vmul.f32 0.015625, %v334_v49  ;;  %v2398_v22 = vpop.eup %2397  ;;  %2411 = vrsqrt.f32 %v385_v55  ;;  %2061 = vmatmul.mubr.msk.bf16.gmra.mxu0 %vm241_vm0, %v2813_v51  ;;  %2069 = vmatmul.mubr.msk.bf16.gmra.mxu1 %vm241_vm0, %v2815_v34  ;;  %v484_v3 = vmul.f32 %v2690_v15, %v445_v56 }
  0xda   : > { %v2400_v60 = vpop.eup %2399  ;;  %v402_v61 = vmax.f32 %v370_v57, 1e-16  ;;  %796 = vmatprep.mubr.bf16.mxu0 %v2425_v26  ;;  %876 = vmatprep.mubr.bf16.mxu1 %v2425_v26  ;;  %v462_v63 = vmul.f32 %v2398_v22, %v2611_v12 }
  0xdb   : > { %v401_v23 = vmax.f32 %v369_v58, 1e-16  ;;  %v461_v4 = vmul.f32 %v2400_v60, %v2617_v14  ;;  %v511_v8 = vpack.c.bf16 %v485_v62, %v484_v3 }
  0xdc   : > { %2413 = vrsqrt.f32 %v402_v61  ;;  %v501_v5 = vmul.f32 %v2690_v15, %v462_v63 }
  0xdd   : > { %v2402_v7 = vpop.eup %2401  ;;  %2415 = vrsqrt.f32 %v401_v23  ;;  %v500_v10 = vmul.f32 %v2690_v15, %v461_v4 }
  0xde   : > { %v2404_v40 = vpop.eup %2403  ;;  %v448_v12 = vmul.f32 %v2402_v7, %v2629_v24 }
  0xdf   : > { %v2831_v9 = vpack.c.bf16 %v501_v5, %v500_v10  ;;  %v447_v41 = vmul.f32 %v2404_v40, %v2632_v25 }
  0xe0   : > { %v487_v21 = vmul.f32 %v2690_v15, %v448_v12 }
  0xe1   : > { %v2406_v18 = vpop.eup %2405  ;;  %2062 = vmatmul.mubr.msk.bf16.gmra.mxu0 %vm241_vm0, %v511_v8  ;;  %2070 = vmatmul.mubr.msk.bf16.gmra.mxu1 %vm241_vm0, %v2831_v9  ;;  %v486_v20 = vmul.f32 %v2690_v15, %v447_v41 }
  0xe2   : > { %v2408_v14 = vpop.eup %2407  ;;  %806 = vmatprep.mubr.bf16.mxu0 %v2425_v26  ;;  %886 = vmatprep.mubr.bf16.mxu1 %v2425_v26  ;;  %v464_v19 = vmul.f32 %v2406_v18, %v2649_v37 }
  0xe3   : > { %v463_v25 = vmul.f32 %v2408_v14, %v2652_v38  ;;  %v512_v47 = vpack.c.bf16 %v487_v21, %v486_v20 }
  0xe4   : > { %v503_v24 = vmul.f32 %v2690_v15, %v464_v19 }
  0xe5   : > { %v2410_v27 = vpop.eup %2409  ;;  %v502_v30 = vmul.f32 %v2690_v15, %v463_v25 }
  0xe6   : > { %v2412_v28 = vpop.eup %2411  ;;  %v450_v31 = vmul.f32 %v2410_v27, %v2661_v45 }
  0xe7   : > { %v2846_v48 = vpack.c.bf16 %v503_v24, %v502_v30  ;;  %v449_v29 = vmul.f32 %v2412_v28, %v2664_v46 }
  0xe8   : > { %v489_v33 = vmul.f32 %v2690_v15, %v450_v31 }
  0xe9   : > { %v2414_v37 = vpop.eup %2413  ;;  %2063 = vmatmul.mubr.msk.bf16.gmra.mxu0 %vm241_vm0, %v512_v47  ;;  %2071 = vmatmul.mubr.msk.bf16.gmra.mxu1 %vm241_vm0, %v2846_v48  ;;  %v488_v0 = vmul.f32 %v2690_v15, %v449_v29 }
  0xea   : > { %v2416_v38 = vpop.eup %2415  ;;  %816 = vmatprep.mubr.bf16.mxu0 %v2425_v26  ;;  %896 = vmatprep.mubr.bf16.mxu1 %v2425_v26  ;;  %v466_v32 = vmul.f32 %v2414_v37, %v2673_v53 }
  0xeb   : > { %v465_v46 = vmul.f32 %v2416_v38, %v2676_v54  ;;  %v513_v42 = vpack.c.bf16 %v489_v33, %v488_v0 }
  0xec   : > { %v505_v45 = vmul.f32 %v2690_v15, %v466_v32 }
  0xed   : > { %v504_v36 = vmul.f32 %v2690_v15, %v465_v46 }
  0xef   : > { %v2861_v43 = vpack.c.bf16 %v505_v45, %v504_v36 }
  0xf1   : > { %2064 = vmatmul.mubr.msk.bf16.gmra.mxu0 %vm241_vm0, %v513_v42  ;;  %2072 = vmatmul.mubr.msk.bf16.gmra.mxu1 %vm241_vm0, %v2861_v43 }
  0xf2   : > { %939 = vmatprep.mubr.bf16.mxu1 %v2425_v26  ;;  %1132 = vmatprep.mubr.bf16.mxu0 %v2425_v26 }
  0xf9   : > { %2073 = vmatmul.mubr.msk.bf16.vlgmr.msra.gmra.mxu1 %vm241_vm0, %v2707_v59  ;;  %2089 = vmatmul.mubr.msk.bf16.vlgmr.msra.gmra.mxu0 %vm241_vm0, %v2707_v59 }
  0xfa   : > { %949 = vmatprep.mubr.bf16.mxu1 %v2425_v26  ;;  %1142 = vmatprep.mubr.bf16.mxu0 %v2425_v26 }
 0x101   : > { %2074 = vmatmul.mubr.msk.bf16.gmra.mxu1 %vm241_vm0, %v2742_v50  ;;  %2090 = vmatmul.mubr.msk.bf16.gmra.mxu0 %vm241_vm0, %v2742_v50 }
 0x102   : > { %959 = vmatprep.mubr.bf16.mxu1 %v2425_v26  ;;  %1152 = vmatprep.mubr.bf16.mxu0 %v2425_v26 }
 0x109   : > { %2075 = vmatmul.mubr.msk.bf16.gmra.mxu1 %vm241_vm0, %v2777_v16  ;;  %2091 = vmatmul.mubr.msk.bf16.gmra.mxu0 %vm241_vm0, %v2777_v16 }
 0x10a   : > { %969 = vmatprep.mubr.bf16.mxu1 %v2425_v26  ;;  %1162 = vmatprep.mubr.bf16.mxu0 %v2425_v26 }
 0x111   : > { %2076 = vmatmul.mubr.msk.bf16.gmra.mxu1 %vm241_vm0, %v2795_v11  ;;  %2092 = vmatmul.mubr.msk.bf16.gmra.mxu0 %vm241_vm0, %v2795_v11 }
 0x112   : > { %979 = vmatprep.mubr.bf16.mxu1 %v2425_v26  ;;  %1172 = vmatprep.mubr.bf16.mxu0 %v2425_v26 }
 0x119   : > { %2077 = vmatmul.mubr.msk.bf16.gmra.mxu1 %vm241_vm0, %v2813_v51  ;;  %2093 = vmatmul.mubr.msk.bf16.gmra.mxu0 %vm241_vm0, %v2813_v51 }
 0x11a   : > { %989 = vmatprep.mubr.bf16.mxu1 %v2425_v26  ;;  %1182 = vmatprep.mubr.bf16.mxu0 %v2425_v26 }
 0x121   : > { %2078 = vmatmul.mubr.msk.bf16.gmra.mxu1 %vm241_vm0, %v511_v8  ;;  %2094 = vmatmul.mubr.msk.bf16.gmra.mxu0 %vm241_vm0, %v511_v8 }
 0x122   : > { %999 = vmatprep.mubr.bf16.mxu1 %v2425_v26  ;;  %1192 = vmatprep.mubr.bf16.mxu0 %v2425_v26 }
 0x129   : > { %2079 = vmatmul.mubr.msk.bf16.gmra.mxu1 %vm241_vm0, %v512_v47  ;;  %2095 = vmatmul.mubr.msk.bf16.gmra.mxu0 %vm241_vm0, %v512_v47 }
 0x12a   : > { %1009 = vmatprep.mubr.bf16.mxu1 %v2425_v26  ;;  %1202 = vmatprep.mubr.bf16.mxu0 %v2425_v26 }
 0x131   : > { %2080 = vmatmul.mubr.msk.bf16.gmra.mxu1 %vm241_vm0, %v513_v42  ;;  %2096 = vmatmul.mubr.msk.bf16.gmra.mxu0 %vm241_vm0, %v513_v42 }
 0x132   : > { %1019 = vmatprep.mubr.bf16.mxu1 %v2425_v26  ;;  %1212 = vmatprep.mubr.bf16.mxu0 %v2425_v26 }
 0x139   : > { %2081 = vmatmul.mubr.msk.bf16.gmra.mxu1 %vm241_vm0, %v2705_v52  ;;  %2097 = vmatmul.mubr.msk.bf16.gmra.mxu0 %vm241_vm0, %v2705_v52 }
 0x13a   : > { %1029 = vmatprep.mubr.bf16.mxu1 %v2425_v26  ;;  %1222 = vmatprep.mubr.bf16.mxu0 %v2425_v26 }
 0x141   : > { %2082 = vmatmul.mubr.msk.bf16.gmra.mxu1 %vm241_vm0, %v2744_v6  ;;  %2098 = vmatmul.mubr.msk.bf16.gmra.mxu0 %vm241_vm0, %v2744_v6 }
 0x142   : > { %1039 = vmatprep.mubr.bf16.mxu1 %v2425_v26  ;;  %1232 = vmatprep.mubr.bf16.mxu0 %v2425_v26 }
 0x149   : > { %2083 = vmatmul.mubr.msk.bf16.gmra.mxu1 %vm241_vm0, %v2779_v39  ;;  %2099 = vmatmul.mubr.msk.bf16.gmra.mxu0 %vm241_vm0, %v2779_v39 }
 0x14a   : > { %1049 = vmatprep.mubr.bf16.mxu1 %v2425_v26  ;;  %1242 = vmatprep.mubr.bf16.mxu0 %v2425_v26 }
 0x151   : > { %2084 = vmatmul.mubr.msk.bf16.gmra.mxu1 %vm241_vm0, %v2797_v13  ;;  %2100 = vmatmul.mubr.msk.bf16.gmra.mxu0 %vm241_vm0, %v2797_v13 }
 0x152   : > { %1059 = vmatprep.mubr.bf16.mxu1 %v2425_v26  ;;  %1252 = vmatprep.mubr.bf16.mxu0 %v2425_v26 }
 0x159   : > { %2085 = vmatmul.mubr.msk.bf16.gmra.mxu1 %vm241_vm0, %v2815_v34  ;;  %2101 = vmatmul.mubr.msk.bf16.gmra.mxu0 %vm241_vm0, %v2815_v34 }
 0x15a   : > { %1069 = vmatprep.mubr.bf16.mxu1 %v2425_v26  ;;  %1262 = vmatprep.mubr.bf16.mxu0 %v2425_v26 }
 0x161   : > { %2086 = vmatmul.mubr.msk.bf16.gmra.mxu1 %vm241_vm0, %v2831_v9  ;;  %2102 = vmatmul.mubr.msk.bf16.gmra.mxu0 %vm241_vm0, %v2831_v9 }
 0x162   : > { %1079 = vmatprep.mubr.bf16.mxu1 %v2425_v26  ;;  %1272 = vmatprep.mubr.bf16.mxu0 %v2425_v26 }
 0x169   : > { %2087 = vmatmul.mubr.msk.bf16.gmra.mxu1 %vm241_vm0, %v2846_v48  ;;  %2103 = vmatmul.mubr.msk.bf16.gmra.mxu0 %vm241_vm0, %v2846_v48 }
 0x16a   : > { %1089 = vmatprep.mubr.bf16.mxu1 %v2425_v26  ;;  %1282 = vmatprep.mubr.bf16.mxu0 %v2425_v26 }
 0x171   : > { %2088 = vmatmul.mubr.msk.bf16.gmra.mxu1 %vm241_vm0, %v2861_v43  ;;  %2104 = vmatmul.mubr.msk.bf16.gmra.mxu0 %vm241_vm0, %v2861_v43 }
 0x178   : > { %v828_v53 = vpop.f32.mrf.mxu1 }
 0x179   : > { %v748_v54 = vpop.f32.mrf.mxu0 }
 0x17a   : > { %v830_v15 = vpop.f32.mrf.mxu1 }
 0x17b   : > { %v750_v26 = vpop.f32.mrf.mxu0  ;;  %v2251_v52 = vpack.c.bf16 %v830_v15, %v828_v53 }
 0x17c   : > { %v2203_v59 = vpack.c.bf16 %v750_v26, %v748_v54  ;;  %v832_v50 = vpop.f32.mrf.mxu1 }
 0x17d   : > { %1917 = vst [vmem:[%s2960_s22 + $0x180] sm:$0xff] %v2251_v52  ;;  %v752_v6 = vpop.f32.mrf.mxu0 }
 0x17e   : > { %1869 = vst [vmem:[%s2960_s22] sm:$0xff] %v2203_v59  ;;  %v834_v16 = vpop.f32.mrf.mxu1 }
 0x17f   : > { %v754_v39 = vpop.f32.mrf.mxu0  ;;  %v2254_v11 = vpack.c.bf16 %v834_v16, %v832_v50 }
 0x180   : > { %v2206_v13 = vpack.c.bf16 %v754_v39, %v752_v6 }
 0x181   : > { %1920 = vst [vmem:[%s2960_s22 + $0x198] sm:$0xff] %v2254_v11  ;;  %v758_v1 = vpop.f32.mrf.mxu0  ;;  %v838_v44 = vpop.f32.mrf.mxu1 }
 0x182   : > { %1872 = vst [vmem:[%s2960_s22 + $0x18] sm:$0xff] %v2206_v13 }
 0x183   : > { %v760_v17 = vpop.f32.mrf.mxu0  ;;  %v840_v55 = vpop.f32.mrf.mxu1 }
 0x184   : > { %v2209_v2 = vpack.c.bf16 %v760_v17, %v758_v1  ;;  %v2257_v49 = vpack.c.bf16 %v840_v55, %v838_v44 }
 0x185   : > { %v762_v51 = vpop.f32.mrf.mxu0  ;;  %v842_v34 = vpop.f32.mrf.mxu1 }
 0x186   : > { %1875 = vst [vmem:[%s2960_s22 + $0x30] sm:$0xff] %v2209_v2  ;;  %1923 = vst [vmem:[%s2960_s22 + $0x1b0] sm:$0xff] %v2257_v49 }
 0x187   : > { %v764_v56 = vpop.f32.mrf.mxu0  ;;  %v844_v35 = vpop.f32.mrf.mxu1 }
 0x188   : > { %v2212_v57 = vpack.c.bf16 %v764_v56, %v762_v51  ;;  %v2260_v58 = vpack.c.bf16 %v844_v35, %v842_v34 }
 0x189   : > { %v768_v22 = vpop.f32.mrf.mxu0  ;;  %v848_v60 = vpop.f32.mrf.mxu1 }
 0x18a   : > { %1878 = vst [vmem:[%s2960_s22 + $0x48] sm:$0xff] %v2212_v57  ;;  %1926 = vst [vmem:[%s2960_s22 + $0x1c8] sm:$0xff] %v2260_v58 }
 0x18b   : > { %v770_v61 = vpop.f32.mrf.mxu0  ;;  %v850_v23 = vpop.f32.mrf.mxu1 }
 0x18c   : > { %v2215_v63 = vpack.c.bf16 %v770_v61, %v768_v22  ;;  %v2263_v3 = vpack.c.bf16 %v850_v23, %v848_v60 }
 0x18d   : > { %v772_v62 = vpop.f32.mrf.mxu0  ;;  %v852_v4 = vpop.f32.mrf.mxu1 }
 0x18e   : > { %1881 = vst [vmem:[%s2960_s22 + $0x60] sm:$0xff] %v2215_v63  ;;  %1929 = vst [vmem:[%s2960_s22 + $0x1e0] sm:$0xff] %v2263_v3 }
 0x18f   : > { %v774_v5 = vpop.f32.mrf.mxu0  ;;  %v854_v7 = vpop.f32.mrf.mxu1 }
 0x190   : > { %v2218_v10 = vpack.c.bf16 %v774_v5, %v772_v62  ;;  %v2266_v40 = vpack.c.bf16 %v854_v7, %v852_v4 }
 0x191   : > { %v778_v8 = vpop.f32.mrf.mxu0  ;;  %v858_v9 = vpop.f32.mrf.mxu1 }
 0x192   : > { %1884 = vst [vmem:[%s2960_s22 + $0x78] sm:$0xff] %v2218_v10  ;;  %1932 = vst [vmem:[%s2960_s22 + $0x1f8] sm:$0xff] %v2266_v40 }
 0x193   : > { %v780_v41 = vpop.f32.mrf.mxu0  ;;  %v860_v12 = vpop.f32.mrf.mxu1 }
 0x194   : > { %v2221_v18 = vpack.c.bf16 %v780_v41, %v778_v8  ;;  %v2269_v14 = vpack.c.bf16 %v860_v12, %v858_v9 }
 0x195   : > { %v782_v19 = vpop.f32.mrf.mxu0  ;;  %v862_v20 = vpop.f32.mrf.mxu1 }
 0x196   : > { %1887 = vst [vmem:[%s2960_s22 + $0x90] sm:$0xff] %v2221_v18  ;;  %1935 = vst [vmem:[%s2960_s22 + $0x210] sm:$0xff] %v2269_v14 }
 0x197   : > { %v784_v21 = vpop.f32.mrf.mxu0  ;;  %v864_v25 = vpop.f32.mrf.mxu1 }
 0x198   : > { %v2224_v24 = vpack.c.bf16 %v784_v21, %v782_v19  ;;  %v2272_v27 = vpack.c.bf16 %v864_v25, %v862_v20 }
 0x199   : > { %v788_v30 = vpop.f32.mrf.mxu0  ;;  %v868_v28 = vpop.f32.mrf.mxu1 }
 0x19a   : > { %1890 = vst [vmem:[%s2960_s22 + $0xa8] sm:$0xff] %v2224_v24  ;;  %1938 = vst [vmem:[%s2960_s22 + $0x228] sm:$0xff] %v2272_v27 }
 0x19b   : > { %v790_v47 = vpop.f32.mrf.mxu0  ;;  %v870_v48 = vpop.f32.mrf.mxu1 }
 0x19c   : > { %v2227_v29 = vpack.c.bf16 %v790_v47, %v788_v30  ;;  %v2275_v31 = vpack.c.bf16 %v870_v48, %v868_v28 }
 0x19d   : > { %v792_v37 = vpop.f32.mrf.mxu0  ;;  %v872_v38 = vpop.f32.mrf.mxu1 }
 0x19e   : > { %1893 = vst [vmem:[%s2960_s22 + $0xc0] sm:$0xff] %v2227_v29  ;;  %1941 = vst [vmem:[%s2960_s22 + $0x240] sm:$0xff] %v2275_v31 }
 0x19f   : > { %v794_v32 = vpop.f32.mrf.mxu0  ;;  %v874_v0 = vpop.f32.mrf.mxu1 }
 0x1a0   : > { %v2230_v33 = vpack.c.bf16 %v794_v32, %v792_v37  ;;  %v2278_v46 = vpack.c.bf16 %v874_v0, %v872_v38 }
 0x1a1   : > { %v798_v45 = vpop.f32.mrf.mxu0  ;;  %v878_v36 = vpop.f32.mrf.mxu1 }
 0x1a2   : > { %1896 = vst [vmem:[%s2960_s22 + $0xd8] sm:$0xff] %v2230_v33  ;;  %1944 = vst [vmem:[%s2960_s22 + $0x258] sm:$0xff] %v2278_v46 }
 0x1a3   : > { %v800_v42 = vpop.f32.mrf.mxu0  ;;  %v880_v43 = vpop.f32.mrf.mxu1 }
 0x1a4   : > { %v2233_v53 = vpack.c.bf16 %v800_v42, %v798_v45  ;;  %v2281_v54 = vpack.c.bf16 %v880_v43, %v878_v36 }
 0x1a5   : > { %v802_v15 = vpop.f32.mrf.mxu0  ;;  %v882_v26 = vpop.f32.mrf.mxu1 }
 0x1a6   : > { %1899 = vst [vmem:[%s2960_s22 + $0xf0] sm:$0xff] %v2233_v53  ;;  %1947 = vst [vmem:[%s2960_s22 + $0x270] sm:$0xff] %v2281_v54 }
 0x1a7   : > { %v804_v52 = vpop.f32.mrf.mxu0  ;;  %v884_v59 = vpop.f32.mrf.mxu1 }
 0x1a8   : > { %v2236_v50 = vpack.c.bf16 %v804_v52, %v802_v15  ;;  %v2284_v6 = vpack.c.bf16 %v884_v59, %v882_v26 }
 0x1a9   : > { %v808_v16 = vpop.f32.mrf.mxu0  ;;  %v888_v39 = vpop.f32.mrf.mxu1 }
 0x1aa   : > { %1902 = vst [vmem:[%s2960_s22 + $0x108] sm:$0xff] %v2236_v50  ;;  %1950 = vst [vmem:[%s2960_s22 + $0x288] sm:$0xff] %v2284_v6 }
 0x1ab   : > { %v810_v11 = vpop.f32.mrf.mxu0  ;;  %v890_v13 = vpop.f32.mrf.mxu1 }
 0x1ac   : > { %v2239_v1 = vpack.c.bf16 %v810_v11, %v808_v16  ;;  %v2287_v44 = vpack.c.bf16 %v890_v13, %v888_v39 }
 0x1ad   : > { %v812_v17 = vpop.f32.mrf.mxu0  ;;  %v892_v55 = vpop.f32.mrf.mxu1 }
 0x1ae   : > { %1905 = vst [vmem:[%s2960_s22 + $0x120] sm:$0xff] %v2239_v1  ;;  %1953 = vst [vmem:[%s2960_s22 + $0x2a0] sm:$0xff] %v2287_v44 }
 0x1af   : > { %v814_v2 = vpop.f32.mrf.mxu0  ;;  %v894_v49 = vpop.f32.mrf.mxu1 }
 0x1b0   : > { %v2242_v51 = vpack.c.bf16 %v814_v2, %v812_v17  ;;  %v2290_v34 = vpack.c.bf16 %v894_v49, %v892_v55 }
 0x1b1   : > { %v818_v56 = vpop.f32.mrf.mxu0  ;;  %v898_v35 = vpop.f32.mrf.mxu1 }
 0x1b2   : > { %1908 = vst [vmem:[%s2960_s22 + $0x138] sm:$0xff] %v2242_v51  ;;  %1956 = vst [vmem:[%s2960_s22 + $0x2b8] sm:$0xff] %v2290_v34 }
 0x1b3   : > { %v820_v57 = vpop.f32.mrf.mxu0  ;;  %v900_v58 = vpop.f32.mrf.mxu1 }
 0x1b4   : > { %v2245_v22 = vpack.c.bf16 %v820_v57, %v818_v56  ;;  %v2293_v60 = vpack.c.bf16 %v900_v58, %v898_v35 }
 0x1b5   : > { %v822_v61 = vpop.f32.mrf.mxu0  ;;  %v902_v23 = vpop.f32.mrf.mxu1 }
 0x1b6   : > { %1911 = vst [vmem:[%s2960_s22 + $0x150] sm:$0xff] %v2245_v22  ;;  %1959 = vst [vmem:[%s2960_s22 + $0x2d0] sm:$0xff] %v2293_v60 }
 0x1b7   : > { %v824_v63 = vpop.f32.mrf.mxu0  ;;  %v904_v3 = vpop.f32.mrf.mxu1 }
 0x1b8   : > { %v2248_v62 = vpack.c.bf16 %v824_v63, %v822_v61  ;;  %v2296_v4 = vpack.c.bf16 %v904_v3, %v902_v23 }
 0x1b9   : > { %v941_v5 = vpop.f32.mrf.mxu1  ;;  %v1134_v7 = vpop.f32.mrf.mxu0 }
 0x1ba   : > { %1914 = vst [vmem:[%s2960_s22 + $0x168] sm:$0xff] %v2248_v62  ;;  %1962 = vst [vmem:[%s2960_s22 + $0x2e8] sm:$0xff] %v2296_v4 }
 0x1bb   : > { %v943_v10 = vpop.f32.mrf.mxu1  ;;  %v1136_v40 = vpop.f32.mrf.mxu0 }
 0x1bc   : > { %v2204_v8 = vpack.c.bf16 %v943_v10, %v941_v5  ;;  %v2205_v9 = vpack.c.bf16 %v1136_v40, %v1134_v7 }
 0x1bd   : > { %v945_v41 = vpop.f32.mrf.mxu1  ;;  %v1138_v12 = vpop.f32.mrf.mxu0 }
 0x1be   : > { %1870 = vst [vmem:[%s2960_s22 + $0x8] sm:$0xff] %v2204_v8  ;;  %1871 = vst [vmem:[%s2960_s22 + $0x10] sm:$0xff] %v2205_v9 }
 0x1bf   : > { %v947_v18 = vpop.f32.mrf.mxu1  ;;  %v1140_v14 = vpop.f32.mrf.mxu0 }
 0x1c0   : > { %v2207_v19 = vpack.c.bf16 %v947_v18, %v945_v41  ;;  %v2208_v20 = vpack.c.bf16 %v1140_v14, %v1138_v12 }
 0x1c1   : > { %v951_v21 = vpop.f32.mrf.mxu1  ;;  %v1144_v25 = vpop.f32.mrf.mxu0 }
 0x1c2   : > { %1873 = vst [vmem:[%s2960_s22 + $0x20] sm:$0xff] %v2207_v19  ;;  %1874 = vst [vmem:[%s2960_s22 + $0x28] sm:$0xff] %v2208_v20 }
 0x1c3   : > { %v953_v24 = vpop.f32.mrf.mxu1  ;;  %v1146_v27 = vpop.f32.mrf.mxu0 }
 0x1c4   : > { %v2210_v30 = vpack.c.bf16 %v953_v24, %v951_v21  ;;  %v2211_v28 = vpack.c.bf16 %v1146_v27, %v1144_v25 }
 0x1c5   : > { %v955_v47 = vpop.f32.mrf.mxu1  ;;  %v1148_v48 = vpop.f32.mrf.mxu0 }
 0x1c6   : > { %1876 = vst [vmem:[%s2960_s22 + $0x38] sm:$0xff] %v2210_v30  ;;  %1877 = vst [vmem:[%s2960_s22 + $0x40] sm:$0xff] %v2211_v28 }
 0x1c7   : > { %v957_v29 = vpop.f32.mrf.mxu1  ;;  %v1150_v31 = vpop.f32.mrf.mxu0 }
 0x1c8   : > { %v2213_v37 = vpack.c.bf16 %v957_v29, %v955_v47  ;;  %v2214_v38 = vpack.c.bf16 %v1150_v31, %v1148_v48 }
 0x1c9   : > { %v961_v32 = vpop.f32.mrf.mxu1  ;;  %v1154_v0 = vpop.f32.mrf.mxu0 }
 0x1ca   : > { %1879 = vst [vmem:[%s2960_s22 + $0x50] sm:$0xff] %v2213_v37  ;;  %1880 = vst [vmem:[%s2960_s22 + $0x58] sm:$0xff] %v2214_v38 }
 0x1cb   : > { %v963_v33 = vpop.f32.mrf.mxu1  ;;  %v1156_v46 = vpop.f32.mrf.mxu0 }
 0x1cc   : > { %v2216_v45 = vpack.c.bf16 %v963_v33, %v961_v32  ;;  %v2217_v36 = vpack.c.bf16 %v1156_v46, %v1154_v0 }
 0x1cd   : > { %v965_v42 = vpop.f32.mrf.mxu1  ;;  %v1158_v43 = vpop.f32.mrf.mxu0 }
 0x1ce   : > { %1882 = vst [vmem:[%s2960_s22 + $0x68] sm:$0xff] %v2216_v45  ;;  %1883 = vst [vmem:[%s2960_s22 + $0x70] sm:$0xff] %v2217_v36 }
 0x1cf   : > { %v967_v53 = vpop.f32.mrf.mxu1  ;;  %v1160_v54 = vpop.f32.mrf.mxu0 }
 0x1d0   : > { %v2219_v15 = vpack.c.bf16 %v967_v53, %v965_v42  ;;  %v2220_v26 = vpack.c.bf16 %v1160_v54, %v1158_v43 }
 0x1d1   : > { %v971_v52 = vpop.f32.mrf.mxu1  ;;  %v1164_v59 = vpop.f32.mrf.mxu0 }
 0x1d2   : > { %1885 = vst [vmem:[%s2960_s22 + $0x80] sm:$0xff] %v2219_v15  ;;  %1886 = vst [vmem:[%s2960_s22 + $0x88] sm:$0xff] %v2220_v26 }
 0x1d3   : > { %v973_v50 = vpop.f32.mrf.mxu1  ;;  %v1166_v6 = vpop.f32.mrf.mxu0 }
 0x1d4   : > { %v2222_v16 = vpack.c.bf16 %v973_v50, %v971_v52  ;;  %v2223_v39 = vpack.c.bf16 %v1166_v6, %v1164_v59 }
 0x1d5   : > { %v975_v11 = vpop.f32.mrf.mxu1  ;;  %v1168_v13 = vpop.f32.mrf.mxu0 }
 0x1d6   : > { %1888 = vst [vmem:[%s2960_s22 + $0x98] sm:$0xff] %v2222_v16  ;;  %1889 = vst [vmem:[%s2960_s22 + $0xa0] sm:$0xff] %v2223_v39 }
 0x1d7   : > { %v977_v1 = vpop.f32.mrf.mxu1  ;;  %v1170_v44 = vpop.f32.mrf.mxu0 }
 0x1d8   : > { %v2225_v17 = vpack.c.bf16 %v977_v1, %v975_v11  ;;  %v2226_v55 = vpack.c.bf16 %v1170_v44, %v1168_v13 }
 0x1d9   : > { %v981_v2 = vpop.f32.mrf.mxu1  ;;  %v1174_v49 = vpop.f32.mrf.mxu0 }
 0x1da   : > { %1891 = vst [vmem:[%s2960_s22 + $0xb0] sm:$0xff] %v2225_v17  ;;  %1892 = vst [vmem:[%s2960_s22 + $0xb8] sm:$0xff] %v2226_v55 }
 0x1db   : > { %v983_v51 = vpop.f32.mrf.mxu1  ;;  %v1176_v34 = vpop.f32.mrf.mxu0 }
 0x1dc   : > { %v2228_v56 = vpack.c.bf16 %v983_v51, %v981_v2  ;;  %v2229_v35 = vpack.c.bf16 %v1176_v34, %v1174_v49 }
 0x1dd   : > { %v985_v57 = vpop.f32.mrf.mxu1  ;;  %v1178_v58 = vpop.f32.mrf.mxu0 }
 0x1de   : > { %1894 = vst [vmem:[%s2960_s22 + $0xc8] sm:$0xff] %v2228_v56  ;;  %1895 = vst [vmem:[%s2960_s22 + $0xd0] sm:$0xff] %v2229_v35 }
 0x1df   : > { %v987_v22 = vpop.f32.mrf.mxu1  ;;  %v1180_v60 = vpop.f32.mrf.mxu0 }
 0x1e0   : > { %v2231_v61 = vpack.c.bf16 %v987_v22, %v985_v57  ;;  %v2232_v23 = vpack.c.bf16 %v1180_v60, %v1178_v58 }
 0x1e1   : > { %v991_v63 = vpop.f32.mrf.mxu1  ;;  %v1184_v3 = vpop.f32.mrf.mxu0 }
 0x1e2   : > { %1897 = vst [vmem:[%s2960_s22 + $0xe0] sm:$0xff] %v2231_v61  ;;  %1898 = vst [vmem:[%s2960_s22 + $0xe8] sm:$0xff] %v2232_v23 }
 0x1e3   : > { %v993_v62 = vpop.f32.mrf.mxu1  ;;  %v1186_v4 = vpop.f32.mrf.mxu0 }
 0x1e4   : > { %v2234_v5 = vpack.c.bf16 %v993_v62, %v991_v63  ;;  %v2235_v7 = vpack.c.bf16 %v1186_v4, %v1184_v3 }
 0x1e5   : > { %v995_v10 = vpop.f32.mrf.mxu1  ;;  %v1188_v40 = vpop.f32.mrf.mxu0 }
 0x1e6   : > { %1900 = vst [vmem:[%s2960_s22 + $0xf8] sm:$0xff] %v2234_v5  ;;  %1901 = vst [vmem:[%s2960_s22 + $0x100] sm:$0xff] %v2235_v7 }
 0x1e7   : > { %v997_v8 = vpop.f32.mrf.mxu1  ;;  %v1190_v9 = vpop.f32.mrf.mxu0 }
 0x1e8   : > { %v2237_v41 = vpack.c.bf16 %v997_v8, %v995_v10  ;;  %v2238_v12 = vpack.c.bf16 %v1190_v9, %v1188_v40 }
 0x1e9   : > { %v1001_v18 = vpop.f32.mrf.mxu1  ;;  %v1194_v14 = vpop.f32.mrf.mxu0 }
 0x1ea   : > { %1903 = vst [vmem:[%s2960_s22 + $0x110] sm:$0xff] %v2237_v41  ;;  %1904 = vst [vmem:[%s2960_s22 + $0x118] sm:$0xff] %v2238_v12 }
 0x1eb   : > { %v1003_v19 = vpop.f32.mrf.mxu1  ;;  %v1196_v20 = vpop.f32.mrf.mxu0 }
 0x1ec   : > { %v2240_v21 = vpack.c.bf16 %v1003_v19, %v1001_v18  ;;  %v2241_v25 = vpack.c.bf16 %v1196_v20, %v1194_v14 }
 0x1ed   : > { %v1005_v24 = vpop.f32.mrf.mxu1  ;;  %v1198_v27 = vpop.f32.mrf.mxu0 }
 0x1ee   : > { %1906 = vst [vmem:[%s2960_s22 + $0x128] sm:$0xff] %v2240_v21  ;;  %1907 = vst [vmem:[%s2960_s22 + $0x130] sm:$0xff] %v2241_v25 }
 0x1ef   : > { %v1007_v30 = vpop.f32.mrf.mxu1  ;;  %v1200_v28 = vpop.f32.mrf.mxu0 }
 0x1f0   : > { %v2243_v47 = vpack.c.bf16 %v1007_v30, %v1005_v24  ;;  %v2244_v48 = vpack.c.bf16 %v1200_v28, %v1198_v27 }
 0x1f1   : > { %v1011_v29 = vpop.f32.mrf.mxu1  ;;  %v1204_v31 = vpop.f32.mrf.mxu0 }
 0x1f2   : > { %1909 = vst [vmem:[%s2960_s22 + $0x140] sm:$0xff] %v2243_v47  ;;  %1910 = vst [vmem:[%s2960_s22 + $0x148] sm:$0xff] %v2244_v48 }
 0x1f3   : > { %v1013_v37 = vpop.f32.mrf.mxu1  ;;  %v1206_v38 = vpop.f32.mrf.mxu0 }
 0x1f4   : > { %v2246_v32 = vpack.c.bf16 %v1013_v37, %v1011_v29  ;;  %v2247_v0 = vpack.c.bf16 %v1206_v38, %v1204_v31 }
 0x1f5   : > { %v1015_v33 = vpop.f32.mrf.mxu1  ;;  %v1208_v46 = vpop.f32.mrf.mxu0 }
 0x1f6   : > { %1912 = vst [vmem:[%s2960_s22 + $0x158] sm:$0xff] %v2246_v32  ;;  %1913 = vst [vmem:[%s2960_s22 + $0x160] sm:$0xff] %v2247_v0 }
 0x1f7   : > { %v1017_v45 = vpop.f32.mrf.mxu1  ;;  %v1210_v36 = vpop.f32.mrf.mxu0 }
 0x1f8   : > { %v2249_v42 = vpack.c.bf16 %v1017_v45, %v1015_v33  ;;  %v2250_v43 = vpack.c.bf16 %v1210_v36, %v1208_v46 }
 0x1f9   : > { %v1021_v53 = vpop.f32.mrf.mxu1  ;;  %v1214_v54 = vpop.f32.mrf.mxu0 }
 0x1fa   : > { %1915 = vst [vmem:[%s2960_s22 + $0x170] sm:$0xff] %v2249_v42  ;;  %1916 = vst [vmem:[%s2960_s22 + $0x178] sm:$0xff] %v2250_v43 }
 0x1fb   : > { %v1023_v15 = vpop.f32.mrf.mxu1  ;;  %v1216_v26 = vpop.f32.mrf.mxu0 }
 0x1fc   : > { %v2252_v52 = vpack.c.bf16 %v1023_v15, %v1021_v53  ;;  %v2253_v59 = vpack.c.bf16 %v1216_v26, %v1214_v54 }
 0x1fd   : > { %v1025_v50 = vpop.f32.mrf.mxu1  ;;  %v1218_v6 = vpop.f32.mrf.mxu0 }
 0x1fe   : > { %1918 = vst [vmem:[%s2960_s22 + $0x188] sm:$0xff] %v2252_v52  ;;  %1919 = vst [vmem:[%s2960_s22 + $0x190] sm:$0xff] %v2253_v59 }
 0x1ff   : > { %v1027_v16 = vpop.f32.mrf.mxu1  ;;  %v1220_v39 = vpop.f32.mrf.mxu0 }
 0x200   : > { %v2255_v11 = vpack.c.bf16 %v1027_v16, %v1025_v50  ;;  %v2256_v13 = vpack.c.bf16 %v1220_v39, %v1218_v6 }
 0x201   : > { %v1031_v1 = vpop.f32.mrf.mxu1  ;;  %v1224_v44 = vpop.f32.mrf.mxu0 }
 0x202   : > { %1921 = vst [vmem:[%s2960_s22 + $0x1a0] sm:$0xff] %v2255_v11  ;;  %1922 = vst [vmem:[%s2960_s22 + $0x1a8] sm:$0xff] %v2256_v13 }
 0x203   : > { %v1033_v17 = vpop.f32.mrf.mxu1  ;;  %v1226_v55 = vpop.f32.mrf.mxu0 }
 0x204   : > { %v2258_v2 = vpack.c.bf16 %v1033_v17, %v1031_v1  ;;  %v2259_v49 = vpack.c.bf16 %v1226_v55, %v1224_v44 }
 0x205   : > { %v1035_v51 = vpop.f32.mrf.mxu1  ;;  %v1228_v34 = vpop.f32.mrf.mxu0 }
 0x206   : > { %1924 = vst [vmem:[%s2960_s22 + $0x1b8] sm:$0xff] %v2258_v2  ;;  %1925 = vst [vmem:[%s2960_s22 + $0x1c0] sm:$0xff] %v2259_v49 }
 0x207   : > { %v1037_v56 = vpop.f32.mrf.mxu1  ;;  %v1230_v35 = vpop.f32.mrf.mxu0 }
 0x208   : > { %v2261_v57 = vpack.c.bf16 %v1037_v56, %v1035_v51  ;;  %v2262_v58 = vpack.c.bf16 %v1230_v35, %v1228_v34 }
 0x209   : > { %v1041_v22 = vpop.f32.mrf.mxu1  ;;  %v1234_v60 = vpop.f32.mrf.mxu0 }
 0x20a   : > { %1927 = vst [vmem:[%s2960_s22 + $0x1d0] sm:$0xff] %v2261_v57  ;;  %1928 = vst [vmem:[%s2960_s22 + $0x1d8] sm:$0xff] %v2262_v58 }
 0x20b   : > { %v1043_v61 = vpop.f32.mrf.mxu1  ;;  %v1236_v23 = vpop.f32.mrf.mxu0 }
 0x20c   : > { %v2264_v63 = vpack.c.bf16 %v1043_v61, %v1041_v22  ;;  %v2265_v3 = vpack.c.bf16 %v1236_v23, %v1234_v60 }
 0x20d   : > { %v1045_v62 = vpop.f32.mrf.mxu1  ;;  %v1238_v4 = vpop.f32.mrf.mxu0 }
 0x20e   : > { %1930 = vst [vmem:[%s2960_s22 + $0x1e8] sm:$0xff] %v2264_v63  ;;  %1931 = vst [vmem:[%s2960_s22 + $0x1f0] sm:$0xff] %v2265_v3 }
 0x20f   : > { %v1047_v5 = vpop.f32.mrf.mxu1  ;;  %v1240_v7 = vpop.f32.mrf.mxu0 }
 0x210   : > { %v2267_v10 = vpack.c.bf16 %v1047_v5, %v1045_v62  ;;  %v2268_v40 = vpack.c.bf16 %v1240_v7, %v1238_v4 }
 0x211   : > { %v1051_v8 = vpop.f32.mrf.mxu1  ;;  %v1244_v9 = vpop.f32.mrf.mxu0 }
 0x212   : > { %1933 = vst [vmem:[%s2960_s22 + $0x200] sm:$0xff] %v2267_v10  ;;  %1934 = vst [vmem:[%s2960_s22 + $0x208] sm:$0xff] %v2268_v40 }
 0x213   : > { %v1053_v41 = vpop.f32.mrf.mxu1  ;;  %v1246_v12 = vpop.f32.mrf.mxu0 }
 0x214   : > { %v2270_v18 = vpack.c.bf16 %v1053_v41, %v1051_v8  ;;  %v2271_v14 = vpack.c.bf16 %v1246_v12, %v1244_v9 }
 0x215   : > { %v1055_v19 = vpop.f32.mrf.mxu1  ;;  %v1248_v20 = vpop.f32.mrf.mxu0 }
 0x216   : > { %1936 = vst [vmem:[%s2960_s22 + $0x218] sm:$0xff] %v2270_v18  ;;  %1937 = vst [vmem:[%s2960_s22 + $0x220] sm:$0xff] %v2271_v14 }
 0x217   : > { %v1057_v21 = vpop.f32.mrf.mxu1  ;;  %v1250_v25 = vpop.f32.mrf.mxu0 }
 0x218   : > { %v2273_v24 = vpack.c.bf16 %v1057_v21, %v1055_v19  ;;  %v2274_v27 = vpack.c.bf16 %v1250_v25, %v1248_v20 }
 0x219   : > { %v1061_v30 = vpop.f32.mrf.mxu1  ;;  %v1254_v28 = vpop.f32.mrf.mxu0 }
 0x21a   : > { %1939 = vst [vmem:[%s2960_s22 + $0x230] sm:$0xff] %v2273_v24  ;;  %1940 = vst [vmem:[%s2960_s22 + $0x238] sm:$0xff] %v2274_v27 }
 0x21b   : > { %v1063_v47 = vpop.f32.mrf.mxu1  ;;  %v1256_v48 = vpop.f32.mrf.mxu0 }
 0x21c   : > { %v2276_v29 = vpack.c.bf16 %v1063_v47, %v1061_v30  ;;  %v2277_v31 = vpack.c.bf16 %v1256_v48, %v1254_v28 }
 0x21d   : > { %v1065_v37 = vpop.f32.mrf.mxu1  ;;  %v1258_v38 = vpop.f32.mrf.mxu0 }
 0x21e   : > { %1942 = vst [vmem:[%s2960_s22 + $0x248] sm:$0xff] %v2276_v29  ;;  %1943 = vst [vmem:[%s2960_s22 + $0x250] sm:$0xff] %v2277_v31 }
 0x21f   : > { %v1067_v32 = vpop.f32.mrf.mxu1  ;;  %v1260_v0 = vpop.f32.mrf.mxu0 }
 0x220   : > { %v2279_v33 = vpack.c.bf16 %v1067_v32, %v1065_v37  ;;  %v2280_v46 = vpack.c.bf16 %v1260_v0, %v1258_v38 }
 0x221   : > { %v1071_v45 = vpop.f32.mrf.mxu1  ;;  %v1264_v36 = vpop.f32.mrf.mxu0 }
 0x222   : > { %1945 = vst [vmem:[%s2960_s22 + $0x260] sm:$0xff] %v2279_v33  ;;  %1946 = vst [vmem:[%s2960_s22 + $0x268] sm:$0xff] %v2280_v46 }
 0x223   : > { %v1073_v42 = vpop.f32.mrf.mxu1  ;;  %v1266_v43 = vpop.f32.mrf.mxu0 }
 0x224   : > { %v2282_v53 = vpack.c.bf16 %v1073_v42, %v1071_v45  ;;  %v2283_v54 = vpack.c.bf16 %v1266_v43, %v1264_v36 }
 0x225   : > { %v1075_v15 = vpop.f32.mrf.mxu1  ;;  %v1268_v26 = vpop.f32.mrf.mxu0 }
 0x226   : > { %1948 = vst [vmem:[%s2960_s22 + $0x278] sm:$0xff] %v2282_v53  ;;  %1949 = vst [vmem:[%s2960_s22 + $0x280] sm:$0xff] %v2283_v54 }
 0x227   : > { %v1077_v52 = vpop.f32.mrf.mxu1  ;;  %v1270_v59 = vpop.f32.mrf.mxu0 }
 0x228   : > { %v2285_v50 = vpack.c.bf16 %v1077_v52, %v1075_v15  ;;  %v2286_v6 = vpack.c.bf16 %v1270_v59, %v1268_v26 }
 0x229   : > { %v1081_v16 = vpop.f32.mrf.mxu1  ;;  %v1274_v39 = vpop.f32.mrf.mxu0 }
 0x22a   : > { %1951 = vst [vmem:[%s2960_s22 + $0x290] sm:$0xff] %v2285_v50  ;;  %1952 = vst [vmem:[%s2960_s22 + $0x298] sm:$0xff] %v2286_v6 }
 0x22b   : > { %v1083_v11 = vpop.f32.mrf.mxu1  ;;  %v1276_v13 = vpop.f32.mrf.mxu0 }
 0x22c   : > { %v2288_v1 = vpack.c.bf16 %v1083_v11, %v1081_v16  ;;  %v2289_v44 = vpack.c.bf16 %v1276_v13, %v1274_v39 }
 0x22d   : > { %v1085_v17 = vpop.f32.mrf.mxu1  ;;  %v1278_v55 = vpop.f32.mrf.mxu0 }
 0x22e   : > { %1954 = vst [vmem:[%s2960_s22 + $0x2a8] sm:$0xff] %v2288_v1  ;;  %1955 = vst [vmem:[%s2960_s22 + $0x2b0] sm:$0xff] %v2289_v44 }
 0x22f   : > { %v1087_v2 = vpop.f32.mrf.mxu1  ;;  %v1280_v49 = vpop.f32.mrf.mxu0 }
 0x230   : > { %v2291_v51 = vpack.c.bf16 %v1087_v2, %v1085_v17  ;;  %v2292_v34 = vpack.c.bf16 %v1280_v49, %v1278_v55 }
 0x231   : > { %v1091_v56 = vpop.f32.mrf.mxu1  ;;  %v1284_v35 = vpop.f32.mrf.mxu0 }
 0x232   : > { %1957 = vst [vmem:[%s2960_s22 + $0x2c0] sm:$0xff] %v2291_v51  ;;  %1958 = vst [vmem:[%s2960_s22 + $0x2c8] sm:$0xff] %v2292_v34 }
 0x233   : > { %v1093_v57 = vpop.f32.mrf.mxu1  ;;  %v1286_v58 = vpop.f32.mrf.mxu0 }
 0x234   : > { %v2294_v22 = vpack.c.bf16 %v1093_v57, %v1091_v56  ;;  %v2295_v60 = vpack.c.bf16 %v1286_v58, %v1284_v35 }
 0x235   : > { %v1095_v61 = vpop.f32.mrf.mxu1  ;;  %v1288_v23 = vpop.f32.mrf.mxu0 }
 0x236   : > { %1960 = vst [vmem:[%s2960_s22 + $0x2d8] sm:$0xff] %v2294_v22  ;;  %1961 = vst [vmem:[%s2960_s22 + $0x2e0] sm:$0xff] %v2295_v60 }
 0x237   : > { %v1097_v63 = vpop.f32.mrf.mxu1  ;;  %v1290_v3 = vpop.f32.mrf.mxu0 }
 0x238   : > { %v2297_v62 = vpack.c.bf16 %v1097_v63, %v1095_v61  ;;  %v2298_v4 = vpack.c.bf16 %v1290_v3, %v1288_v23 }
 0x23a   : > { %1963 = vst [vmem:[%s2960_s22 + $0x2f0] sm:$0xff] %v2297_v62  ;;  %1964 = vst [vmem:[%s2960_s22 + $0x2f8] sm:$0xff] %v2298_v4 }
 0x23b PF: > { %s13_s12 = sadd.s32 1, %s2423_s12  }
 0x23c   : > { %p10_p4 = scmp.ge.s32.totalorder %s13_s12, 4  }
 0x23e   :  { %12 = sbr.rel (!%p10_p4) target bundleno = 1 (0x1), region = 62 }

// kernel: attention_forward.4
= control target key start
LH: loop header
LB: loop body
LE: loop exit
PB: predicated region body
PF: predicated region fallthrough
CT: control target
= control target key end

     0   :  { %s6344_s0 = inlined_call_operand.vmem [shape: bf16[2,256,768], index: 0, kind: input, shape index: {}, may-alias: {0,1,2}]   ;;  %s6345_s1 = inlined_call_operand.vmem [shape: bf16[2,256,768], index: 1, kind: input, shape index: {}, may-alias: {0,1,2}]   ;;  %s6346_s2 = inlined_call_operand.vmem [shape: bf16[2,256,768], index: 2, kind: input, shape index: {}, may-alias: {0,1,2}]   ;;  %s6347_s3 = inlined_call_operand.vmem [shape: bf16[2,256,256], index: 3, kind: output, shape index: {}]  }
   0x1   :  { %6416 = sst [smem:[#allocation65_spill]] %s6347_s3 }
   0x2   :  { %s4518_s12 = smov 0   ;;  %s4520_s13 = smov 0  }
   0x3   :  { %s4522_s14 = smov 0   ;;  %s4524_s15 = smov 0  }
   0x4   :  { %s4526_s16 = smov 0   ;;  %s4528_s17 = smov 0  }
   0x5   :  { %s4530_s18 = smov 0   ;;  %s4532_s19 = smov 0  }
   0x6   :  { %s4534_s20 = smov 0   ;;  %s4536_s21 = smov 0  }
   0x7   :  { %s4538_s22 = smov 0  }
   0x8 LB: > { %s35_s24 = sadd.s32 1, %s4485_s20  ;;  %s39_s25 = sadd.s32 1, %s4489_s21  ;;  %s4493_s22 = sphi %s4538_s22, %s13_s22   ;;  %s4489_s21 = sphi %s4536_s21, %s6641_s21   ;;  %s4485_s20 = sphi %s4534_s20, %s6640_s20   ;;  %s4481_s19 = sphi %s4532_s19, %s6639_s19   ;;  %s4477_s18 = sphi %s4530_s18, %s6638_s18   ;;  %s4473_s17 = sphi %s4528_s17, %s6637_s17   ;;  %s4469_s16 = sphi %s4526_s16, %s6636_s16   ;;  %s4465_s15 = sphi %s4524_s15, %s6635_s15   ;;  %s4461_s14 = sphi %s4522_s14, %s6634_s14   ;;  %s4457_s13 = sphi %s4520_s13, %s6633_s13   ;;  %s4453_s12 = sphi %s4518_s12, %s6632_s12  }
   0x9   : > { %p37_p0 = scmp.ge.s32.totalorder %s35_s24, 2  ;;  %s50_s26 = sadd.s32 1, %s4473_s17 }
   0xa   : > { %p57_p1 = scmp.ne.s32.totalorder %s4473_s17, %s4469_s16  ;;  %p58_p2 = scmp.eq.s32.totalorder %s4493_s22, 0 }
   0xb   : > { %s6643_s24 = smov (%p37_p0, %s35_s24), 0  ;;  %s6645_s25 = smov (!%p37_p0, %s39_s25), %s4489_s21 }
   0xc   : > { %s46_s27 = ssub.s32 %s4485_s20, %s6643_s24  ;;  %p41_p3 = scmp.ge.s32.totalorder %s6645_s25, 2 }
   0xd   : > { %s73_s28 = sadd.s32 2, %s4485_s20  ;;  %p4591_p4 = por %p58_p2, %p57_p1 }
   0xe   : > { %s74_s30 = sadd.s32 2, %s6643_s24  ;;  %s6647_s25 = smov (%p41_p3, %s6645_s25), 0 }
   0xf   : > { %6418 = sst [smem:[#allocation9_spill]] %s6647_s25  ;;  %s78_s4 = ssub.s32 %s73_s28, %s74_s30 }
  0x10   : > { %s82_s5 = sadd.s32 1, %s4465_s15  ;;  %s43_s6 = ssub.s32 %s4489_s21, %s6647_s25 }
  0x11   : > { %p89_p5 = scmp.ne.s32.totalorder %s4465_s15, %s4461_s14  ;;  %s47_s7 = sor.u32 %s46_s27, %s43_s6 }
  0x12   : > { %s79_s8 = sor.u32 %s78_s4, %s43_s6  ;;  %p48_p6 = scmp.eq.s32.totalorder %s47_s7, 0 }
  0x13   : > { %p80_p7 = scmp.eq.s32.totalorder %s79_s8, 0  ;;  %p4605_p8 = por %p89_p5, %p58_p2 }
  0x14   : > { %s105_s10 = sadd.s32 4, %s4485_s20  ;;  %s106_s30 = sadd.s32 4, %s6643_s24 }
  0x15   : > { %s4611_s11 = scalar_select %p48_p6, %s4473_s17, %s50_s26  }
  0x16   : > { %s4614_s28 = scalar_select %p80_p7, %s4465_s15, %s82_s5  }
  0x17   : > { %s114_s23 = sadd.s32 1, %s4457_s13  ;;  %s110_s25 = ssub.s32 %s105_s10, %s106_s30 }
  0x18   : > { %p121_p9 = scmp.ne.s32.totalorder %s4457_s13, %s4453_s12  ;;  %s111_s27 = sor.u32 %s110_s25, %s43_s6 }
  0x19   : > { %s6420_s3 = sadd.s32 4294967295, %s4493_s22   ;;  %p112_p11 = scmp.eq.s32.totalorder %s111_s27, 0 }
  0x1a   : > { %p155_p10 = scmp.eq.s32.totalorder %s6420_s3, 3  ;;  %p4624_p12 = por %p121_p9, %p58_p2 }
  0x1b   : > { %s4636_s26 = scalar_select %p112_p11, %s4457_s13, %s114_s23  }
  0x1c   : > { %p4631_p13 = por %p155_p10, %p57_p1  ;;  %p3561_p0 = scmp.ge.s32.totalorder %s4493_s22, 4 }
  0x1e   : > { %177 = sbr.rel (%p3561_p0) target bundleno = 119 (0x77), region = 16 }
  0x23   : > { %180 = sbr.rel (!%p4591_p4) target bundleno = 63 (0x3f), region = 20  ;;  %s182_s3 = sand.u32 (%p4591_p4), 1, %s4473_s17  }
  0x24   : > { %s4009_s25 = smul.u32 (%p4591_p4), 192, %s4489_s21  ;;  %s3562_s5 = sshll.u32 (%p4591_p4), %s182_s3, 7 }
  0x25   : > { %s4652_s23 = scalar_lea.vmem (%p4591_p4), [#allocation5], %s3562_s5 }
  0x26   : > { %s189_s6 = sadd.s32 (%p4591_p4), %s4485_s20, %s4009_s25 }
  0x27   : > { %s3563_s8 = sshll.u32 (%p4591_p4), %s189_s6, 2 }
  0x28   : > { %s4647_s27 = scalar_lea.vmem %s6344_s0, %s3563_s8 }
  0x29   : > { %v208_v0 = vld [vmem:[%s4647_s27] sm:$0xf]  ;;  %v210_v1 = vld [vmem:[%s4647_s27 + $0x18] sm:$0xf]  ;;  %v212_v2 = vld [vmem:[%s4647_s27 + $0x30] sm:$0xf] }
  0x2a   : > { %209 = vst [vmem:[%s4652_s23] sm:$0xf] %v208_v0  ;;  %211 = vst [vmem:[%s4652_s23 + $0x4] sm:$0xf] %v210_v1  ;;  %v214_v3 = vld [vmem:[%s4647_s27 + $0x48] sm:$0xf] }
  0x2b   : > { %213 = vst [vmem:[%s4652_s23 + $0x8] sm:$0xf] %v212_v2  ;;  %v216_v4 = vld [vmem:[%s4647_s27 + $0x60] sm:$0xf]  ;;  %v218_v5 = vld [vmem:[%s4647_s27 + $0x78] sm:$0xf] }
  0x2c   : > { %215 = vst [vmem:[%s4652_s23 + $0xc] sm:$0xf] %v214_v3  ;;  %217 = vst [vmem:[%s4652_s23 + $0x10] sm:$0xf] %v216_v4  ;;  %v220_v6 = vld [vmem:[%s4647_s27 + $0x90] sm:$0xf] }
  0x2d   : > { %219 = vst [vmem:[%s4652_s23 + $0x14] sm:$0xf] %v218_v5  ;;  %v222_v7 = vld [vmem:[%s4647_s27 + $0xa8] sm:$0xf]  ;;  %v224_v8 = vld [vmem:[%s4647_s27 + $0xc0] sm:$0xf] }
  0x2e   : > { %221 = vst [vmem:[%s4652_s23 + $0x18] sm:$0xf] %v220_v6  ;;  %223 = vst [vmem:[%s4652_s23 + $0x1c] sm:$0xf] %v222_v7  ;;  %v226_v9 = vld [vmem:[%s4647_s27 + $0xd8] sm:$0xf] }
  0x2f   : > { %225 = vst [vmem:[%s4652_s23 + $0x20] sm:$0xf] %v224_v8  ;;  %v228_v10 = vld [vmem:[%s4647_s27 + $0xf0] sm:$0xf]  ;;  %v230_v11 = vld [vmem:[%s4647_s27 + $0x108] sm:$0xf] }
  0x30   : > { %227 = vst [vmem:[%s4652_s23 + $0x24] sm:$0xf] %v226_v9  ;;  %229 = vst [vmem:[%s4652_s23 + $0x28] sm:$0xf] %v228_v10  ;;  %v232_v12 = vld [vmem:[%s4647_s27 + $0x120] sm:$0xf] }
  0x31   : > { %231 = vst [vmem:[%s4652_s23 + $0x2c] sm:$0xf] %v230_v11  ;;  %v234_v13 = vld [vmem:[%s4647_s27 + $0x138] sm:$0xf]  ;;  %v236_v14 = vld [vmem:[%s4647_s27 + $0x150] sm:$0xf] }
  0x32   : > { %233 = vst [vmem:[%s4652_s23 + $0x30] sm:$0xf] %v232_v12  ;;  %235 = vst [vmem:[%s4652_s23 + $0x34] sm:$0xf] %v234_v13  ;;  %v238_v15 = vld [vmem:[%s4647_s27 + $0x168] sm:$0xf] }
  0x33   : > { %237 = vst [vmem:[%s4652_s23 + $0x38] sm:$0xf] %v236_v14  ;;  %v240_v16 = vld [vmem:[%s4647_s27 + $0x180] sm:$0xf]  ;;  %v242_v17 = vld [vmem:[%s4647_s27 + $0x198] sm:$0xf] }
  0x34   : > { %239 = vst [vmem:[%s4652_s23 + $0x3c] sm:$0xf] %v238_v15  ;;  %241 = vst [vmem:[%s4652_s23 + $0x40] sm:$0xf] %v240_v16  ;;  %v244_v18 = vld [vmem:[%s4647_s27 + $0x1b0] sm:$0xf] }
  0x35   : > { %243 = vst [vmem:[%s4652_s23 + $0x44] sm:$0xf] %v242_v17  ;;  %v246_v19 = vld [vmem:[%s4647_s27 + $0x1c8] sm:$0xf]  ;;  %v248_v20 = vld [vmem:[%s4647_s27 + $0x1e0] sm:$0xf] }
  0x36   : > { %245 = vst [vmem:[%s4652_s23 + $0x48] sm:$0xf] %v244_v18  ;;  %247 = vst [vmem:[%s4652_s23 + $0x4c] sm:$0xf] %v246_v19  ;;  %v250_v21 = vld [vmem:[%s4647_s27 + $0x1f8] sm:$0xf] }
  0x37   : > { %249 = vst [vmem:[%s4652_s23 + $0x50] sm:$0xf] %v248_v20  ;;  %v252_v22 = vld [vmem:[%s4647_s27 + $0x210] sm:$0xf]  ;;  %v254_v23 = vld [vmem:[%s4647_s27 + $0x228] sm:$0xf] }
  0x38   : > { %251 = vst [vmem:[%s4652_s23 + $0x54] sm:$0xf] %v250_v21  ;;  %253 = vst [vmem:[%s4652_s23 + $0x58] sm:$0xf] %v252_v22  ;;  %v256_v24 = vld [vmem:[%s4647_s27 + $0x240] sm:$0xf] }
  0x39   : > { %255 = vst [vmem:[%s4652_s23 + $0x5c] sm:$0xf] %v254_v23  ;;  %v258_v25 = vld [vmem:[%s4647_s27 + $0x258] sm:$0xf]  ;;  %v260_v26 = vld [vmem:[%s4647_s27 + $0x270] sm:$0xf] }
  0x3a   : > { %257 = vst [vmem:[%s4652_s23 + $0x60] sm:$0xf] %v256_v24  ;;  %259 = vst [vmem:[%s4652_s23 + $0x64] sm:$0xf] %v258_v25  ;;  %v262_v27 = vld [vmem:[%s4647_s27 + $0x288] sm:$0xf] }
  0x3b   : > { %261 = vst [vmem:[%s4652_s23 + $0x68] sm:$0xf] %v260_v26  ;;  %v264_v28 = vld [vmem:[%s4647_s27 + $0x2a0] sm:$0xf]  ;;  %v266_v29 = vld [vmem:[%s4647_s27 + $0x2b8] sm:$0xf] }
  0x3c   : > { %263 = vst [vmem:[%s4652_s23 + $0x6c] sm:$0xf] %v262_v27  ;;  %265 = vst [vmem:[%s4652_s23 + $0x70] sm:$0xf] %v264_v28  ;;  %v268_v30 = vld [vmem:[%s4647_s27 + $0x2d0] sm:$0xf] }
  0x3d   : > { %267 = vst [vmem:[%s4652_s23 + $0x74] sm:$0xf] %v266_v29  ;;  %v270_v31 = vld [vmem:[%s4647_s27 + $0x2e8] sm:$0xf]  ;;  %269 = vst [vmem:[%s4652_s23 + $0x78] sm:$0xf] %v268_v30 }
  0x3e   : > { %271 = vst [vmem:[%s4652_s23 + $0x7c] sm:$0xf] %v270_v31 }
  0x3f PF: > { %359 = sbr.rel (!%p4605_p8) target bundleno = 91 (0x5b), region = 61  ;;  %s361_s29 = sand.u32 (%p4605_p8), 1, %s4465_s15  }
  0x40   : > { %s3454_s3 = smul.u32 (%p4605_p8), 192, %s4489_s21  ;;  %s3564_s25 = sshll.u32 (%p4605_p8), %s361_s29, 7 }
  0x41   : > { %s4728_s9 = scalar_lea.vmem (%p4605_p8), [#allocation6], %s3564_s25 }
  0x42   : > { %s3455_s5 = sadd.s32 (%p4605_p8), %s4485_s20, %s3454_s3 }
  0x43   : > { %s3565_s6 = sshll.u32 (%p4605_p8), %s3455_s5, 2 }
  0x44   : > { %s4723_s30 = scalar_lea.vmem %s6345_s1, %s3565_s6 }
  0x45   : > { %v3566_v32 = vld [vmem:[%s4723_s30 + $0x8] sm:$0xf]  ;;  %v3567_v33 = vld [vmem:[%s4723_s30 + $0x20] sm:$0xf]  ;;  %v3568_v34 = vld [vmem:[%s4723_s30 + $0x38] sm:$0xf] }
  0x46   : > { %389 = vst [vmem:[%s4728_s9] sm:$0xf] %v3566_v32  ;;  %391 = vst [vmem:[%s4728_s9 + $0x4] sm:$0xf] %v3567_v33  ;;  %v3569_v35 = vld [vmem:[%s4723_s30 + $0x50] sm:$0xf] }
  0x47   : > { %393 = vst [vmem:[%s4728_s9 + $0x8] sm:$0xf] %v3568_v34  ;;  %v3570_v36 = vld [vmem:[%s4723_s30 + $0x68] sm:$0xf]  ;;  %v3571_v37 = vld [vmem:[%s4723_s30 + $0x80] sm:$0xf] }
  0x48   : > { %395 = vst [vmem:[%s4728_s9 + $0xc] sm:$0xf] %v3569_v35  ;;  %397 = vst [vmem:[%s4728_s9 + $0x10] sm:$0xf] %v3570_v36  ;;  %v3572_v38 = vld [vmem:[%s4723_s30 + $0x98] sm:$0xf] }
  0x49   : > { %399 = vst [vmem:[%s4728_s9 + $0x14] sm:$0xf] %v3571_v37  ;;  %v3573_v39 = vld [vmem:[%s4723_s30 + $0xb0] sm:$0xf]  ;;  %v3574_v40 = vld [vmem:[%s4723_s30 + $0xc8] sm:$0xf] }
  0x4a   : > { %401 = vst [vmem:[%s4728_s9 + $0x18] sm:$0xf] %v3572_v38  ;;  %403 = vst [vmem:[%s4728_s9 + $0x1c] sm:$0xf] %v3573_v39  ;;  %v3575_v41 = vld [vmem:[%s4723_s30 + $0xe0] sm:$0xf] }
  0x4b   : > { %405 = vst [vmem:[%s4728_s9 + $0x20] sm:$0xf] %v3574_v40  ;;  %v3576_v42 = vld [vmem:[%s4723_s30 + $0xf8] sm:$0xf]  ;;  %v3577_v43 = vld [vmem:[%s4723_s30 + $0x110] sm:$0xf] }
  0x4c   : > { %407 = vst [vmem:[%s4728_s9 + $0x24] sm:$0xf] %v3575_v41  ;;  %409 = vst [vmem:[%s4728_s9 + $0x28] sm:$0xf] %v3576_v42  ;;  %v3578_v44 = vld [vmem:[%s4723_s30 + $0x128] sm:$0xf] }
  0x4d   : > { %411 = vst [vmem:[%s4728_s9 + $0x2c] sm:$0xf] %v3577_v43  ;;  %v3579_v45 = vld [vmem:[%s4723_s30 + $0x140] sm:$0xf]  ;;  %v3580_v46 = vld [vmem:[%s4723_s30 + $0x158] sm:$0xf] }
  0x4e   : > { %413 = vst [vmem:[%s4728_s9 + $0x30] sm:$0xf] %v3578_v44  ;;  %415 = vst [vmem:[%s4728_s9 + $0x34] sm:$0xf] %v3579_v45  ;;  %v3581_v47 = vld [vmem:[%s4723_s30 + $0x170] sm:$0xf] }
  0x4f   : > { %417 = vst [vmem:[%s4728_s9 + $0x38] sm:$0xf] %v3580_v46  ;;  %v3582_v48 = vld [vmem:[%s4723_s30 + $0x188] sm:$0xf]  ;;  %v3583_v49 = vld [vmem:[%s4723_s30 + $0x1a0] sm:$0xf] }
  0x50   : > { %419 = vst [vmem:[%s4728_s9 + $0x3c] sm:$0xf] %v3581_v47  ;;  %421 = vst [vmem:[%s4728_s9 + $0x40] sm:$0xf] %v3582_v48  ;;  %v3584_v50 = vld [vmem:[%s4723_s30 + $0x1b8] sm:$0xf] }
  0x51   : > { %423 = vst [vmem:[%s4728_s9 + $0x44] sm:$0xf] %v3583_v49  ;;  %v3585_v51 = vld [vmem:[%s4723_s30 + $0x1d0] sm:$0xf]  ;;  %v3586_v52 = vld [vmem:[%s4723_s30 + $0x1e8] sm:$0xf] }
  0x52   : > { %425 = vst [vmem:[%s4728_s9 + $0x48] sm:$0xf] %v3584_v50  ;;  %427 = vst [vmem:[%s4728_s9 + $0x4c] sm:$0xf] %v3585_v51  ;;  %v3587_v53 = vld [vmem:[%s4723_s30 + $0x200] sm:$0xf] }
  0x53   : > { %429 = vst [vmem:[%s4728_s9 + $0x50] sm:$0xf] %v3586_v52  ;;  %v3588_v54 = vld [vmem:[%s4723_s30 + $0x218] sm:$0xf]  ;;  %v3589_v55 = vld [vmem:[%s4723_s30 + $0x230] sm:$0xf] }
  0x54   : > { %431 = vst [vmem:[%s4728_s9 + $0x54] sm:$0xf] %v3587_v53  ;;  %433 = vst [vmem:[%s4728_s9 + $0x58] sm:$0xf] %v3588_v54  ;;  %v3590_v56 = vld [vmem:[%s4723_s30 + $0x248] sm:$0xf] }
  0x55   : > { %435 = vst [vmem:[%s4728_s9 + $0x5c] sm:$0xf] %v3589_v55  ;;  %v3591_v57 = vld [vmem:[%s4723_s30 + $0x260] sm:$0xf]  ;;  %v3592_v58 = vld [vmem:[%s4723_s30 + $0x278] sm:$0xf] }
  0x56   : > { %437 = vst [vmem:[%s4728_s9 + $0x60] sm:$0xf] %v3590_v56  ;;  %439 = vst [vmem:[%s4728_s9 + $0x64] sm:$0xf] %v3591_v57  ;;  %v3593_v59 = vld [vmem:[%s4723_s30 + $0x290] sm:$0xf] }
  0x57   : > { %441 = vst [vmem:[%s4728_s9 + $0x68] sm:$0xf] %v3592_v58  ;;  %v3594_v60 = vld [vmem:[%s4723_s30 + $0x2a8] sm:$0xf]  ;;  %v3595_v61 = vld [vmem:[%s4723_s30 + $0x2c0] sm:$0xf] }
  0x58   : > { %443 = vst [vmem:[%s4728_s9 + $0x6c] sm:$0xf] %v3593_v59  ;;  %445 = vst [vmem:[%s4728_s9 + $0x70] sm:$0xf] %v3594_v60  ;;  %v3596_v62 = vld [vmem:[%s4723_s30 + $0x2d8] sm:$0xf] }
  0x59   : > { %447 = vst [vmem:[%s4728_s9 + $0x74] sm:$0xf] %v3595_v61  ;;  %v3597_v63 = vld [vmem:[%s4723_s30 + $0x2f0] sm:$0xf]  ;;  %449 = vst [vmem:[%s4728_s9 + $0x78] sm:$0xf] %v3596_v62 }
  0x5a   : > { %451 = vst [vmem:[%s4728_s9 + $0x7c] sm:$0xf] %v3597_v63 }
  0x5b PF: > { %539 = sbr.rel (!%p4624_p12) target bundleno = 119 (0x77), region = 102  ;;  %s541_s27 = sand.u32 (%p4624_p12), 1, %s4457_s13  }
  0x5c   : > { %s3463_s23 = smul.u32 (%p4624_p12), 192, %s4489_s21  ;;  %s3598_s29 = sshll.u32 (%p4624_p12), %s541_s27, 7 }
  0x5d   : > { %s4804_s4 = scalar_lea.vmem (%p4624_p12), [#allocation7], %s3598_s29 }
  0x5e   : > { %s3464_s3 = sadd.s32 (%p4624_p12), %s4485_s20, %s3463_s23 }
  0x5f   : > { %s3599_s25 = sshll.u32 (%p4624_p12), %s3464_s3, 2 }
  0x60   : > { %s4799_s8 = scalar_lea.vmem %s6346_s2, %s3599_s25 }
  0x61   : > { %v3600_v0 = vld [vmem:[%s4799_s8 + $0x10] sm:$0xf]  ;;  %v3601_v1 = vld [vmem:[%s4799_s8 + $0x28] sm:$0xf]  ;;  %v3602_v2 = vld [vmem:[%s4799_s8 + $0x40] sm:$0xf] }
  0x62   : > { %569 = vst [vmem:[%s4804_s4] sm:$0xf] %v3600_v0  ;;  %571 = vst [vmem:[%s4804_s4 + $0x4] sm:$0xf] %v3601_v1  ;;  %v3603_v3 = vld [vmem:[%s4799_s8 + $0x58] sm:$0xf] }
  0x63   : > { %573 = vst [vmem:[%s4804_s4 + $0x8] sm:$0xf] %v3602_v2  ;;  %v3604_v4 = vld [vmem:[%s4799_s8 + $0x70] sm:$0xf]  ;;  %v3605_v5 = vld [vmem:[%s4799_s8 + $0x88] sm:$0xf] }
  0x64   : > { %575 = vst [vmem:[%s4804_s4 + $0xc] sm:$0xf] %v3603_v3  ;;  %577 = vst [vmem:[%s4804_s4 + $0x10] sm:$0xf] %v3604_v4  ;;  %v3606_v6 = vld [vmem:[%s4799_s8 + $0xa0] sm:$0xf] }
  0x65   : > { %579 = vst [vmem:[%s4804_s4 + $0x14] sm:$0xf] %v3605_v5  ;;  %v3607_v7 = vld [vmem:[%s4799_s8 + $0xb8] sm:$0xf]  ;;  %v3608_v8 = vld [vmem:[%s4799_s8 + $0xd0] sm:$0xf] }
  0x66   : > { %581 = vst [vmem:[%s4804_s4 + $0x18] sm:$0xf] %v3606_v6  ;;  %583 = vst [vmem:[%s4804_s4 + $0x1c] sm:$0xf] %v3607_v7  ;;  %v3609_v9 = vld [vmem:[%s4799_s8 + $0xe8] sm:$0xf] }
  0x67   : > { %585 = vst [vmem:[%s4804_s4 + $0x20] sm:$0xf] %v3608_v8  ;;  %v3610_v10 = vld [vmem:[%s4799_s8 + $0x100] sm:$0xf]  ;;  %v3611_v11 = vld [vmem:[%s4799_s8 + $0x118] sm:$0xf] }
  0x68   : > { %587 = vst [vmem:[%s4804_s4 + $0x24] sm:$0xf] %v3609_v9  ;;  %589 = vst [vmem:[%s4804_s4 + $0x28] sm:$0xf] %v3610_v10  ;;  %v3612_v12 = vld [vmem:[%s4799_s8 + $0x130] sm:$0xf] }
  0x69   : > { %591 = vst [vmem:[%s4804_s4 + $0x2c] sm:$0xf] %v3611_v11  ;;  %v3613_v13 = vld [vmem:[%s4799_s8 + $0x148] sm:$0xf]  ;;  %v3614_v14 = vld [vmem:[%s4799_s8 + $0x160] sm:$0xf] }
  0x6a   : > { %593 = vst [vmem:[%s4804_s4 + $0x30] sm:$0xf] %v3612_v12  ;;  %595 = vst [vmem:[%s4804_s4 + $0x34] sm:$0xf] %v3613_v13  ;;  %v3615_v15 = vld [vmem:[%s4799_s8 + $0x178] sm:$0xf] }
  0x6b   : > { %597 = vst [vmem:[%s4804_s4 + $0x38] sm:$0xf] %v3614_v14  ;;  %v3616_v16 = vld [vmem:[%s4799_s8 + $0x190] sm:$0xf]  ;;  %v3617_v17 = vld [vmem:[%s4799_s8 + $0x1a8] sm:$0xf] }
  0x6c   : > { %599 = vst [vmem:[%s4804_s4 + $0x3c] sm:$0xf] %v3615_v15  ;;  %601 = vst [vmem:[%s4804_s4 + $0x40] sm:$0xf] %v3616_v16  ;;  %v3618_v18 = vld [vmem:[%s4799_s8 + $0x1c0] sm:$0xf] }
  0x6d   : > { %603 = vst [vmem:[%s4804_s4 + $0x44] sm:$0xf] %v3617_v17  ;;  %v3619_v19 = vld [vmem:[%s4799_s8 + $0x1d8] sm:$0xf]  ;;  %v3620_v20 = vld [vmem:[%s4799_s8 + $0x1f0] sm:$0xf] }
  0x6e   : > { %605 = vst [vmem:[%s4804_s4 + $0x48] sm:$0xf] %v3618_v18  ;;  %607 = vst [vmem:[%s4804_s4 + $0x4c] sm:$0xf] %v3619_v19  ;;  %v3621_v21 = vld [vmem:[%s4799_s8 + $0x208] sm:$0xf] }
  0x6f   : > { %609 = vst [vmem:[%s4804_s4 + $0x50] sm:$0xf] %v3620_v20  ;;  %v3622_v22 = vld [vmem:[%s4799_s8 + $0x220] sm:$0xf]  ;;  %v3623_v23 = vld [vmem:[%s4799_s8 + $0x238] sm:$0xf] }
  0x70   : > { %611 = vst [vmem:[%s4804_s4 + $0x54] sm:$0xf] %v3621_v21  ;;  %613 = vst [vmem:[%s4804_s4 + $0x58] sm:$0xf] %v3622_v22  ;;  %v3624_v24 = vld [vmem:[%s4799_s8 + $0x250] sm:$0xf] }
  0x71   : > { %615 = vst [vmem:[%s4804_s4 + $0x5c] sm:$0xf] %v3623_v23  ;;  %v3625_v25 = vld [vmem:[%s4799_s8 + $0x268] sm:$0xf]  ;;  %v3626_v26 = vld [vmem:[%s4799_s8 + $0x280] sm:$0xf] }
  0x72   : > { %617 = vst [vmem:[%s4804_s4 + $0x60] sm:$0xf] %v3624_v24  ;;  %619 = vst [vmem:[%s4804_s4 + $0x64] sm:$0xf] %v3625_v25  ;;  %v3627_v27 = vld [vmem:[%s4799_s8 + $0x298] sm:$0xf] }
  0x73   : > { %621 = vst [vmem:[%s4804_s4 + $0x68] sm:$0xf] %v3626_v26  ;;  %v3628_v28 = vld [vmem:[%s4799_s8 + $0x2b0] sm:$0xf]  ;;  %v3629_v29 = vld [vmem:[%s4799_s8 + $0x2c8] sm:$0xf] }
  0x74   : > { %623 = vst [vmem:[%s4804_s4 + $0x6c] sm:$0xf] %v3627_v27  ;;  %625 = vst [vmem:[%s4804_s4 + $0x70] sm:$0xf] %v3628_v28  ;;  %v3630_v30 = vld [vmem:[%s4799_s8 + $0x2e0] sm:$0xf] }
  0x75   : > { %627 = vst [vmem:[%s4804_s4 + $0x74] sm:$0xf] %v3629_v29  ;;  %v3631_v31 = vld [vmem:[%s4799_s8 + $0x2f8] sm:$0xf]  ;;  %629 = vst [vmem:[%s4804_s4 + $0x78] sm:$0xf] %v3630_v30 }
  0x76   : > { %631 = vst [vmem:[%s4804_s4 + $0x7c] sm:$0xf] %v3631_v31 }
  0x77 PF: > { %p3632_p1 = scmp.ge.s32.totalorder %s4493_s22, 1  ;;  %p718_p2 = scmp.lt.s32.totalorder %s4493_s22, 5 }
  0x79   : > { %p719_p3 = pnand %p3632_p1, %p718_p2 }
  0x7b   : > { %722 = sbr.rel (%p719_p3) target bundleno = 1101 (0x44d), region = 143 }
  0x80   : > { %s732_s10 = sand.u32 1, %s4461_s14   ;;  %s725_s14 = sand.u32 1, %s4469_s16   ;;  %vm780_vm0 = vcmask 7168   ;;  %v4495_v2 = vmov -1e+30   ;;  %v4496_v15 = vmov 0  }
  0x81   : > { %s3634_s30 = sshll.u32 %s732_s10, 7  ;;  %s4878_s27 = sshll.u32 %s725_s14, 7  ;;  %781 = vst.msk [vmem:[#allocation2] sm:$0xff] %vm780_vm0, %v4495_v2  ;;  %782 = vst.msk [vmem:[#allocation2 + $0x8] sm:$0xff] %vm780_vm0, %v4495_v2  ;;  %4101 = vset.pattern.permute.xlu0 %v4496_v15  ;;  %4102 = vset.pattern.permute.xlu1 %v4496_v15  ;;  %v4497_v24 = vmov 0.0  }
  0x82   : > { %s4870_s9 = scalar_lea.vmem [#allocation6], %s3634_s30  ;;  %s4883_s23 = scalar_lea.vmem [#allocation5], %s4878_s27  ;;  %783 = vst.msk [vmem:[#allocation2 + $0x10] sm:$0xff] %vm780_vm0, %v4495_v2  ;;  %784 = vst.msk [vmem:[#allocation2 + $0x18] sm:$0xff] %vm780_vm0, %v4495_v2 }
  0x83   : > { %v4103_v32 = vld [vmem:[%s4870_s9 + $0x78] sm:$0xff]   ;;  %v4105_v34 = vld [vmem:[%s4870_s9 + $0x70] sm:$0xff]   ;;  %v4107_v36 = vld [vmem:[%s4870_s9 + $0x68] sm:$0xff]   ;;  %785 = vst.msk [vmem:[#allocation2 + $0x20] sm:$0xff] %vm780_vm0, %v4495_v2  ;;  %s739_s16 = sand.u32 1, %s4453_s12   ;;  %s6136_s12 = scalar_lea.vmem [#allocation8], %s4878_s27 }
  0x84   : > { %v4104_v33 = vld [vmem:[%s4870_s9 + $0x38] sm:$0xff]   ;;  %3849 = vmatprep.subr.bf16.mxu0 %v4103_v32  ;;  %v4106_v35 = vld [vmem:[%s4870_s9 + $0x30] sm:$0xff]   ;;  %v4108_v37 = vld [vmem:[%s4870_s9 + $0x28] sm:$0xff]   ;;  %786 = vst.msk [vmem:[#allocation2 + $0x28] sm:$0xff] %vm780_vm0, %v4495_v2  ;;  %s3635_s29 = sshll.u32 %s739_s16, 7  ;;  %s3718_s25 = sshll.u32 (%p4631_p13), %s4481_s19, 6 }
  0x85   : > { %3850 = vmatpush3.bf16.xpose.msra.mxu0 %v4104_v33  ;;  %v4109_v38 = vld [vmem:[%s4870_s9 + $0x60] sm:$0xff]   ;;  %v4111_v41 = vld [vmem:[%s4870_s9 + $0x58] sm:$0xff]   ;;  %v4113_v43 = vld [vmem:[%s4870_s9 + $0x50] sm:$0xff]   ;;  %787 = vst.msk [vmem:[#allocation2 + $0x30] sm:$0xff] %vm780_vm0, %v4495_v2  ;;  %s5167_s3 = scalar_lea.vmem [#allocation7], %s3635_s29  ;;  %s3262_s5 = sadd.s32 (%p4631_p13), %s4477_s18, %s3718_s25 }
  0x86   : > { %3851 = vmatprep.subr.bf16.mxu0 %v4105_v34  ;;  %v4119_v39 = vld [vmem:[%s4883_s23] sm:$0xff]   ;;  %v4112_v42 = vld [vmem:[%s4870_s9 + $0x18] sm:$0xff]   ;;  %v4114_v44 = vld [vmem:[%s4870_s9 + $0x10] sm:$0xff]   ;;  %788 = vst.msk [vmem:[#allocation2 + $0x38] sm:$0xff] %vm780_vm0, %v4495_v2  ;;  %s3719_s7 = sshll.u32 (%p4631_p13), %s3262_s5, 2  ;;  %s6630_s4 = sld [smem:[#allocation65_spill]] (%p4631_p13) }
  0x87   : > { %3865 = vmatprep.mubr.bf16.mxu0 %v4119_v39  ;;  %v4110_v40 = vld [vmem:[%s4870_s9 + $0x20] sm:$0xff]   ;;  %v4115_v45 = vld [vmem:[%s4870_s9 + $0x48] sm:$0xff]   ;;  %v4121_v50 = vld [vmem:[%s4883_s23 + $0x10] sm:$0xff]   ;;  %789 = vst.msk [vmem:[#allocation2 + $0x40] sm:$0xff] %vm780_vm0, %v4495_v2 }
  0x88   : > { %v4116_v46 = vld [vmem:[%s4870_s9 + $0x8] sm:$0xff]   ;;  %v4117_v47 = vld [vmem:[%s4870_s9 + $0x40] sm:$0xff]   ;;  %v4122_v51 = vld [vmem:[%s4883_s23 + $0x18] sm:$0xff]   ;;  %790 = vst.msk [vmem:[#allocation2 + $0x48] sm:$0xff] %vm780_vm0, %v4495_v2 }
  0x89   : > { %v4118_v48 = vld [vmem:[%s4870_s9] sm:$0xff]   ;;  %v4120_v49 = vld [vmem:[%s4883_s23 + $0x8] sm:$0xff]   ;;  %v4125_v54 = vld [vmem:[%s4883_s23 + $0x30] sm:$0xff]   ;;  %791 = vst.msk [vmem:[#allocation2 + $0x50] sm:$0xff] %vm780_vm0, %v4495_v2 }
  0x8a   : > { %v4123_v52 = vld [vmem:[%s4883_s23 + $0x20] sm:$0xff]   ;;  %v4124_v53 = vld [vmem:[%s4883_s23 + $0x28] sm:$0xff]   ;;  %v4126_v55 = vld [vmem:[%s4883_s23 + $0x38] sm:$0xff]   ;;  %792 = vst.msk [vmem:[#allocation2 + $0x58] sm:$0xff] %vm780_vm0, %v4495_v2 }
  0x8b   : > { %v4127_v56 = vld [vmem:[%s4883_s23 + $0x40] sm:$0xff]   ;;  %v4128_v57 = vld [vmem:[%s4883_s23 + $0x48] sm:$0xff]   ;;  %v4129_v58 = vld [vmem:[%s4883_s23 + $0x50] sm:$0xff]   ;;  %793 = vst.msk [vmem:[#allocation2 + $0x60] sm:$0xff] %vm780_vm0, %v4495_v2 }
  0x8c   : > { %v4130_v59 = vld [vmem:[%s4883_s23 + $0x58] sm:$0xff]   ;;  %v4131_v60 = vld [vmem:[%s4883_s23 + $0x60] sm:$0xff]   ;;  %v4132_v61 = vld [vmem:[%s4883_s23 + $0x68] sm:$0xff]   ;;  %794 = vst.msk [vmem:[#allocation2 + $0x68] sm:$0xff] %vm780_vm0, %v4495_v2  ;;  %s6252_s10 = scalar_lea.vmem (%p4631_p13), %s6630_s4, %s3719_s7 }
  0x8d   : > { %3852 = vmatpush3.bf16.xpose.msra.mxu0 %v4106_v35  ;;  %v4133_v62 = vld [vmem:[%s4883_s23 + $0x70] sm:$0xff]   ;;  %v4134_v63 = vld [vmem:[%s4883_s23 + $0x78] sm:$0xff]   ;;  %795 = vst.msk [vmem:[#allocation2 + $0x70] sm:$0xff] %vm780_vm0, %v4495_v2  ;;  %796 = vst.msk [vmem:[#allocation2 + $0x78] sm:$0xff] %vm780_vm0, %v4495_v2 }
  0x8e   : > { %3853 = vmatprep.subr.bf16.mxu0 %v4107_v36  ;;  %797 = vst.msk [vmem:[#allocation2 + $0x80] sm:$0xff] %vm780_vm0, %v4495_v2  ;;  %798 = vst.msk [vmem:[#allocation2 + $0x88] sm:$0xff] %vm780_vm0, %v4495_v2 }
  0x8f   : > { %799 = vst.msk [vmem:[#allocation2 + $0x90] sm:$0xff] %vm780_vm0, %v4495_v2  ;;  %800 = vst.msk [vmem:[#allocation2 + $0x98] sm:$0xff] %vm780_vm0, %v4495_v2 }
  0x90   : > { %801 = vst.msk [vmem:[#allocation2 + $0xa0] sm:$0xff] %vm780_vm0, %v4495_v2  ;;  %802 = vst.msk [vmem:[#allocation2 + $0xa8] sm:$0xff] %vm780_vm0, %v4495_v2 }
  0x91   : > { %803 = vst.msk [vmem:[#allocation2 + $0xb0] sm:$0xff] %vm780_vm0, %v4495_v2  ;;  %804 = vst.msk [vmem:[#allocation2 + $0xb8] sm:$0xff] %vm780_vm0, %v4495_v2 }
  0x92   : > { %805 = vst.msk [vmem:[#allocation2 + $0xc0] sm:$0xff] %vm780_vm0, %v4495_v2  ;;  %806 = vst.msk [vmem:[#allocation2 + $0xc8] sm:$0xff] %vm780_vm0, %v4495_v2 }
  0x93   : > { %807 = vst.msk [vmem:[#allocation2 + $0xd0] sm:$0xff] %vm780_vm0, %v4495_v2  ;;  %808 = vst.msk [vmem:[#allocation2 + $0xd8] sm:$0xff] %vm780_vm0, %v4495_v2 }
  0x94   : > { %809 = vst.msk [vmem:[#allocation2 + $0xe0] sm:$0xff] %vm780_vm0, %v4495_v2  ;;  %810 = vst.msk [vmem:[#allocation2 + $0xe8] sm:$0xff] %vm780_vm0, %v4495_v2 }
  0x95   : > { %3854 = vmatpush3.bf16.xpose.msra.mxu0 %v4108_v37  ;;  %811 = vst.msk [vmem:[#allocation2 + $0xf0] sm:$0xff] %vm780_vm0, %v4495_v2  ;;  %812 = vst.msk [vmem:[#allocation2 + $0xf8] sm:$0xff] %vm780_vm0, %v4495_v2 }
  0x96   : > { %3855 = vmatprep.subr.bf16.mxu0 %v4109_v38  ;;  %814 = vst.msk [vmem:[#allocation3 + $0x8] sm:$0xff] %vm780_vm0, %v4497_v24  ;;  %813 = vst.msk [vmem:[#allocation3] sm:$0xff] %vm780_vm0, %v4497_v24 }
  0x97   : > { %815 = vst.msk [vmem:[#allocation3 + $0x10] sm:$0xff] %vm780_vm0, %v4497_v24  ;;  %816 = vst.msk [vmem:[#allocation3 + $0x18] sm:$0xff] %vm780_vm0, %v4497_v24 }
  0x98   : > { %817 = vst.msk [vmem:[#allocation3 + $0x20] sm:$0xff] %vm780_vm0, %v4497_v24  ;;  %818 = vst.msk [vmem:[#allocation3 + $0x28] sm:$0xff] %vm780_vm0, %v4497_v24 }
  0x99   : > { %819 = vst.msk [vmem:[#allocation3 + $0x30] sm:$0xff] %vm780_vm0, %v4497_v24  ;;  %820 = vst.msk [vmem:[#allocation3 + $0x38] sm:$0xff] %vm780_vm0, %v4497_v24 }
  0x9a   : > { %821 = vst.msk [vmem:[#allocation3 + $0x40] sm:$0xff] %vm780_vm0, %v4497_v24  ;;  %822 = vst.msk [vmem:[#allocation3 + $0x48] sm:$0xff] %vm780_vm0, %v4497_v24 }
  0x9b   : > { %823 = vst.msk [vmem:[#allocation3 + $0x50] sm:$0xff] %vm780_vm0, %v4497_v24  ;;  %824 = vst.msk [vmem:[#allocation3 + $0x58] sm:$0xff] %vm780_vm0, %v4497_v24 }
  0x9c   : > { %825 = vst.msk [vmem:[#allocation3 + $0x60] sm:$0xff] %vm780_vm0, %v4497_v24  ;;  %826 = vst.msk [vmem:[#allocation3 + $0x68] sm:$0xff] %vm780_vm0, %v4497_v24 }
  0x9d   : > { %3856 = vmatpush3.bf16.xpose.msra.mxu0 %v4110_v40  ;;  %827 = vst.msk [vmem:[#allocation3 + $0x70] sm:$0xff] %vm780_vm0, %v4497_v24  ;;  %828 = vst.msk [vmem:[#allocation3 + $0x78] sm:$0xff] %vm780_vm0, %v4497_v24 }
  0x9e   : > { %3857 = vmatprep.subr.bf16.mxu0 %v4111_v41  ;;  %829 = vst.msk [vmem:[#allocation3 + $0x80] sm:$0xff] %vm780_vm0, %v4497_v24  ;;  %830 = vst.msk [vmem:[#allocation3 + $0x88] sm:$0xff] %vm780_vm0, %v4497_v24 }
  0x9f   : > { %831 = vst.msk [vmem:[#allocation3 + $0x90] sm:$0xff] %vm780_vm0, %v4497_v24  ;;  %832 = vst.msk [vmem:[#allocation3 + $0x98] sm:$0xff] %vm780_vm0, %v4497_v24 }
  0xa0   : > { %833 = vst.msk [vmem:[#allocation3 + $0xa0] sm:$0xff] %vm780_vm0, %v4497_v24  ;;  %834 = vst.msk [vmem:[#allocation3 + $0xa8] sm:$0xff] %vm780_vm0, %v4497_v24 }
  0xa1   : > { %835 = vst.msk [vmem:[#allocation3 + $0xb0] sm:$0xff] %vm780_vm0, %v4497_v24  ;;  %836 = vst.msk [vmem:[#allocation3 + $0xb8] sm:$0xff] %vm780_vm0, %v4497_v24 }
  0xa2   : > { %837 = vst.msk [vmem:[#allocation3 + $0xc0] sm:$0xff] %vm780_vm0, %v4497_v24  ;;  %838 = vst.msk [vmem:[#allocation3 + $0xc8] sm:$0xff] %vm780_vm0, %v4497_v24 }
  0xa3   : > { %839 = vst.msk [vmem:[#allocation3 + $0xd0] sm:$0xff] %vm780_vm0, %v4497_v24  ;;  %840 = vst.msk [vmem:[#allocation3 + $0xd8] sm:$0xff] %vm780_vm0, %v4497_v24 }
  0xa4   : > { %841 = vst.msk [vmem:[#allocation3 + $0xe0] sm:$0xff] %vm780_vm0, %v4497_v24  ;;  %842 = vst.msk [vmem:[#allocation3 + $0xe8] sm:$0xff] %vm780_vm0, %v4497_v24 }
  0xa5   : > { %3858 = vmatpush3.bf16.xpose.msra.mxu0 %v4112_v42  ;;  %843 = vst.msk [vmem:[#allocation3 + $0xf0] sm:$0xff] %vm780_vm0, %v4497_v24  ;;  %844 = vst.msk [vmem:[#allocation3 + $0xf8] sm:$0xff] %vm780_vm0, %v4497_v24 }
  0xa6   : > { %3859 = vmatprep.subr.bf16.mxu0 %v4113_v43 }
  0xad   : > { %3860 = vmatpush3.bf16.xpose.msra.mxu0 %v4114_v44 }
  0xae   : > { %3861 = vmatprep.subr.bf16.mxu0 %v4115_v45 }
  0xb5   : > { %3862 = vmatpush3.bf16.xpose.msra.mxu0 %v4116_v46 }
  0xb6   : > { %3863 = vmatprep.subr.bf16.mxu0 %v4117_v47 }
  0xbd   : > { %3864 = vmatpush3.bf16.xpose.msra.mxu0 %v4118_v48 }
  0xc4   : > { %3866 = vmatmul.mubr.bf16.vlgmr.msra.gmra.mxu0 %v4119_v39 }
  0xc5   : > { %3867 = vmatprep.mubr.bf16.mxu0 %v4120_v49 }
  0xcc   : > { %3868 = vmatmul.mubr.bf16.gmra.mxu0 %v4120_v49 }
  0xcd   : > { %3869 = vmatprep.mubr.bf16.mxu0 %v4121_v50 }
  0xd4   : > { %3870 = vmatmul.mubr.bf16.gmra.mxu0 %v4121_v50 }
  0xd5   : > { %3871 = vmatprep.mubr.bf16.mxu0 %v4122_v51 }
  0xdc   : > { %3872 = vmatmul.mubr.bf16.gmra.mxu0 %v4122_v51 }
  0xdd   : > { %3873 = vmatprep.mubr.bf16.mxu0 %v4123_v52 }
  0xe4   : > { %3874 = vmatmul.mubr.bf16.gmra.mxu0 %v4123_v52 }
  0xe5   : > { %3875 = vmatprep.mubr.bf16.mxu0 %v4124_v53 }
  0xec   : > { %3876 = vmatmul.mubr.bf16.gmra.mxu0 %v4124_v53 }
  0xed   : > { %3877 = vmatprep.mubr.bf16.mxu0 %v4125_v54 }
  0xf4   : > { %3878 = vmatmul.mubr.bf16.gmra.mxu0 %v4125_v54 }
  0xf5   : > { %3879 = vmatprep.mubr.bf16.mxu0 %v4126_v55 }
  0xfc   : > { %3880 = vmatmul.mubr.bf16.gmra.mxu0 %v4126_v55 }
  0xfd   : > { %3881 = vmatprep.mubr.bf16.mxu0 %v4127_v56 }
 0x104   : > { %3882 = vmatmul.mubr.bf16.gmra.mxu0 %v4127_v56 }
 0x105   : > { %3883 = vmatprep.mubr.bf16.mxu0 %v4128_v57 }
 0x10c   : > { %3884 = vmatmul.mubr.bf16.gmra.mxu0 %v4128_v57 }
 0x10d   : > { %3885 = vmatprep.mubr.bf16.mxu0 %v4129_v58 }
 0x114   : > { %3886 = vmatmul.mubr.bf16.gmra.mxu0 %v4129_v58 }
 0x115   : > { %3887 = vmatprep.mubr.bf16.mxu0 %v4130_v59 }
 0x11c   : > { %3888 = vmatmul.mubr.bf16.gmra.mxu0 %v4130_v59 }
 0x11d   : > { %3889 = vmatprep.mubr.bf16.mxu0 %v4131_v60 }
 0x124   : > { %3890 = vmatmul.mubr.bf16.gmra.mxu0 %v4131_v60 }
 0x125   : > { %3891 = vmatprep.mubr.bf16.mxu0 %v4132_v61 }
 0x12c   : > { %3892 = vmatmul.mubr.bf16.gmra.mxu0 %v4132_v61 }
 0x12d   : > { %3893 = vmatprep.mubr.bf16.mxu0 %v4133_v62 }
 0x134   : > { %3894 = vmatmul.mubr.bf16.gmra.mxu0 %v4133_v62 }
 0x135   : > { %3895 = vmatprep.mubr.bf16.mxu0 %v4134_v63 }
 0x13c   : > { %3896 = vmatmul.mubr.bf16.gmra.mxu0 %v4134_v63 }
 0x184   : > { %v4910_v0 = vpop.f32.mrf.mxu0 }
 0x186   : > { %v4912_v1 = vpop.f32.mrf.mxu0 }
 0x187   : > { %v1358_v3 = vmax.f32 %v4910_v0, %v4912_v1 }
 0x188   : > { %v4948_v4 = vpop.f32.mrf.mxu0 }
 0x189   : > { %1359 = vmax.xlane.f32.xlu0 %v1358_v3 }
 0x18a   : > { %v4950_v5 = vpop.f32.mrf.mxu0 }
 0x18b   : > { %v1361_v6 = vmax.f32 %v4948_v4, %v4950_v5 }
 0x18c   : > { %v4954_v7 = vpop.f32.mrf.mxu0 }
 0x18d   : > { %1362 = vmax.xlane.f32.xlu0 %v1361_v6 }
 0x18e   : > { %v4956_v8 = vpop.f32.mrf.mxu0 }
 0x18f   : > { %v1364_v9 = vmax.f32 %v4954_v7, %v4956_v8 }
 0x190   : > { %v4960_v10 = vpop.f32.mrf.mxu0 }
 0x191   : > { %1365 = vmax.xlane.f32.xlu1 %v1364_v9 }
 0x192   : > { %v4962_v11 = vpop.f32.mrf.mxu0 }
 0x193   : > { %v1367_v12 = vmax.f32 %v4960_v10, %v4962_v11 }
 0x194   : > { %v4966_v13 = vpop.f32.mrf.mxu0 }
 0x195   : > { %1368 = vmax.xlane.f32.xlu1 %v1367_v12 }
 0x196   : > { %v4968_v14 = vpop.f32.mrf.mxu0 }
 0x197   : > { %v1370_v16 = vmax.f32 %v4966_v13, %v4968_v14 }
 0x198   : > { %v4972_v17 = vpop.f32.mrf.mxu0 }
 0x199   : > { %1371 = vmax.xlane.f32.xlu0 %v1370_v16 }
 0x19a   : > { %v4974_v18 = vpop.f32.mrf.mxu0 }
 0x19b   : > { %6423 = vst [vmem:[#allocation10_spill] sm:$0xff] %v4974_v18  ;;  %v1373_v19 = vmax.f32 %v4972_v17, %v4974_v18  ;;  %v5484_v18 = vld [vmem:[#allocation2 + $0xe8] sm:$0xff] }
 0x19c   : > { %v4978_v20 = vpop.f32.mrf.mxu0 }
 0x19d   : > { %6424 = vst [vmem:[#allocation11_spill] sm:$0xff] %v4978_v20  ;;  %1374 = vmax.xlane.f32.xlu1 %v1373_v19 }
 0x19e   : > { %v4980_v21 = vpop.f32.mrf.mxu0 }
 0x19f   : > { %6425 = vst [vmem:[#allocation12_spill] sm:$0xff] %v4980_v21  ;;  %v1376_v22 = vmax.f32 %v4978_v20, %v4980_v21 }
 0x1a0   : > { %v4984_v23 = vpop.f32.mrf.mxu0 }
 0x1a1   : > { %6426 = vst [vmem:[#allocation13_spill] sm:$0xff] %v4984_v23  ;;  %1377 = vmax.xlane.f32.xlu0 %v1376_v22 }
 0x1a2   : > { %v5018_v25 = vpop.f32.mrf.mxu0 }
 0x1a3   : > { %6427 = vst [vmem:[#allocation14_spill] sm:$0xff] %v5018_v25  ;;  %v1379_v26 = vmax.f32 %v4984_v23, %v5018_v25  ;;  %v5393_v25 = vld [vmem:[#allocation2 + $0xb0] sm:$0xff] }
 0x1a4   : > { %v5022_v27 = vpop.f32.mrf.mxu0 }
 0x1a5   : > { %6428 = vst [vmem:[#allocation15_spill] sm:$0xff] %v5022_v27  ;;  %1380 = vmax.xlane.f32.xlu1 %v1379_v26 }
 0x1a6   : > { %v5024_v28 = vpop.f32.mrf.mxu0 }
 0x1a7   : > { %6429 = vst [vmem:[#allocation16_spill] sm:$0xff] %v5024_v28  ;;  %v1382_v29 = vmax.f32 %v5022_v27, %v5024_v28 }
 0x1a8   : > { %v5028_v30 = vpop.f32.mrf.mxu0 }
 0x1a9   : > { %6430 = vst [vmem:[#allocation17_spill] sm:$0xff] %v5028_v30  ;;  %1383 = vmax.xlane.f32.xlu0 %v1382_v29 }
 0x1aa   : > { %v5030_v31 = vpop.f32.mrf.mxu0 }
 0x1ab   : > { %6431 = vst [vmem:[#allocation18_spill] sm:$0xff] %v5030_v31  ;;  %v1385_v32 = vmax.f32 %v5028_v30, %v5030_v31  ;;  %v5382_v31 = vld [vmem:[#allocation2 + $0xa8] sm:$0xff] }
 0x1ac   : > { %v5034_v33 = vpop.f32.mrf.mxu0 }
 0x1ad   : > { %6432 = vst [vmem:[#allocation19_spill] sm:$0xff] %v5034_v33  ;;  %1386 = vmax.xlane.f32.xlu1 %v1385_v32 }
 0x1ae   : > { %v5036_v34 = vpop.f32.mrf.mxu0 }
 0x1af   : > { %6433 = vst [vmem:[#allocation20_spill] sm:$0xff] %v5036_v34  ;;  %v1388_v35 = vmax.f32 %v5034_v33, %v5036_v34  ;;  %v5374_v34 = vld [vmem:[#allocation2 + $0xa0] sm:$0xff] }
 0x1b0   : > { %v5040_v36 = vpop.f32.mrf.mxu0 }
 0x1b1   : > { %6434 = vst [vmem:[#allocation21_spill] sm:$0xff] %v5040_v36  ;;  %1389 = vmax.xlane.f32.xlu0 %v1388_v35 }
 0x1b2   : > { %v5042_v37 = vpop.f32.mrf.mxu0 }
 0x1b3   : > { %6435 = vst [vmem:[#allocation22_spill] sm:$0xff] %v5042_v37  ;;  %v1391_v38 = vmax.f32 %v5040_v36, %v5042_v37  ;;  %v5366_v37 = vld [vmem:[#allocation2 + $0x98] sm:$0xff] }
 0x1b4   : > { %v5046_v39 = vpop.f32.mrf.mxu0 }
 0x1b5   : > { %6436 = vst [vmem:[#allocation23_spill] sm:$0xff] %v5046_v39  ;;  %1392 = vmax.xlane.f32.xlu1 %v1391_v38 }
 0x1b6   : > { %v5048_v40 = vpop.f32.mrf.mxu0 }
 0x1b7   : > { %6437 = vst [vmem:[#allocation24_spill] sm:$0xff] %v5048_v40  ;;  %v1394_v41 = vmax.f32 %v5046_v39, %v5048_v40 }
 0x1b8   : > { %v5052_v42 = vpop.f32.mrf.mxu0 }
 0x1b9   : > { %6438 = vst [vmem:[#allocation25_spill] sm:$0xff] %v5052_v42  ;;  %1395 = vmax.xlane.f32.xlu0 %v1394_v41 }
 0x1ba   : > { %v5054_v43 = vpop.f32.mrf.mxu0 }
 0x1bb   : > { %6439 = vst [vmem:[#allocation26_spill] sm:$0xff] %v5054_v43  ;;  %v1397_v44 = vmax.f32 %v5052_v42, %v5054_v43  ;;  %v5350_v42 = vld [vmem:[#allocation2 + $0x88] sm:$0xff] }
 0x1bc   : > { %v5058_v45 = vpop.f32.mrf.mxu0 }
 0x1bd   : > { %6440 = vst [vmem:[#allocation27_spill] sm:$0xff] %v5058_v45  ;;  %1398 = vmax.xlane.f32.xlu1 %v1397_v44 }
 0x1be   : > { %v5060_v46 = vpop.f32.mrf.mxu0 }
 0x1bf   : > { %6441 = vst [vmem:[#allocation28_spill] sm:$0xff] %v5060_v46  ;;  %v1400_v47 = vmax.f32 %v5058_v45, %v5060_v46  ;;  %v5340_v45 = vld [vmem:[#allocation2 + $0x80] sm:$0xff] }
 0x1c0   : > { %v5064_v48 = vpop.f32.mrf.mxu0 }
 0x1c1   : > { %6442 = vst [vmem:[#allocation29_spill] sm:$0xff] %v5064_v48  ;;  %1401 = vmax.xlane.f32.xlu0 %v1400_v47 }
 0x1c2   : > { %v5066_v49 = vpop.f32.mrf.mxu0 }
 0x1c3   : > { %6443 = vst [vmem:[#allocation30_spill] sm:$0xff] %v5066_v49  ;;  %v1403_v50 = vmax.f32 %v5064_v48, %v5066_v49  ;;  %v5330_v48 = vld [vmem:[#allocation2 + $0x78] sm:$0xff] }
 0x1c4   : > { %v5070_v51 = vpop.f32.mrf.mxu0 }
 0x1c5   : > { %6444 = vst [vmem:[#allocation31_spill] sm:$0xff] %v5070_v51  ;;  %1404 = vmax.xlane.f32.xlu1 %v1403_v50 }
 0x1c6   : > { %v5072_v52 = vpop.f32.mrf.mxu0 }
 0x1c7   : > { %6445 = vst [vmem:[#allocation32_spill] sm:$0xff] %v5072_v52  ;;  %v1406_v53 = vmax.f32 %v5070_v51, %v5072_v52  ;;  %v5320_v51 = vld [vmem:[#allocation2 + $0x70] sm:$0xff] }
 0x1c8   : > { %v5076_v54 = vpop.f32.mrf.mxu0 }
 0x1c9   : > { %6446 = vst [vmem:[#allocation33_spill] sm:$0xff] %v5076_v54  ;;  %1407 = vmax.xlane.f32.xlu0 %v1406_v53 }
 0x1ca   : > { %v5078_v55 = vpop.f32.mrf.mxu0 }
 0x1cb   : > { %6447 = vst [vmem:[#allocation34_spill] sm:$0xff] %v5078_v55  ;;  %v1409_v56 = vmax.f32 %v5076_v54, %v5078_v55  ;;  %v5310_v54 = vld [vmem:[#allocation2 + $0x68] sm:$0xff] }
 0x1cc   : > { %v5082_v57 = vpop.f32.mrf.mxu0 }
 0x1cd   : > { %6448 = vst [vmem:[#allocation35_spill] sm:$0xff] %v5082_v57  ;;  %1410 = vmax.xlane.f32.xlu1 %v1409_v56 }
 0x1ce   : > { %v5084_v58 = vpop.f32.mrf.mxu0 }
 0x1cf   : > { %6449 = vst [vmem:[#allocation36_spill] sm:$0xff] %v5084_v58  ;;  %v1412_v59 = vmax.f32 %v5082_v57, %v5084_v58  ;;  %v5300_v57 = vld [vmem:[#allocation2 + $0x60] sm:$0xff] }
 0x1d0   : > { %v5088_v60 = vpop.f32.mrf.mxu0 }
 0x1d1   : > { %6450 = vst [vmem:[#allocation37_spill] sm:$0xff] %v5088_v60  ;;  %1413 = vmax.xlane.f32.xlu0 %v1412_v59 }
 0x1d2   : > { %v5090_v61 = vpop.f32.mrf.mxu0 }
 0x1d3   : > { %6451 = vst [vmem:[#allocation38_spill] sm:$0xff] %v5090_v61  ;;  %v1415_v62 = vmax.f32 %v5088_v60, %v5090_v61  ;;  %v5290_v60 = vld [vmem:[#allocation2 + $0x58] sm:$0xff] }
 0x1d4   : > { %v5094_v63 = vpop.f32.mrf.mxu0 }
 0x1d5   : > { %6452 = vst [vmem:[#allocation39_spill] sm:$0xff] %v5094_v63  ;;  %1416 = vmax.xlane.f32.xlu1 %v1415_v62 }
 0x1d6   : > { %v5096_v2 = vpop.f32.mrf.mxu0 }
 0x1d7   : > { %6453 = vst [vmem:[#allocation40_spill] sm:$0xff] %v5096_v2  ;;  %v1418_v3 = vmax.f32 %v5094_v63, %v5096_v2  ;;  %v5280_v63 = vld [vmem:[#allocation2 + $0x50] sm:$0xff] }
 0x1d8   : > { %v5100_v6 = vpop.f32.mrf.mxu0 }
 0x1d9   : > { %6454 = vst [vmem:[#allocation41_spill] sm:$0xff] %v5100_v6  ;;  %1419 = vmax.xlane.f32.xlu0 %v1418_v3 }
 0x1da   : > { %v5102_v9 = vpop.f32.mrf.mxu0 }
 0x1db   : > { %6455 = vst [vmem:[#allocation42_spill] sm:$0xff] %v5102_v9  ;;  %v1421_v12 = vmax.f32 %v5100_v6, %v5102_v9  ;;  %v5270_v6 = vld [vmem:[#allocation2 + $0x48] sm:$0xff] }
 0x1dc   : > { %v5106_v15 = vpop.f32.mrf.mxu0 }
 0x1dd   : > { %6456 = vst [vmem:[#allocation43_spill] sm:$0xff] %v5106_v15  ;;  %1422 = vmax.xlane.f32.xlu1 %v1421_v12 }
 0x1de   : > { %v5108_v16 = vpop.f32.mrf.mxu0 }
 0x1df   : > { %6457 = vst [vmem:[#allocation44_spill] sm:$0xff] %v5108_v16  ;;  %v1424_v19 = vmax.f32 %v5106_v15, %v5108_v16  ;;  %v5250_v15 = vld [vmem:[#allocation2 + $0x38] sm:$0xff] }
 0x1e0   : > { %v5112_v22 = vpop.f32.mrf.mxu0 }
 0x1e1   : > { %6458 = vst [vmem:[#allocation45_spill] sm:$0xff] %v5112_v22  ;;  %1425 = vmax.xlane.f32.xlu0 %v1424_v19 }
 0x1e2   : > { %v5114_v24 = vpop.f32.mrf.mxu0 }
 0x1e3   : > { %6459 = vst [vmem:[#allocation46_spill] sm:$0xff] %v5114_v24  ;;  %v1427_v26 = vmax.f32 %v5112_v22, %v5114_v24  ;;  %v4150_v22 = vld [vmem:[%s5167_s3] sm:$0xff]  }
 0x1e4   : > { %v5118_v29 = vpop.f32.mrf.mxu0 }
 0x1e5   : > { %6460 = vst [vmem:[#allocation47_spill] sm:$0xff] %v5118_v29  ;;  %1428 = vmax.xlane.f32.xlu1 %v1427_v26 }
 0x1e6   : > { %v5120_v32 = vpop.f32.mrf.mxu0 }
 0x1e7   : > { %6461 = vst [vmem:[#allocation48_spill] sm:$0xff] %v5120_v32  ;;  %v1430_v35 = vmax.f32 %v5118_v29, %v5120_v32  ;;  %v4148_v29 = vld [vmem:[%s5167_s3 + $0x8] sm:$0xff]  }
 0x1e8   : > { %v5124_v38 = vpop.f32.mrf.mxu0 }
 0x1e9   : > { %6462 = vst [vmem:[#allocation49_spill] sm:$0xff] %v5124_v38  ;;  %1431 = vmax.xlane.f32.xlu0 %v1430_v35 }
 0x1ea   : > { %v5126_v41 = vpop.f32.mrf.mxu0 }
 0x1eb   : > { %6463 = vst [vmem:[#allocation50_spill] sm:$0xff] %v5126_v41  ;;  %v1433_v44 = vmax.f32 %v5124_v38, %v5126_v41  ;;  %v4146_v38 = vld [vmem:[%s5167_s3 + $0x10] sm:$0xff]  }
 0x1ec   : > { %v5130_v47 = vpop.f32.mrf.mxu0 }
 0x1ed   : > { %6464 = vst [vmem:[#allocation51_spill] sm:$0xff] %v5130_v47  ;;  %1434 = vmax.xlane.f32.xlu1 %v1433_v44 }
 0x1ee   : > { %v5132_v50 = vpop.f32.mrf.mxu0 }
 0x1ef   : > { %6465 = vst [vmem:[#allocation52_spill] sm:$0xff] %v5132_v50  ;;  %v1436_v53 = vmax.f32 %v5130_v47, %v5132_v50 }
 0x1f0   : > { %v5136_v56 = vpop.f32.mrf.mxu0 }
 0x1f1   : > { %6466 = vst [vmem:[#allocation53_spill] sm:$0xff] %v5136_v56  ;;  %1437 = vmax.xlane.f32.xlu0 %v1436_v53 }
 0x1f2   : > { %v5138_v59 = vpop.f32.mrf.mxu0 }
 0x1f3   : > { %6467 = vst [vmem:[#allocation54_spill] sm:$0xff] %v5138_v59  ;;  %v1439_v62 = vmax.f32 %v5136_v56, %v5138_v59 }
 0x1f4   : > { %v5142_v3 = vpop.f32.mrf.mxu0 }
 0x1f5   : > { %6468 = vst [vmem:[#allocation55_spill] sm:$0xff] %v5142_v3  ;;  %1440 = vmax.xlane.f32.xlu1 %v1439_v62 }
 0x1f6   : > { %v5144_v12 = vpop.f32.mrf.mxu0 }
 0x1f7   : > { %6469 = vst [vmem:[#allocation56_spill] sm:$0xff] %v5144_v12  ;;  %v1442_v19 = vmax.f32 %v5142_v3, %v5144_v12 }
 0x1f8   : > { %v5148_v26 = vpop.f32.mrf.mxu0 }
 0x1f9   : > { %6470 = vst [vmem:[#allocation57_spill] sm:$0xff] %v5148_v26  ;;  %1443 = vmax.xlane.f32.xlu0 %v1442_v19 }
 0x1fa   : > { %v5150_v35 = vpop.f32.mrf.mxu0 }
 0x1fb   : > { %6471 = vst [vmem:[#allocation58_spill] sm:$0xff] %v5150_v35  ;;  %v1445_v44 = vmax.f32 %v5148_v26, %v5150_v35  ;;  %v5176_v35 = vld [vmem:[#allocation2 + $0x8] sm:$0xff] }
 0x1fc   : > { %v5154_v53 = vpop.f32.mrf.mxu0  ;;  %v4140_v26 = vld [vmem:[%s5167_s3 + $0x28] sm:$0xff]  }
 0x1fd   : > { %6472 = vst [vmem:[#allocation59_spill] sm:$0xff] %v5154_v53  ;;  %1446 = vmax.xlane.f32.xlu1 %v1445_v44  ;;  %v4135_v44 = vld [vmem:[%s5167_s3 + $0x78] sm:$0xff]  }
 0x1fe   : > { %v5156_v59 = vpop.f32.mrf.mxu0  ;;  %3897 = vmatprep.subr.bf16.mxu1 %v4135_v44  ;;  %v4141_v44 = vld [vmem:[%s5167_s3 + $0x60] sm:$0xff]  }
 0x1ff   : > { %6473 = vst [vmem:[#allocation60_spill] sm:$0xff] %v5156_v59  ;;  %v1448_v62 = vmax.f32 %v5154_v53, %v5156_v59  ;;  %v4136_v59 = vld [vmem:[%s5167_s3 + $0x38] sm:$0xff]   ;;  %v4138_v53 = vld [vmem:[%s5167_s3 + $0x30] sm:$0xff]  }
 0x200   : > { %v5160_v56 = vpop.f32.mrf.mxu0  ;;  %3898 = vmatpush3.bf16.msra.mxu1 %v4136_v59 }
 0x201   : > { %6474 = vst [vmem:[#allocation61_spill] sm:$0xff] %v5160_v56  ;;  %1449 = vmax.xlane.f32.xlu0 %v1448_v62  ;;  %v4137_v62 = vld [vmem:[%s5167_s3 + $0x70] sm:$0xff]  }
 0x202   : > { %v5162_v12 = vpop.f32.mrf.mxu0  ;;  %3899 = vmatprep.subr.bf16.mxu1 %v4137_v62  ;;  %v4142_v62 = vld [vmem:[%s5167_s3 + $0x20] sm:$0xff]  }
 0x203   : > { %6475 = vst [vmem:[#allocation62_spill] sm:$0xff] %v5162_v12  ;;  %v1451_v19 = vmax.f32 %v5160_v56, %v5162_v12  ;;  %v5173_v12 = vld [vmem:[#allocation2] sm:$0xff] }
 0x204   : > { %3900 = vmatpush3.bf16.msra.mxu1 %v4138_v53 }
 0x205   : > { %1452 = vmax.xlane.f32.xlu1 %v1451_v19  ;;  %v4139_v19 = vld [vmem:[%s5167_s3 + $0x68] sm:$0xff]  }
 0x206   : > { %3901 = vmatprep.subr.bf16.mxu1 %v4139_v19  ;;  %v4143_v19 = vld [vmem:[%s5167_s3 + $0x58] sm:$0xff]  }
 0x208   : > { %3902 = vmatpush3.bf16.msra.mxu1 %v4140_v26  ;;  %v4145_v26 = vld [vmem:[%s5167_s3 + $0x50] sm:$0xff]  }
 0x209   : > { %3903 = vmatprep.subr.bf16.mxu1 %v4141_v44  ;;  %v5204_v44 = vld [vmem:[#allocation2 + $0x18] sm:$0xff] }
 0x20c   : > { %3904 = vmatpush3.bf16.msra.mxu1 %v4142_v62  ;;  %v4147_v62 = vld [vmem:[%s5167_s3 + $0x48] sm:$0xff]  }
 0x20d   : > { %3905 = vmatprep.subr.bf16.mxu1 %v4143_v19  ;;  %v5216_v19 = vld [vmem:[#allocation2 + $0x20] sm:$0xff] }
 0x212   : > { %v1360_v56 = vpop.xlane.xlu0 %1359 }
 0x213   : > { %v5180_v3 = vmax.f32 %v5173_v12, %v1360_v56  ;;  %v5192_v56 = vld [vmem:[#allocation2 + $0x10] sm:$0xff] }
 0x215   : > { %2768 = vst.msk [vmem:[#allocation2] sm:$0xff] %vm780_vm0, %v5180_v3  ;;  %v6477_v23 = vsub.f32 %v5173_v12, %v5180_v3 }
 0x216   : > { %v1363_v53 = vpop.xlane.xlu0 %1362 }
 0x217   : > { %v5189_v50 = vmax.f32 %v5176_v35, %v1363_v53  ;;  %1584 = vperm.xlu0 %4101, %v5180_v3   ;;  %v4144_v53 = vld [vmem:[%s5167_s3 + $0x18] sm:$0xff]   ;;  %v1518_v21 = vmul.f32 1.442695, %v6477_v23  ;;  %v5415_v23 = vld [vmem:[#allocation2 + $0xc0] sm:$0xff] }
 0x218   : > { %3906 = vmatpush3.bf16.msra.mxu1 %v4144_v53  ;;  %v4149_v53 = vld [vmem:[%s5167_s3 + $0x40] sm:$0xff]  }
 0x219   : > { %2769 = vst.msk [vmem:[#allocation2 + $0x8] sm:$0xff] %vm780_vm0, %v5189_v50  ;;  %1589 = vperm.xlu1 %4102, %v5189_v50   ;;  %3907 = vmatprep.subr.bf16.mxu1 %v4145_v26  ;;  %v5228_v26 = vld [vmem:[#allocation2 + $0x28] sm:$0xff]  ;;  %v6476_v30 = vsub.f32 %v5176_v35, %v5189_v50 }
 0x21a   : > { %v1366_v59 = vpop.xlane.xlu1 %1365 }
 0x21b   : > { %v5202_v47 = vmax.f32 %v5192_v56, %v1366_v59  ;;  %v1520_v28 = vmul.f32 1.442695, %v6476_v30  ;;  %v5404_v30 = vld [vmem:[#allocation2 + $0xb8] sm:$0xff] }
 0x21c   : > { %3908 = vmatpush3.bf16.msra.mxu1 %v4146_v38 }
 0x21d   : > { %2770 = vst.msk [vmem:[#allocation2 + $0x10] sm:$0xff] %vm780_vm0, %v5202_v47  ;;  %1594 = vperm.xlu1 %4102, %v5202_v47   ;;  %3909 = vmatprep.subr.bf16.mxu1 %v4147_v62  ;;  %4151 = vpow2.f32 %v1520_v28  ;;  %v6478_v35 = vsub.f32 %v5192_v56, %v5202_v47  ;;  %v5426_v47 = vld [vmem:[#allocation2 + $0xc8] sm:$0xff] }
 0x21e   : > { %v1369_v41 = vpop.xlane.xlu1 %1368  ;;  %4153 = vpow2.f32 %v1518_v21 }
 0x21f   : > { %v5214_v59 = vmax.f32 %v5204_v44, %v1369_v41 }
 0x220   : > { %3910 = vmatpush3.bf16.msra.mxu1 %v4148_v29  ;;  %v5260_v29 = vld [vmem:[#allocation2 + $0x40] sm:$0xff] }
 0x221   : > { %2771 = vst.msk [vmem:[#allocation2 + $0x18] sm:$0xff] %vm780_vm0, %v5214_v59  ;;  %1599 = vperm.xlu1 %4102, %v5214_v59   ;;  %3911 = vmatprep.subr.bf16.mxu1 %v4149_v53  ;;  %v6479_v12 = vsub.f32 %v5204_v44, %v5214_v59  ;;  %v5439_v59 = vld [vmem:[#allocation2 + $0xd0] sm:$0xff] }
 0x222   : > { %v1372_v32 = vpop.xlane.xlu0 %1371 }
 0x223   : > { %v5226_v41 = vmax.f32 %v5216_v19, %v1372_v32  ;;  %v5240_v32 = vld [vmem:[#allocation2 + $0x30] sm:$0xff]  ;;  %v1524_v21 = vmul.f32 1.442695, %v6479_v12 }
 0x224   : > { %3912 = vmatpush3.bf16.msra.mxu1 %v4150_v22 }
 0x225   : > { %2772 = vst.msk [vmem:[#allocation2 + $0x20] sm:$0xff] %vm780_vm0, %v5226_v41  ;;  %1604 = vperm.xlu1 %4102, %v5226_v41  }
 0x226   : > { %v1375_v24 = vpop.xlane.xlu1 %1374 }
 0x227   : > { %v5238_v16 = vmax.f32 %v5228_v26, %v1375_v24 }
 0x229   : > { %2773 = vst.msk [vmem:[#allocation2 + $0x28] sm:$0xff] %vm780_vm0, %v5238_v16  ;;  %1609 = vperm.xlu1 %4102, %v5238_v16  }
 0x22a   : > { %v1378_v62 = vpop.xlane.xlu0 %1377  ;;  %v5437_v44 = vpop.eup %4151 }
 0x22b   : > { %v5248_v38 = vmax.f32 %v5240_v32, %v1378_v62  ;;  %6481 = vst [vmem:[#allocation63_spill] sm:$0xff] %v5437_v44 }
 0x22d   : > { %2774 = vst.msk [vmem:[#allocation2 + $0x30] sm:$0xff] %vm780_vm0, %v5248_v38  ;;  %1614 = vperm.xlu1 %4102, %v5248_v38  }
 0x22e   : > { %v1381_v22 = vpop.xlane.xlu1 %1380 }
 0x22f   : > { %v5258_v53 = vmax.f32 %v5250_v15, %v1381_v22 }
 0x231   : > { %2775 = vst.msk [vmem:[#allocation2 + $0x38] sm:$0xff] %vm780_vm0, %v5258_v53  ;;  %1619 = vperm.xlu1 %4102, %v5258_v53  }
 0x232   : > { %v1384_v24 = vpop.xlane.xlu0 %1383 }
 0x233   : > { %v5268_v9 = vmax.f32 %v5260_v29, %v1384_v24 }
 0x235   : > { %2776 = vst.msk [vmem:[#allocation2 + $0x40] sm:$0xff] %vm780_vm0, %v5268_v9  ;;  %1624 = vperm.xlu1 %4102, %v5268_v9  }
 0x236   : > { %v1387_v62 = vpop.xlane.xlu1 %1386 }
 0x237   : > { %v5278_v2 = vmax.f32 %v5270_v6, %v1387_v62 }
 0x239   : > { %2777 = vst.msk [vmem:[#allocation2 + $0x48] sm:$0xff] %vm780_vm0, %v5278_v2  ;;  %1629 = vperm.xlu0 %4101, %v5278_v2  }
 0x23a   : > { %v1390_v22 = vpop.xlane.xlu0 %1389 }
 0x23b   : > { %v5288_v61 = vmax.f32 %v5280_v63, %v1390_v22 }
 0x23d   : > { %2778 = vst.msk [vmem:[#allocation2 + $0x50] sm:$0xff] %vm780_vm0, %v5288_v61  ;;  %1634 = vperm.xlu1 %4102, %v5288_v61  }
 0x23e   : > { %v1393_v24 = vpop.xlane.xlu1 %1392 }
 0x23f   : > { %v5298_v58 = vmax.f32 %v5290_v60, %v1393_v24 }
 0x241   : > { %2779 = vst.msk [vmem:[#allocation2 + $0x58] sm:$0xff] %vm780_vm0, %v5298_v58  ;;  %1639 = vperm.xlu0 %4101, %v5298_v58  }
 0x242   : > { %v1396_v62 = vpop.xlane.xlu0 %1395 }
 0x243   : > { %v5308_v55 = vmax.f32 %v5300_v57, %v1396_v62 }
 0x245   : > { %2780 = vst.msk [vmem:[#allocation2 + $0x60] sm:$0xff] %vm780_vm0, %v5308_v55  ;;  %1644 = vperm.xlu1 %4102, %v5308_v55  }
 0x246   : > { %v1399_v22 = vpop.xlane.xlu1 %1398 }
 0x247   : > { %v5318_v52 = vmax.f32 %v5310_v54, %v1399_v22 }
 0x249   : > { %2781 = vst.msk [vmem:[#allocation2 + $0x68] sm:$0xff] %vm780_vm0, %v5318_v52  ;;  %1649 = vperm.xlu0 %4101, %v5318_v52  }
 0x24a   : > { %v1402_v24 = vpop.xlane.xlu0 %1401 }
 0x24b   : > { %v5328_v49 = vmax.f32 %v5320_v51, %v1402_v24  ;;  %v5358_v24 = vld [vmem:[#allocation2 + $0x90] sm:$0xff] }
 0x24d   : > { %2782 = vst.msk [vmem:[#allocation2 + $0x70] sm:$0xff] %vm780_vm0, %v5328_v49  ;;  %1654 = vperm.xlu1 %4102, %v5328_v49  }
 0x24e   : > { %v1405_v62 = vpop.xlane.xlu1 %1404 }
 0x24f   : > { %v5338_v46 = vmax.f32 %v5330_v48, %v1405_v62 }
 0x251   : > { %2783 = vst.msk [vmem:[#allocation2 + $0x78] sm:$0xff] %vm780_vm0, %v5338_v46  ;;  %1659 = vperm.xlu0 %4101, %v5338_v46  }
 0x252   : > { %v1408_v22 = vpop.xlane.xlu0 %1407 }
 0x253   : > { %v5348_v43 = vmax.f32 %v5340_v45, %v1408_v22 }
 0x255   : > { %2784 = vst.msk [vmem:[#allocation2 + $0x80] sm:$0xff] %vm780_vm0, %v5348_v43  ;;  %1664 = vperm.xlu1 %4102, %v5348_v43  }
 0x256   : > { %v1411_v62 = vpop.xlane.xlu1 %1410 }
 0x257   : > { %v5356_v40 = vmax.f32 %v5350_v42, %v1411_v62 }
 0x259   : > { %2785 = vst.msk [vmem:[#allocation2 + $0x88] sm:$0xff] %vm780_vm0, %v5356_v40  ;;  %1669 = vperm.xlu0 %4101, %v5356_v40  }
 0x25a   : > { %v1414_v22 = vpop.xlane.xlu0 %1413 }
 0x25b   : > { %v5364_v39 = vmax.f32 %v5358_v24, %v1414_v22 }
 0x25d   : > { %2786 = vst.msk [vmem:[#allocation2 + $0x90] sm:$0xff] %vm780_vm0, %v5364_v39  ;;  %1674 = vperm.xlu1 %4102, %v5364_v39  }
 0x25e   : > { %v1417_v62 = vpop.xlane.xlu1 %1416 }
 0x25f   : > { %v5372_v36 = vmax.f32 %v5366_v37, %v1417_v62 }
 0x261   : > { %2787 = vst.msk [vmem:[#allocation2 + $0x98] sm:$0xff] %vm780_vm0, %v5372_v36  ;;  %1679 = vperm.xlu0 %4101, %v5372_v36  }
 0x262   : > { %v1420_v22 = vpop.xlane.xlu0 %1419 }
 0x263   : > { %v5380_v33 = vmax.f32 %v5374_v34, %v1420_v22 }
 0x265   : > { %2788 = vst.msk [vmem:[#allocation2 + $0xa0] sm:$0xff] %vm780_vm0, %v5380_v33  ;;  %1684 = vperm.xlu1 %4102, %v5380_v33  }
 0x266   : > { %v1423_v62 = vpop.xlane.xlu1 %1422 }
 0x267   : > { %v5391_v27 = vmax.f32 %v5382_v31, %v1423_v62  ;;  %v1522_v62 = vmul.f32 1.442695, %v6478_v35 }
 0x269   : > { %2789 = vst.msk [vmem:[#allocation2 + $0xa8] sm:$0xff] %vm780_vm0, %v5391_v27  ;;  %1689 = vperm.xlu0 %4101, %v5391_v27   ;;  %4155 = vpow2.f32 %v1522_v62 }
 0x26a   : > { %v1426_v22 = vpop.xlane.xlu0 %1425  ;;  %4157 = vpow2.f32 %v1524_v21  ;;  %v5451_v21 = vpop.eup %4153 }
 0x26b   : > { %v5402_v20 = vmax.f32 %v5393_v25, %v1426_v22  ;;  %6483 = vst [vmem:[#allocation64_spill] sm:$0xff] %v5451_v21 }
 0x26d   : > { %2790 = vst.msk [vmem:[#allocation2 + $0xb0] sm:$0xff] %vm780_vm0, %v5402_v20  ;;  %1694 = vperm.xlu1 %4102, %v5402_v20  }
 0x26e   : > { %v1429_v50 = vpop.xlane.xlu1 %1428 }
 0x26f   : > { %v5413_v3 = vmax.f32 %v5404_v30, %v1429_v50  ;;  %v6480_v50 = vsub.f32 %v5216_v19, %v5226_v41  ;;  %v6482_v19 = vsub.f32 %v5228_v26, %v5238_v16  ;;  %v6484_v16 = vsub.f32 %v5240_v32, %v5248_v38 }
 0x270   : > { %v6486_v32 = vsub.f32 %v5260_v29, %v5268_v9 }
 0x271   : > { %2791 = vst.msk [vmem:[#allocation2 + $0xb8] sm:$0xff] %vm780_vm0, %v5413_v3  ;;  %1699 = vperm.xlu0 %4101, %v5413_v3   ;;  %v1526_v35 = vmul.f32 1.442695, %v6480_v50  ;;  %v1528_v41 = vmul.f32 1.442695, %v6482_v19  ;;  %v5467_v19 = vld [vmem:[#allocation2 + $0xe0] sm:$0xff] }
 0x272   : > { %v1432_v28 = vpop.xlane.xlu0 %1431  ;;  %v1530_v26 = vmul.f32 1.442695, %v6484_v16 }
 0x273   : > { %v5424_v22 = vmax.f32 %v5415_v23, %v1432_v28  ;;  %4159 = vpow2.f32 %v1526_v35 }
 0x274   : > { %4161 = vpow2.f32 %v1528_v41  ;;  %v6485_v41 = vsub.f32 %v5250_v15, %v5258_v53  ;;  %v6487_v15 = vsub.f32 %v5270_v6, %v5278_v2  ;;  %v6488_v53 = vsub.f32 %v5280_v63, %v5288_v61 }
 0x275   : > { %2792 = vst.msk [vmem:[#allocation2 + $0xc0] sm:$0xff] %vm780_vm0, %v5424_v22  ;;  %1704 = vperm.xlu1 %4102, %v5424_v22   ;;  %4163 = vpow2.f32 %v1530_v26  ;;  %v6489_v2 = vsub.f32 %v5290_v60, %v5298_v58  ;;  %v6490_v6 = vsub.f32 %v5300_v57, %v5308_v55  ;;  %v6491_v58 = vsub.f32 %v5310_v54, %v5318_v52 }
 0x276   : > { %v1435_v56 = vpop.xlane.xlu1 %1434  ;;  %v1536_v9 = vmul.f32 1.442695, %v6487_v15  ;;  %v1538_v26 = vmul.f32 1.442695, %v6488_v53  ;;  %v5520_v53 = vld [vmem:[#allocation2 + $0xf8] sm:$0xff]  ;;  %v6492_v55 = vsub.f32 %v5320_v51, %v5328_v49  ;;  %v6493_v52 = vsub.f32 %v5330_v48, %v5338_v46 }
 0x277   : > { %v5435_v62 = vmax.f32 %v5426_v47, %v1435_v56  ;;  %v5453_v56 = vld [vmem:[#allocation2 + $0xd8] sm:$0xff]  ;;  %v1540_v61 = vmul.f32 1.442695, %v6489_v2  ;;  %v1544_v60 = vmul.f32 1.442695, %v6491_v58  ;;  %v1504_v48 = vsub.f32 %v5358_v24, %v5364_v39 }
 0x278   : > { %v1546_v57 = vmul.f32 1.442695, %v6492_v55  ;;  %v1548_v54 = vmul.f32 1.442695, %v6493_v52 }
 0x279   : > { %2793 = vst.msk [vmem:[#allocation2 + $0xc8] sm:$0xff] %vm780_vm0, %v5435_v62  ;;  %1709 = vperm.xlu0 %4101, %v5435_v62   ;;  %2198 = vperm.xlu1 %4102, %v5437_v44  }
 0x27a   : > { %v1438_v28 = vpop.xlane.xlu0 %1437 }
 0x27b   : > { %v5449_v12 = vmax.f32 %v5439_v59, %v1438_v28  ;;  %v5465_v28 = vpop.eup %4155 }
 0x27c   : > { %v5482_v44 = vpop.eup %4157 }
 0x27d   : > { %2794 = vst.msk [vmem:[#allocation2 + $0xd0] sm:$0xff] %vm780_vm0, %v5449_v12  ;;  %2193 = vperm.xlu0 %4101, %v5451_v21   ;;  %1714 = vperm.xlu1 %4102, %v5449_v12   ;;  %v1532_v21 = vmul.f32 1.442695, %v6485_v41 }
 0x27e   : > { %v1441_v50 = vpop.xlane.xlu1 %1440 }
 0x27f   : > { %v5463_v35 = vmax.f32 %v5453_v56, %v1441_v50  ;;  %v1534_v50 = vmul.f32 1.442695, %v6486_v32  ;;  %4165 = vpow2.f32 %v1532_v21  ;;  %v5501_v32 = vld [vmem:[#allocation2 + $0xf0] sm:$0xff]  ;;  %v1542_v21 = vmul.f32 1.442695, %v6490_v6 }
 0x280   : > { %v1505_v6 = vsub.f32 %v5366_v37, %v5372_v36  ;;  %v1554_v36 = vmul.f32 1.442695, %v1504_v48 }
 0x281   : > { %2795 = vst.msk [vmem:[#allocation2 + $0xd8] sm:$0xff] %vm780_vm0, %v5463_v35  ;;  %1719 = vperm.xlu0 %4101, %v5463_v35   ;;  %2203 = vperm.xlu1 %4102, %v5465_v28   ;;  %4167 = vpow2.f32 %v1534_v50 }
 0x282   : > { %v1444_v38 = vpop.xlane.xlu0 %1443  ;;  %4169 = vpow2.f32 %v1536_v9 }
 0x283   : > { %v5480_v16 = vmax.f32 %v5467_v19, %v1444_v38  ;;  %v5499_v38 = vpop.eup %4159  ;;  %4171 = vpow2.f32 %v1538_v26 }
 0x284   : > { %v5516_v15 = vpop.eup %4161  ;;  %4173 = vpow2.f32 %v1540_v61 }
 0x285   : > { %2796 = vst.msk [vmem:[#allocation2 + $0xe0] sm:$0xff] %vm780_vm0, %v5480_v16  ;;  %2208 = vperm.xlu0 %4101, %v5482_v44   ;;  %1724 = vperm.xlu1 %4102, %v5480_v16   ;;  %4175 = vpow2.f32 %v1542_v21  ;;  %v5540_v26 = vpop.eup %4163 }
 0x286   : > { %v1447_v29 = vpop.xlane.xlu1 %1446  ;;  %4177 = vpow2.f32 %v1544_v60 }
 0x287   : > { %v5497_v41 = vmax.f32 %v5484_v18, %v1447_v29  ;;  %v1502_v29 = vsub.f32 %v5340_v45, %v5348_v43  ;;  %v1503_v43 = vsub.f32 %v5350_v42, %v5356_v40  ;;  %4179 = vpow2.f32 %v1546_v57 }
 0x288   : > { %4181 = vpow2.f32 %v1548_v54 }
 0x289   : > { %2797 = vst.msk [vmem:[#allocation2 + $0xe8] sm:$0xff] %vm780_vm0, %v5497_v41  ;;  %1729 = vperm.xlu0 %4101, %v5497_v41   ;;  %2213 = vperm.xlu1 %4102, %v5499_v38   ;;  %v1550_v2 = vmul.f32 1.442695, %v1502_v29  ;;  %v1552_v40 = vmul.f32 1.442695, %v1503_v43  ;;  %v1506_v29 = vsub.f32 %v5374_v34, %v5380_v33 }
 0x28a   : > { %v1450_v63 = vpop.xlane.xlu0 %1449  ;;  %v1556_v34 = vmul.f32 1.442695, %v1505_v6 }
 0x28b   : > { %v5514_v50 = vmax.f32 %v5501_v32, %v1450_v63  ;;  %4183 = vpow2.f32 %v1550_v2  ;;  %v1558_v57 = vmul.f32 1.442695, %v1506_v29 }
 0x28c   : > { %v5548_v46 = vpop.eup %4165  ;;  %4185 = vpow2.f32 %v1552_v40  ;;  %v1510_v40 = vsub.f32 %v5415_v23, %v5424_v22 }
 0x28d   : > { %2798 = vst.msk [vmem:[#allocation2 + $0xf0] sm:$0xff] %vm780_vm0, %v5514_v50  ;;  %2218 = vperm.xlu0 %4101, %v5516_v15   ;;  %1734 = vperm.xlu1 %4102, %v5514_v50  }
 0x28e   : > { %v1453_v45 = vpop.xlane.xlu1 %1452  ;;  %v5554_v63 = vpop.eup %4167  ;;  %v1566_v6 = vmul.f32 1.442695, %v1510_v40 }
 0x28f   : > { %v5538_v9 = vmax.f32 %v5520_v53, %v1453_v45  ;;  %v5566_v39 = vpop.eup %4169 }
 0x290   : > { %v5568_v33 = vpop.eup %4171 }
 0x291   : > { %2799 = vst.msk [vmem:[#allocation2 + $0xf8] sm:$0xff] %vm780_vm0, %v5538_v9  ;;  %2223 = vperm.xlu1 %4102, %v5540_v26   ;;  %1739 = vperm.xlu0 %4101, %v5538_v9  }
 0x292   : > { %v1585_v42 = vpop.permute.xlu0 %1584 }
 0x293   : > { %v1742_v51 = vsub.f32 %v4910_v0, %v1585_v42  ;;  %v1743_v61 = vsub.f32 %v4912_v1, %v1585_v42  ;;  %v1507_v0 = vsub.f32 %v5382_v31, %v5391_v27  ;;  %v5574_v27 = vpop.eup %4173  ;;  %v1508_v31 = vsub.f32 %v5393_v25, %v5402_v20 }
 0x294   : > { %v1590_v21 = vpop.permute.xlu1 %1589  ;;  %v5578_v54 = vpop.eup %4175  ;;  %v1511_v25 = vsub.f32 %v5426_v47, %v5435_v62  ;;  %v1512_v62 = vsub.f32 %v5439_v59, %v5449_v12  ;;  %v6494_v59 = vld [vmem:[#allocation10_spill] sm:$0xff] }
 0x295   : > { %v1806_v58 = vmul.f32 1.442695, %v1742_v51  ;;  %v1808_v60 = vmul.f32 1.442695, %v1743_v61  ;;  %v1744_v55 = vsub.f32 %v4948_v4, %v1590_v21  ;;  %2233 = vperm.xlu1 %4102, %v5554_v63   ;;  %2228 = vperm.xlu0 %4101, %v5548_v46   ;;  %v1745_v1 = vsub.f32 %v4950_v5, %v1590_v21  ;;  %v5588_v20 = vpop.eup %4177 }
 0x296   : > { %v1560_v5 = vmul.f32 1.442695, %v1507_v0  ;;  %v1568_v47 = vmul.f32 1.442695, %v1511_v25 }
 0x297   : > { %4187 = vpow2.f32 %v1806_v58  ;;  %v1810_v37 = vmul.f32 1.442695, %v1744_v55  ;;  %v1812_v4 = vmul.f32 1.442695, %v1745_v1 }
 0x298   : > { %4189 = vpow2.f32 %v1808_v60  ;;  %v1595_v24 = vpop.permute.xlu1 %1594 }
 0x299   : > { %4191 = vpow2.f32 %v1810_v37  ;;  %v1746_v43 = vsub.f32 %v4954_v7, %v1595_v24  ;;  %v1747_v45 = vsub.f32 %v4956_v8, %v1595_v24  ;;  %2243 = vperm.xlu1 %4102, %v5568_v33   ;;  %2238 = vperm.xlu0 %4101, %v5566_v39   ;;  %v1509_v7 = vsub.f32 %v5404_v30, %v5413_v3  ;;  %v5592_v30 = vpop.eup %4179 }
 0x29a   : > { %4193 = vpow2.f32 %v1812_v4  ;;  %v1562_v3 = vmul.f32 1.442695, %v1508_v31  ;;  %v5594_v22 = vpop.eup %4181  ;;  %v1570_v4 = vmul.f32 1.442695, %v1512_v62 }
 0x29b   : > { %4195 = vpow2.f32 %v1554_v36  ;;  %v1814_v52 = vmul.f32 1.442695, %v1746_v43  ;;  %v1816_v8 = vmul.f32 1.442695, %v1747_v45  ;;  %v5596_v61 = vpop.eup %4183  ;;  %v1514_v36 = vsub.f32 %v5467_v19, %v5480_v16 }
 0x29c   : > { %4197 = vpow2.f32 %v1556_v34  ;;  %v1600_v2 = vpop.permute.xlu1 %1599  ;;  %v5604_v58 = vpop.eup %4185 }
 0x29d   : > { %4199 = vpow2.f32 %v1558_v57  ;;  %v1748_v42 = vsub.f32 %v4960_v10, %v1600_v2  ;;  %v1749_v48 = vsub.f32 %v4962_v11, %v1600_v2  ;;  %2253 = vperm.xlu1 %4102, %v5578_v54   ;;  %2248 = vperm.xlu0 %4101, %v5574_v27   ;;  %v1564_v10 = vmul.f32 1.442695, %v1509_v7 }
 0x29e   : > { %4201 = vpow2.f32 %v1560_v5  ;;  %v1574_v7 = vmul.f32 1.442695, %v1514_v36 }
 0x29f   : > { %4203 = vpow2.f32 %v1814_v52  ;;  %v1818_v51 = vmul.f32 1.442695, %v1748_v42  ;;  %v1820_v23 = vmul.f32 1.442695, %v1749_v48  ;;  %v1516_v48 = vsub.f32 %v5501_v32, %v5514_v50 }
 0x2a0   : > { %4205 = vpow2.f32 %v1816_v8  ;;  %v1605_v11 = vpop.permute.xlu1 %1604  ;;  %v6497_v8 = vld [vmem:[#allocation12_spill] sm:$0xff] }
 0x2a1   : > { %4207 = vpow2.f32 %v1818_v51  ;;  %v1750_v21 = vsub.f32 %v4966_v13, %v1605_v11  ;;  %v1751_v29 = vsub.f32 %v4968_v14, %v1605_v11  ;;  %2263 = vperm.xlu1 %4102, %v5592_v30   ;;  %2258 = vperm.xlu0 %4101, %v5588_v20   ;;  %v1513_v13 = vsub.f32 %v5453_v56, %v5463_v35 }
 0x2a2   : > { %4209 = vpow2.f32 %v1820_v23  ;;  %v1515_v56 = vsub.f32 %v5484_v18, %v5497_v41  ;;  %v6496_v18 = vld [vmem:[#allocation11_spill] sm:$0xff]  ;;  %v1578_v50 = vmul.f32 1.442695, %v1516_v48 }
 0x2a3   : > { %4211 = vpow2.f32 %v1562_v3  ;;  %v1822_v60 = vmul.f32 1.442695, %v1750_v21  ;;  %v1824_v0 = vmul.f32 1.442695, %v1751_v29  ;;  %v1572_v43 = vmul.f32 1.442695, %v1513_v13 }
 0x2a4   : > { %v4188_v55 = vpop.eup %4187  ;;  %4213 = vpow2.f32 %v1564_v10  ;;  %v1610_v14 = vpop.permute.xlu1 %1609  ;;  %v1576_v42 = vmul.f32 1.442695, %v1515_v56  ;;  %v6501_v29 = vld [vmem:[#allocation14_spill] sm:$0xff] }
 0x2a5   : > { %v4190_v1 = vpop.eup %4189  ;;  %4215 = vpow2.f32 %v1566_v6  ;;  %v1752_v37 = vsub.f32 %v4972_v17, %v1610_v14  ;;  %v1753_v12 = vsub.f32 %v6494_v59, %v1610_v14  ;;  %2273 = vperm.xlu1 %4102, %v5596_v61   ;;  %2268 = vperm.xlu0 %4101, %v5594_v22   ;;  %v6500_v6 = vld [vmem:[#allocation13_spill] sm:$0xff]  ;;  %v6504_v59 = vld [vmem:[#allocation15_spill] sm:$0xff] }
 0x2a6   : > { %v4192_v34 = vpop.eup %4191  ;;  %4217 = vpow2.f32 %v1568_v47  ;;  %v5616_v35 = vadd.f32 %v4190_v1, %v4188_v55 }
 0x2a7   : > { %v4194_v24 = vpop.eup %4193  ;;  %4219 = vpow2.f32 %v1822_v60  ;;  %v1826_v57 = vmul.f32 1.442695, %v1752_v37  ;;  %v1828_v19 = vmul.f32 1.442695, %v1753_v12  ;;  %v2383_v16 = vpack.c.bf16 %v4192_v34, %v4188_v55 }
 0x2a8   : > { %v5618_v17 = vpop.eup %4195  ;;  %4221 = vpow2.f32 %v1824_v0  ;;  %v1615_v45 = vpop.permute.xlu1 %1614  ;;  %v2384_v5 = vpack.c.bf16 %v4194_v24, %v4190_v1  ;;  %v5620_v31 = vadd.f32 %v4194_v24, %v4192_v34  ;;  %v6505_v34 = vld [vmem:[#allocation16_spill] sm:$0xff] }
 0x2a9   : > { %v5622_v52 = vpop.eup %4197  ;;  %4223 = vpow2.f32 %v1826_v57  ;;  %v1754_v41 = vsub.f32 %v6496_v18, %v1615_v45  ;;  %v1755_v2 = vsub.f32 %v6497_v8, %v1615_v45  ;;  %2283 = vperm.xlu1 %4102, %v5618_v17   ;;  %2278 = vperm.xlu0 %4101, %v5604_v58   ;;  %v6509_v18 = vld [vmem:[#allocation18_spill] sm:$0xff] }
 0x2aa   : > { %6495 = vst [vmem:[#allocation10_spill] sm:$0xff] %v5622_v52  ;;  %v5628_v40 = vpop.eup %4199  ;;  %4225 = vpow2.f32 %v1828_v19  ;;  %2575 = vmatprep.mubr.bf16.mxu1 %v2384_v5  ;;  %v6508_v5 = vld [vmem:[#allocation17_spill] sm:$0xff] }
 0x2ab   : > { %6498 = vst [vmem:[#allocation11_spill] sm:$0xff] %v5628_v40  ;;  %v5632_v25 = vpop.eup %4201  ;;  %4227 = vpow2.f32 %v1570_v4  ;;  %v1830_v3 = vmul.f32 1.442695, %v1754_v41  ;;  %2576 = vmatmul.mubr.bf16.vlgmr.msra.gmra.mxu1 %v2383_v16  ;;  %v1832_v23 = vmul.f32 1.442695, %v1755_v2 }
 0x2ac   : > { %6499 = vst [vmem:[#allocation12_spill] sm:$0xff] %v5632_v25  ;;  %v5634_v51 = vpop.eup %4203  ;;  %4229 = vpow2.f32 %v1572_v43  ;;  %v1620_v10 = vpop.permute.xlu1 %1619 }
 0x2ad   : > { %v5636_v11 = vpop.eup %4205  ;;  %4231 = vpow2.f32 %v1574_v7  ;;  %v1756_v21 = vsub.f32 %v6500_v6, %v1620_v10  ;;  %v1757_v47 = vsub.f32 %v6501_v29, %v1620_v10  ;;  %2293 = vperm.xlu1 %4102, %v5628_v40   ;;  %2288 = vperm.xlu0 %4101, %v5622_v52   ;;  %v6512_v29 = vld [vmem:[#allocation19_spill] sm:$0xff]  ;;  %v6538_v40 = vld [vmem:[#allocation42_spill] sm:$0xff] }
 0x2ae   : > { %v4208_v32 = vpop.eup %4207  ;;  %4233 = vpow2.f32 %v1576_v42 }
 0x2af   : > { %v4210_v62 = vpop.eup %4209  ;;  %4235 = vpow2.f32 %v1830_v3  ;;  %v1834_v60 = vmul.f32 1.442695, %v1756_v21  ;;  %v1836_v55 = vmul.f32 1.442695, %v1757_v47  ;;  %v2385_v13 = vpack.c.bf16 %v4208_v32, %v5634_v51 }
 0x2b0   : > { %v5643_v0 = vpop.eup %4211  ;;  %4237 = vpow2.f32 %v1832_v23  ;;  %v1625_v14 = vpop.permute.xlu1 %1624  ;;  %v2386_v1 = vpack.c.bf16 %v4210_v62, %v5636_v11  ;;  %v5646_v36 = vadd.f32 %v4210_v62, %v4208_v32  ;;  %v6513_v32 = vld [vmem:[#allocation20_spill] sm:$0xff] }
 0x2b1   : > { %6502 = vst [vmem:[#allocation13_spill] sm:$0xff] %v5643_v0  ;;  %v5648_v37 = vpop.eup %4213  ;;  %4239 = vpow2.f32 %v1834_v60  ;;  %v1758_v12 = vsub.f32 %v6504_v59, %v1625_v14  ;;  %v1759_v4 = vsub.f32 %v6505_v34, %v1625_v14  ;;  %2303 = vperm.xlu1 %4102, %v5643_v0   ;;  %2298 = vperm.xlu0 %4101, %v5632_v25   ;;  %v6534_v25 = vld [vmem:[#allocation38_spill] sm:$0xff] }
 0x2b2   : > { %6503 = vst [vmem:[#allocation14_spill] sm:$0xff] %v5648_v37  ;;  %v5654_v56 = vpop.eup %4215  ;;  %4241 = vpow2.f32 %v1836_v55  ;;  %2583 = vmatprep.mubr.bf16.mxu1 %v2386_v1 }
 0x2b3   : > { %6506 = vst [vmem:[#allocation15_spill] sm:$0xff] %v5654_v56  ;;  %v5656_v24 = vpop.eup %4217  ;;  %4243 = vpow2.f32 %v1578_v50  ;;  %v1838_v57 = vmul.f32 1.442695, %v1758_v12  ;;  %2584 = vmatmul.mubr.bf16.gmra.mxu1 %v2385_v13  ;;  %v1840_v16 = vmul.f32 1.442695, %v1759_v4  ;;  %v6516_v12 = vld [vmem:[#allocation21_spill] sm:$0xff] }
 0x2b4   : > { %6507 = vst [vmem:[#allocation16_spill] sm:$0xff] %v5656_v24  ;;  %v5658_v19 = vpop.eup %4219  ;;  %v1630_v43 = vpop.permute.xlu0 %1629  ;;  %v6517_v4 = vld [vmem:[#allocation22_spill] sm:$0xff] }
 0x2b5   : > { %v5660_v45 = vpop.eup %4221  ;;  %v1760_v7 = vsub.f32 %v6508_v5, %v1630_v43  ;;  %v1761_v41 = vsub.f32 %v6509_v18, %v1630_v43  ;;  %2313 = vperm.xlu1 %4102, %v5654_v56   ;;  %2308 = vperm.xlu0 %4101, %v5648_v37   ;;  %4245 = vpow2.f32 %v1838_v57 }
 0x2b6   : > { %v5666_v8 = vpop.eup %4223  ;;  %4247 = vpow2.f32 %v1840_v16 }
 0x2b7   : > { %v5668_v2 = vpop.eup %4225  ;;  %v1842_v42 = vmul.f32 1.442695, %v1760_v7  ;;  %v1844_v48 = vmul.f32 1.442695, %v1761_v41  ;;  %v2387_v3 = vpack.c.bf16 %v5666_v8, %v5658_v19 }
 0x2b8   : > { %v5672_v23 = vpop.eup %4227  ;;  %v1635_v10 = vpop.permute.xlu1 %1634  ;;  %v2388_v6 = vpack.c.bf16 %v5668_v2, %v5660_v45 }
 0x2b9   : > { %6510 = vst [vmem:[#allocation17_spill] sm:$0xff] %v5672_v23  ;;  %v5676_v21 = vpop.eup %4229  ;;  %4249 = vpow2.f32 %v1842_v42  ;;  %v1762_v47 = vsub.f32 %v6512_v29, %v1635_v10  ;;  %v1763_v50 = vsub.f32 %v6513_v32, %v1635_v10  ;;  %2323 = vperm.xlu1 %4102, %v5672_v23   ;;  %2318 = vperm.xlu0 %4101, %v5656_v24   ;;  %v6530_v24 = vld [vmem:[#allocation34_spill] sm:$0xff] }
 0x2ba   : > { %6511 = vst [vmem:[#allocation18_spill] sm:$0xff] %v5676_v21  ;;  %v5682_v62 = vpop.eup %4231  ;;  %4251 = vpow2.f32 %v1844_v48  ;;  %2591 = vmatprep.mubr.bf16.mxu1 %v2388_v6  ;;  %v6520_v6 = vld [vmem:[#allocation24_spill] sm:$0xff] }
 0x2bb   : > { %6514 = vst [vmem:[#allocation19_spill] sm:$0xff] %v5682_v62  ;;  %v5684_v60 = vpop.eup %4233  ;;  %v1846_v55 = vmul.f32 1.442695, %v1762_v47  ;;  %2592 = vmatmul.mubr.bf16.gmra.mxu1 %v2387_v3  ;;  %v1848_v14 = vmul.f32 1.442695, %v1763_v50  ;;  %v6519_v3 = vld [vmem:[#allocation23_spill] sm:$0xff] }
 0x2bc   : > { %6515 = vst [vmem:[#allocation20_spill] sm:$0xff] %v5684_v60  ;;  %v5686_v13 = vpop.eup %4235  ;;  %v1640_v1 = vpop.permute.xlu0 %1639 }
 0x2bd   : > { %v5688_v59 = vpop.eup %4237  ;;  %v1764_v34 = vsub.f32 %v6516_v12, %v1640_v1  ;;  %v1765_v57 = vsub.f32 %v6517_v4, %v1640_v1  ;;  %2333 = vperm.xlu1 %4102, %v5682_v62   ;;  %2328 = vperm.xlu0 %4101, %v5676_v21   ;;  %4253 = vpow2.f32 %v1846_v55  ;;  %v6521_v1 = vld [vmem:[#allocation25_spill] sm:$0xff] }
 0x2be   : > { %v5694_v16 = vpop.eup %4239  ;;  %4255 = vpow2.f32 %v1848_v14 }
 0x2bf   : > { %v5696_v43 = vpop.eup %4241  ;;  %v1850_v5 = vmul.f32 1.442695, %v1764_v34  ;;  %v1852_v7 = vmul.f32 1.442695, %v1765_v57  ;;  %v2389_v18 = vpack.c.bf16 %v5694_v16, %v5686_v13  ;;  %v6522_v34 = vld [vmem:[#allocation26_spill] sm:$0xff] }
 0x2c0   : > { %v5700_v41 = vpop.eup %4243  ;;  %v1645_v42 = vpop.permute.xlu1 %1644  ;;  %v2390_v48 = vpack.c.bf16 %v5696_v43, %v5688_v59 }
 0x2c1   : > { %6518 = vst [vmem:[#allocation21_spill] sm:$0xff] %v5700_v41  ;;  %4257 = vpow2.f32 %v1850_v5  ;;  %v1766_v10 = vsub.f32 %v6519_v3, %v1645_v42  ;;  %v1767_v29 = vsub.f32 %v6520_v6, %v1645_v42  ;;  %2343 = vperm.xlu1 %4102, %v5700_v41   ;;  %2338 = vperm.xlu0 %4101, %v5684_v60   ;;  %v6526_v41 = vld [vmem:[#allocation30_spill] sm:$0xff] }
 0x2c2   : > { %4259 = vpow2.f32 %v1852_v7  ;;  %2599 = vmatprep.mubr.bf16.mxu1 %v2390_v48  ;;  %v5708_v32 = vpop.eup %4245 }
 0x2c3   : > { %v1854_v47 = vmul.f32 1.442695, %v1766_v10  ;;  %2600 = vmatmul.mubr.bf16.gmra.mxu1 %v2389_v18  ;;  %v1856_v50 = vmul.f32 1.442695, %v1767_v29  ;;  %v5710_v14 = vpop.eup %4247  ;;  %v6523_v10 = vld [vmem:[#allocation27_spill] sm:$0xff]  ;;  %v6524_v29 = vld [vmem:[#allocation28_spill] sm:$0xff] }
 0x2c4   : > { %v1650_v55 = vpop.permute.xlu0 %1649 }
 0x2c5   : > { %v1768_v12 = vsub.f32 %v6521_v1, %v1650_v55  ;;  %v1769_v4 = vsub.f32 %v6522_v34, %v1650_v55  ;;  %4261 = vpow2.f32 %v1854_v47 }
 0x2c6   : > { %v5714_v57 = vpop.eup %4249  ;;  %4263 = vpow2.f32 %v1856_v50  ;;  %v6525_v50 = vld [vmem:[#allocation29_spill] sm:$0xff] }
 0x2c7   : > { %v5716_v5 = vpop.eup %4251  ;;  %v1858_v42 = vmul.f32 1.442695, %v1768_v12  ;;  %v1860_v7 = vmul.f32 1.442695, %v1769_v4  ;;  %v2391_v18 = vpack.c.bf16 %v5714_v57, %v5708_v32 }
 0x2c8   : > { %v1655_v48 = vpop.permute.xlu1 %1654  ;;  %v2392_v3 = vpack.c.bf16 %v5716_v5, %v5710_v14 }
 0x2c9   : > { %4265 = vpow2.f32 %v1858_v42  ;;  %v1770_v6 = vsub.f32 %v6523_v10, %v1655_v48  ;;  %v1771_v55 = vsub.f32 %v6524_v29, %v1655_v48 }
 0x2ca   : > { %4267 = vpow2.f32 %v1860_v7  ;;  %2607 = vmatprep.mubr.bf16.mxu1 %v2392_v3  ;;  %v5724_v47 = vpop.eup %4253 }
 0x2cb   : > { %v1862_v1 = vmul.f32 1.442695, %v1770_v6  ;;  %2608 = vmatmul.mubr.bf16.gmra.mxu1 %v2391_v18  ;;  %v1864_v12 = vmul.f32 1.442695, %v1771_v55  ;;  %v5726_v4 = vpop.eup %4255  ;;  %v6527_v6 = vld [vmem:[#allocation31_spill] sm:$0xff]  ;;  %v6528_v55 = vld [vmem:[#allocation32_spill] sm:$0xff] }
 0x2cc   : > { %v1660_v34 = vpop.permute.xlu0 %1659 }
 0x2cd   : > { %v1772_v49 = vsub.f32 %v6525_v50, %v1660_v34  ;;  %v1773_v60 = vsub.f32 %v6526_v41, %v1660_v34  ;;  %4269 = vpow2.f32 %v1862_v1 }
 0x2ce   : > { %v5730_v21 = vpop.eup %4257  ;;  %4271 = vpow2.f32 %v1864_v12  ;;  %v6529_v12 = vld [vmem:[#allocation33_spill] sm:$0xff] }
 0x2cf   : > { %v5732_v42 = vpop.eup %4259  ;;  %v1866_v48 = vmul.f32 1.442695, %v1772_v49  ;;  %v1868_v7 = vmul.f32 1.442695, %v1773_v60  ;;  %v2393_v18 = vpack.c.bf16 %v5730_v21, %v5724_v47 }
 0x2d0   : > { %v1665_v3 = vpop.permute.xlu1 %1664  ;;  %v2394_v10 = vpack.c.bf16 %v5732_v42, %v5726_v4 }
 0x2d1   : > { %4273 = vpow2.f32 %v1866_v48  ;;  %v1774_v29 = vsub.f32 %v6527_v6, %v1665_v3  ;;  %v1775_v41 = vsub.f32 %v6528_v55, %v1665_v3 }
 0x2d2   : > { %4275 = vpow2.f32 %v1868_v7  ;;  %2615 = vmatprep.mubr.bf16.mxu1 %v2394_v10  ;;  %v5740_v1 = vpop.eup %4261 }
 0x2d3   : > { %v1870_v34 = vmul.f32 1.442695, %v1774_v29  ;;  %2616 = vmatmul.mubr.bf16.gmra.mxu1 %v2393_v18  ;;  %v1872_v49 = vmul.f32 1.442695, %v1775_v41  ;;  %v5742_v50 = vpop.eup %4263  ;;  %v6531_v29 = vld [vmem:[#allocation35_spill] sm:$0xff]  ;;  %v6532_v41 = vld [vmem:[#allocation36_spill] sm:$0xff] }
 0x2d4   : > { %v1670_v60 = vpop.permute.xlu0 %1669 }
 0x2d5   : > { %v1776_v62 = vsub.f32 %v6529_v12, %v1670_v60  ;;  %v1777_v23 = vsub.f32 %v6530_v24, %v1670_v60  ;;  %4277 = vpow2.f32 %v1870_v34 }
 0x2d6   : > { %v5746_v37 = vpop.eup %4265  ;;  %4279 = vpow2.f32 %v1872_v49  ;;  %v6533_v49 = vld [vmem:[#allocation37_spill] sm:$0xff] }
 0x2d7   : > { %v5748_v48 = vpop.eup %4267  ;;  %v1874_v3 = vmul.f32 1.442695, %v1776_v62  ;;  %v1876_v7 = vmul.f32 1.442695, %v1777_v23  ;;  %v2395_v18 = vpack.c.bf16 %v5746_v37, %v5740_v1 }
 0x2d8   : > { %v1675_v10 = vpop.permute.xlu1 %1674  ;;  %v2396_v6 = vpack.c.bf16 %v5748_v48, %v5742_v50 }
 0x2d9   : > { %4281 = vpow2.f32 %v1874_v3  ;;  %v1778_v55 = vsub.f32 %v6531_v29, %v1675_v10  ;;  %v1779_v24 = vsub.f32 %v6532_v41, %v1675_v10  ;;  %v6536_v41 = vld [vmem:[#allocation40_spill] sm:$0xff] }
 0x2da   : > { %4283 = vpow2.f32 %v1876_v7  ;;  %2623 = vmatprep.mubr.bf16.mxu1 %v2396_v6  ;;  %v5756_v34 = vpop.eup %4269 }
 0x2db   : > { %v1878_v60 = vmul.f32 1.442695, %v1778_v55  ;;  %2624 = vmatmul.mubr.bf16.gmra.mxu1 %v2395_v18  ;;  %v1880_v23 = vmul.f32 1.442695, %v1779_v24  ;;  %v5758_v12 = vpop.eup %4271  ;;  %v6535_v55 = vld [vmem:[#allocation39_spill] sm:$0xff] }
 0x2dc   : > { %v1680_v62 = vpop.permute.xlu0 %1679 }
 0x2dd   : > { %v1780_v56 = vsub.f32 %v6533_v49, %v1680_v62  ;;  %v1781_v0 = vsub.f32 %v6534_v25, %v1680_v62  ;;  %4285 = vpow2.f32 %v1878_v60  ;;  %v6537_v49 = vld [vmem:[#allocation41_spill] sm:$0xff] }
 0x2de   : > { %v5762_v52 = vpop.eup %4273  ;;  %4287 = vpow2.f32 %v1880_v23 }
 0x2df   : > { %v5764_v3 = vpop.eup %4275  ;;  %v1882_v10 = vmul.f32 1.442695, %v1780_v56  ;;  %v1884_v7 = vmul.f32 1.442695, %v1781_v0  ;;  %v2397_v18 = vpack.c.bf16 %v5762_v52, %v5756_v34  ;;  %v2004_v0 = vadd.f32 %v5636_v11, %v5634_v51 }
 0x2e0   : > { %2002 = vadd.xlane.f32.xlu0 %v5620_v31  ;;  %v1685_v6 = vpop.permute.xlu1 %1684  ;;  %v2398_v29 = vpack.c.bf16 %v5764_v3, %v5758_v12  ;;  %v2010_v51 = vadd.f32 %v5660_v45, %v5658_v19  ;;  %v2016_v19 = vadd.f32 %v5688_v59, %v5686_v13  ;;  %v2022_v13 = vadd.f32 %v5710_v14, %v5708_v32  ;;  %v6544_v14 = vld [vmem:[#allocation48_spill] sm:$0xff] }
 0x2e1   : > { %4289 = vpow2.f32 %v1882_v10  ;;  %v1782_v25 = vsub.f32 %v6535_v55, %v1685_v6  ;;  %v1783_v24 = vsub.f32 %v6536_v41, %v1685_v6 }
 0x2e2   : > { %4291 = vpow2.f32 %v1884_v7  ;;  %2631 = vmatprep.mubr.bf16.mxu1 %v2398_v29  ;;  %v5775_v60 = vpop.eup %4277 }
 0x2e3   : > { %v1886_v56 = vmul.f32 1.442695, %v1782_v25  ;;  %2632 = vmatmul.mubr.bf16.gmra.mxu1 %v2397_v18  ;;  %v1888_v23 = vmul.f32 1.442695, %v1783_v24  ;;  %v5777_v62 = vpop.eup %4279  ;;  %v6540_v24 = vld [vmem:[#allocation44_spill] sm:$0xff] }
 0x2e4   : > { %v1690_v31 = vpop.permute.xlu0 %1689  ;;  %2005 = vadd.xlane.f32.xlu0 %v2004_v0 }
 0x2e5   : > { %v1784_v10 = vsub.f32 %v6537_v49, %v1690_v31  ;;  %v1785_v55 = vsub.f32 %v6538_v40, %v1690_v31  ;;  %1999 = vadd.xlane.f32.xlu1 %v5616_v35  ;;  %4293 = vpow2.f32 %v1886_v56  ;;  %v6539_v35 = vld [vmem:[#allocation43_spill] sm:$0xff]  ;;  %v2013_v56 = vadd.f32 %v5668_v2, %v5666_v8 }
 0x2e6   : > { %v5782_v7 = vpop.eup %4281  ;;  %4295 = vpow2.f32 %v1888_v23  ;;  %v2019_v8 = vadd.f32 %v5696_v43, %v5694_v16  ;;  %v2028_v16 = vadd.f32 %v5726_v4, %v5724_v47  ;;  %v2034_v4 = vadd.f32 %v5742_v50, %v5740_v1  ;;  %v6547_v1 = vld [vmem:[#allocation51_spill] sm:$0xff] }
 0x2e7   : > { %v5786_v11 = vpop.eup %4283  ;;  %v1890_v18 = vmul.f32 1.442695, %v1784_v10  ;;  %v1892_v6 = vmul.f32 1.442695, %v1785_v55  ;;  %v2399_v29 = vpack.c.bf16 %v5782_v7, %v5775_v60  ;;  %v6541_v55 = vld [vmem:[#allocation45_spill] sm:$0xff] }
 0x2e8   : > { %2011 = vadd.xlane.f32.xlu0 %v2010_v51  ;;  %v1695_v25 = vpop.permute.xlu1 %1694  ;;  %v2400_v40 = vpack.c.bf16 %v5786_v11, %v5777_v62 }
 0x2e9   : > { %4297 = vpow2.f32 %v1890_v18  ;;  %v1786_v41 = vsub.f32 %v6539_v35, %v1695_v25  ;;  %v1787_v0 = vsub.f32 %v6540_v24, %v1695_v25  ;;  %2008 = vadd.xlane.f32.xlu1 %v5646_v36  ;;  %v6542_v36 = vld [vmem:[#allocation46_spill] sm:$0xff] }
 0x2ea   : > { %4299 = vpow2.f32 %v1892_v6  ;;  %2639 = vmatprep.mubr.bf16.mxu1 %v2400_v40  ;;  %v5799_v23 = vpop.eup %4285 }
 0x2eb   : > { %v1894_v45 = vmul.f32 1.442695, %v1786_v41  ;;  %2640 = vmatmul.mubr.bf16.gmra.mxu1 %v2399_v29  ;;  %v1896_v31 = vmul.f32 1.442695, %v1787_v0  ;;  %v5801_v10 = vpop.eup %4287  ;;  %v6543_v41 = vld [vmem:[#allocation47_spill] sm:$0xff]  ;;  %v2025_v0 = vadd.f32 %v5716_v5, %v5714_v57  ;;  %v2031_v57 = vadd.f32 %v5732_v42, %v5730_v21  ;;  %v6548_v21 = vld [vmem:[#allocation52_spill] sm:$0xff] }
 0x2ec   : > { %v1700_v49 = vpop.permute.xlu0 %1699  ;;  %2017 = vadd.xlane.f32.xlu0 %v2016_v19 }
 0x2ed   : > { %v1788_v51 = vsub.f32 %v6541_v55, %v1700_v49  ;;  %v1789_v18 = vsub.f32 %v6542_v36, %v1700_v49  ;;  %2014 = vadd.xlane.f32.xlu1 %v2013_v56  ;;  %4301 = vpow2.f32 %v1894_v45  ;;  %v6545_v55 = vld [vmem:[#allocation49_spill] sm:$0xff]  ;;  %v6546_v36 = vld [vmem:[#allocation50_spill] sm:$0xff] }
 0x2ee   : > { %v5805_v6 = vpop.eup %4289  ;;  %4303 = vpow2.f32 %v1896_v31 }
 0x2ef   : > { %v5811_v2 = vpop.eup %4291  ;;  %v1898_v59 = vmul.f32 1.442695, %v1788_v51  ;;  %v1900_v29 = vmul.f32 1.442695, %v1789_v18  ;;  %v2401_v25 = vpack.c.bf16 %v5805_v6, %v5799_v23 }
 0x2f0   : > { %2023 = vadd.xlane.f32.xlu0 %v2022_v13  ;;  %v1705_v40 = vpop.permute.xlu1 %1704  ;;  %v2402_v35 = vpack.c.bf16 %v5811_v2, %v5801_v10 }
 0x2f1   : > { %4305 = vpow2.f32 %v1898_v59  ;;  %v1790_v32 = vsub.f32 %v6543_v41, %v1705_v40  ;;  %v1791_v24 = vsub.f32 %v6544_v14, %v1705_v40  ;;  %2020 = vadd.xlane.f32.xlu1 %v2019_v8 }
 0x2f2   : > { %4307 = vpow2.f32 %v1900_v29  ;;  %2647 = vmatprep.mubr.bf16.mxu1 %v2402_v35  ;;  %v5823_v19 = vpop.eup %4293  ;;  %v2040_v35 = vadd.f32 %v5758_v12, %v5756_v34  ;;  %v2046_v34 = vadd.f32 %v5777_v62, %v5775_v60  ;;  %v6552_v62 = vld [vmem:[#allocation56_spill] sm:$0xff] }
 0x2f3   : > { %v1902_v43 = vmul.f32 1.442695, %v1790_v32  ;;  %2648 = vmatmul.mubr.bf16.gmra.mxu1 %v2401_v25  ;;  %v1904_v45 = vmul.f32 1.442695, %v1791_v24  ;;  %v5827_v49 = vpop.eup %4295  ;;  %v2037_v32 = vadd.f32 %v5748_v48, %v5746_v37  ;;  %v2043_v37 = vadd.f32 %v5764_v3, %v5762_v52 }
 0x2f4   : > { %v1710_v56 = vpop.permute.xlu0 %1709  ;;  %2029 = vadd.xlane.f32.xlu0 %v2028_v16  ;;  %v5825_v31 = vpop.permute.xlu1 %2198  ;;  %v2052_v52 = vadd.f32 %v5801_v10, %v5799_v23  ;;  %v2058_v23 = vadd.f32 %v5827_v49, %v5823_v19 }
 0x2f5   : > { %v1792_v51 = vsub.f32 %v6545_v55, %v1710_v56  ;;  %v1793_v18 = vsub.f32 %v6546_v36, %v1710_v56  ;;  %2026 = vadd.xlane.f32.xlu1 %v2025_v0  ;;  %4309 = vpow2.f32 %v1902_v43  ;;  %v6550_v55 = vld [vmem:[#allocation54_spill] sm:$0xff] }
 0x2f6   : > { %v5831_v47 = vpop.eup %4297  ;;  %4311 = vpow2.f32 %v1904_v45  ;;  %v6549_v45 = vld [vmem:[#allocation53_spill] sm:$0xff] }
 0x2f7   : > { %v5837_v5 = vpop.eup %4299  ;;  %v1906_v13 = vmul.f32 1.442695, %v1792_v51  ;;  %v1908_v8 = vmul.f32 1.442695, %v1793_v18  ;;  %v2403_v59 = vpack.c.bf16 %v5831_v47, %v5823_v19 }
 0x2f8   : > { %v5841_v29 = vpop.permute.xlu0 %2193  ;;  %2035 = vadd.xlane.f32.xlu0 %v2034_v4  ;;  %v1715_v25 = vpop.permute.xlu1 %1714  ;;  %v2404_v40 = vpack.c.bf16 %v5837_v5, %v5827_v49 }
 0x2f9   : > { %4313 = vpow2.f32 %v1906_v13  ;;  %v1794_v50 = vsub.f32 %v6547_v1, %v1715_v25  ;;  %v1795_v42 = vsub.f32 %v6548_v21, %v1715_v25  ;;  %2032 = vadd.xlane.f32.xlu1 %v2031_v57  ;;  %v2049_v1 = vadd.f32 %v5786_v11, %v5782_v7 }
 0x2fa   : > { %4315 = vpow2.f32 %v1908_v8  ;;  %2655 = vmatprep.mubr.bf16.mxu1 %v2404_v40  ;;  %v4302_v14 = vpop.eup %4301  ;;  %v2055_v11 = vadd.f32 %v5811_v2, %v5805_v6  ;;  %v2061_v6 = vadd.f32 %v5837_v5, %v5831_v47 }
 0x2fb   : > { %v1910_v41 = vmul.f32 1.442695, %v1794_v50  ;;  %2656 = vmatmul.mubr.bf16.gmra.mxu1 %v2403_v59  ;;  %v1912_v24 = vmul.f32 1.442695, %v1795_v42  ;;  %v4304_v0 = vpop.eup %4303  ;;  %v6551_v59 = vld [vmem:[#allocation55_spill] sm:$0xff] }
 0x2fc   : > { %v1720_v16 = vpop.permute.xlu0 %1719  ;;  %2041 = vadd.xlane.f32.xlu0 %v2040_v35  ;;  %v5851_v43 = vpop.permute.xlu1 %2203  ;;  %v2064_v19 = vadd.f32 %v4304_v0, %v4302_v14 }
 0x2fd   : > { %v1796_v56 = vsub.f32 %v6549_v45, %v1720_v16  ;;  %v1797_v51 = vsub.f32 %v6550_v55, %v1720_v16  ;;  %2038 = vadd.xlane.f32.xlu1 %v2037_v32  ;;  %4317 = vpow2.f32 %v1910_v41  ;;  %v6553_v41 = vld [vmem:[#allocation57_spill] sm:$0xff] }
 0x2fe   : > { %v5855_v36 = vpop.eup %4305  ;;  %4319 = vpow2.f32 %v1912_v24  ;;  %v6554_v24 = vld [vmem:[#allocation58_spill] sm:$0xff] }
 0x2ff   : > { %v5861_v48 = vpop.eup %4307  ;;  %v1914_v12 = vmul.f32 1.442695, %v1796_v56  ;;  %v1916_v18 = vmul.f32 1.442695, %v1797_v51  ;;  %v2405_v4 = vpack.c.bf16 %v5855_v36, %v4302_v14 }
 0x300   : > { %v5864_v57 = vpop.permute.xlu0 %2208  ;;  %2047 = vadd.xlane.f32.xlu0 %v2046_v34  ;;  %v1725_v13 = vpop.permute.xlu1 %1724  ;;  %v2406_v8 = vpack.c.bf16 %v5861_v48, %v4304_v0 }
 0x301   : > { %4321 = vpow2.f32 %v1914_v12  ;;  %v1798_v60 = vsub.f32 %v6551_v59, %v1725_v13  ;;  %v1799_v25 = vsub.f32 %v6552_v62, %v1725_v13  ;;  %2044 = vadd.xlane.f32.xlu1 %v2043_v37  ;;  %v6555_v12 = vld [vmem:[#allocation59_spill] sm:$0xff]  ;;  %v6557_v62 = vld [vmem:[#allocation61_spill] sm:$0xff] }
 0x302   : > { %4323 = vpow2.f32 %v1916_v18  ;;  %2663 = vmatprep.mubr.bf16.mxu1 %v2406_v8  ;;  %v4310_v50 = vpop.eup %4309 }
 0x303   : > { %v1918_v3 = vmul.f32 1.442695, %v1798_v60  ;;  %v1920_v40 = vmul.f32 1.442695, %v1799_v25  ;;  %2664 = vmatmul.mubr.bf16.gmra.mxu1 %v2405_v4  ;;  %v4312_v35 = vpop.eup %4311  ;;  %v6556_v4 = vld [vmem:[#allocation60_spill] sm:$0xff] }
 0x304   : > { %v1730_v21 = vpop.permute.xlu0 %1729  ;;  %2053 = vadd.xlane.f32.xlu0 %v2052_v52  ;;  %v5873_v42 = vpop.permute.xlu1 %2213  ;;  %v6558_v52 = vld [vmem:[#allocation62_spill] sm:$0xff] }
 0x305   : > { %4325 = vpow2.f32 %v1918_v3  ;;  %v1800_v32 = vsub.f32 %v6553_v41, %v1730_v21  ;;  %v1801_v16 = vsub.f32 %v6554_v24, %v1730_v21  ;;  %2050 = vadd.xlane.f32.xlu1 %v2049_v1  ;;  %v2070_v1 = vadd.f32 %v4312_v35, %v4310_v50 }
 0x306   : > { %v4314_v45 = vpop.eup %4313  ;;  %4327 = vpow2.f32 %v1920_v40  ;;  %v2067_v41 = vadd.f32 %v5861_v48, %v5855_v36 }
 0x307   : > { %v4316_v10 = vpop.eup %4315  ;;  %v1922_v56 = vmul.f32 1.442695, %v1800_v32  ;;  %v1924_v7 = vmul.f32 1.442695, %v1801_v16  ;;  %v2407_v55 = vpack.c.bf16 %v4314_v45, %v4310_v50 }
 0x308   : > { %v5881_v51 = vpop.permute.xlu0 %2218  ;;  %2059 = vadd.xlane.f32.xlu0 %v2058_v23  ;;  %v1735_v34 = vpop.permute.xlu1 %1734  ;;  %v2408_v37 = vpack.c.bf16 %v4316_v10, %v4312_v35  ;;  %v2073_v23 = vadd.f32 %v4316_v10, %v4314_v45 }
 0x309   : > { %4329 = vpow2.f32 %v1922_v56  ;;  %v1802_v18 = vsub.f32 %v6555_v12, %v1735_v34  ;;  %v1803_v13 = vsub.f32 %v6556_v4, %v1735_v34  ;;  %2056 = vadd.xlane.f32.xlu1 %v2055_v11 }
 0x30a   : > { %4331 = vpow2.f32 %v1924_v7  ;;  %2671 = vmatprep.mubr.bf16.mxu1 %v2408_v37  ;;  %v4318_v2 = vpop.eup %4317 }
 0x30b   : > { %v1926_v49 = vmul.f32 1.442695, %v1802_v18  ;;  %v1928_v8 = vmul.f32 1.442695, %v1803_v13  ;;  %2672 = vmatmul.mubr.bf16.gmra.mxu1 %v2407_v55  ;;  %v4320_v60 = vpop.eup %4319  ;;  %v6559_v13 = vsub.f32 %v5520_v53, %v5538_v9 }
 0x30c   : > { %v1740_v59 = vpop.permute.xlu0 %1739  ;;  %2065 = vadd.xlane.f32.xlu0 %v2064_v19  ;;  %v2076_v24 = vadd.f32 %v4320_v60, %v4318_v2 }
 0x30d   : > { %4333 = vpow2.f32 %v1926_v49  ;;  %v1804_v25 = vsub.f32 %v6557_v62, %v1740_v59  ;;  %v1805_v3 = vsub.f32 %v6558_v52, %v1740_v59  ;;  %2062 = vadd.xlane.f32.xlu1 %v2061_v6  ;;  %v1580_v19 = vmul.f32 1.442695, %v6559_v13  ;;  %v5894_v49 = vpop.permute.xlu1 %2223  ;;  %v1938_v13 = vld [vmem:[#allocation3 + $0x20] sm:$0xff] }
 0x30e   : > { %v4322_v40 = vpop.eup %4321  ;;  %4335 = vpow2.f32 %v1928_v8 }
 0x30f   : > { %v4324_v14 = vpop.eup %4323  ;;  %v1930_v0 = vmul.f32 1.442695, %v1804_v25  ;;  %v1932_v21 = vmul.f32 1.442695, %v1805_v3  ;;  %v2409_v47 = vpack.c.bf16 %v4322_v40, %v4318_v2 }
 0x310   : > { %2071 = vadd.xlane.f32.xlu0 %v2070_v1  ;;  %v2410_v5 = vpack.c.bf16 %v4324_v14, %v4320_v60  ;;  %v2079_v7 = vadd.f32 %v4324_v14, %v4322_v40  ;;  %v5896_v8 = vpop.permute.xlu0 %2228 }
 0x311   : > { %4337 = vpow2.f32 %v1930_v0  ;;  %2068 = vadd.xlane.f32.xlu1 %v2067_v41  ;;  %v5898_v6 = vpop.permute.xlu1 %2233 }
 0x312   : > { %v4326_v32 = vpop.eup %4325  ;;  %4339 = vpow2.f32 %v1932_v21  ;;  %2679 = vmatprep.mubr.bf16.mxu1 %v2410_v5 }
 0x313   : > { %v4328_v16 = vpop.eup %4327  ;;  %2680 = vmatmul.mubr.bf16.gmra.mxu1 %v2409_v47  ;;  %4341 = vpow2.f32 %v1580_v19 }
 0x314   : > { %2077 = vadd.xlane.f32.xlu0 %v2076_v24  ;;  %v2082_v35 = vadd.f32 %v4328_v16, %v4326_v32  ;;  %v5900_v2 = vpop.permute.xlu0 %2238 }
 0x315   : > { %2074 = vadd.xlane.f32.xlu1 %v2073_v23  ;;  %v5902_v59 = vpop.permute.xlu1 %2243 }
 0x316   : > { %v4330_v50 = vpop.eup %4329 }
 0x317   : > { %v4332_v56 = vpop.eup %4331  ;;  %v2411_v11 = vpack.c.bf16 %v4330_v50, %v4326_v32 }
 0x318   : > { %2083 = vadd.xlane.f32.xlu0 %v2082_v35  ;;  %v2412_v36 = vpack.c.bf16 %v4332_v56, %v4328_v16  ;;  %v2085_v34 = vadd.f32 %v4332_v56, %v4330_v50  ;;  %v5904_v60 = vpop.permute.xlu0 %2248  ;;  %v1935_v35 = vld [vmem:[#allocation3 + $0x8] sm:$0xff] }
 0x319   : > { %2080 = vadd.xlane.f32.xlu1 %v2079_v7  ;;  %v5908_v53 = vpop.permute.xlu1 %2253  ;;  %v6573_v56 = vld [vmem:[#allocation63_spill] sm:$0xff] }
 0x31a   : > { %v4334_v48 = vpop.eup %4333  ;;  %2687 = vmatprep.mubr.bf16.mxu1 %v2412_v36  ;;  %v1967_v7 = vmul.f32 %v6573_v56, %v1935_v35  ;;  %v1936_v36 = vld [vmem:[#allocation3 + $0x10] sm:$0xff]  ;;  %v1937_v56 = vld [vmem:[#allocation3 + $0x18] sm:$0xff] }
 0x31b   : > { %v4336_v55 = vpop.eup %4335  ;;  %2688 = vmatmul.mubr.bf16.gmra.mxu1 %v2411_v11 }
 0x31c   : > { %v2088_v37 = vadd.f32 %v4336_v55, %v4334_v48  ;;  %v5911_v9 = vpop.permute.xlu0 %2258 }
 0x31d   : > { %2086 = vadd.xlane.f32.xlu1 %v2085_v34  ;;  %v5913_v25 = vpop.permute.xlu1 %2263  ;;  %v1934_v34 = vld [vmem:[#allocation3] sm:$0xff] }
 0x31e   : > { %v4338_v12 = vpop.eup %4337  ;;  %2089 = vadd.xlane.f32.xlu0 %v2088_v37 }
 0x31f   : > { %v4340_v45 = vpop.eup %4339  ;;  %v2413_v10 = vpack.c.bf16 %v4338_v12, %v4334_v48 }
 0x320   : > { %v2091_v18 = vadd.f32 %v4340_v45, %v4338_v12  ;;  %v2414_v4 = vpack.c.bf16 %v4340_v45, %v4336_v55  ;;  %v5906_v62 = vpop.eup %4341  ;;  %v5915_v52 = vpop.permute.xlu0 %2268  ;;  %v1968_v12 = vmul.f32 %v5465_v28, %v1936_v36  ;;  %v1969_v36 = vmul.f32 %v5482_v44, %v1937_v56  ;;  %v1941_v56 = vld [vmem:[#allocation3 + $0x38] sm:$0xff] }
 0x321   : > { %v5917_v3 = vpop.permute.xlu1 %2273 }
 0x322   : > { %2092 = vadd.xlane.f32.xlu1 %v2091_v18  ;;  %2695 = vmatprep.mubr.bf16.mxu1 %v2414_v4  ;;  %v6575_v18 = vld [vmem:[#allocation64_spill] sm:$0xff] }
 0x323   : > { %2696 = vmatmul.mubr.bf16.gmra.mxu1 %v2413_v10  ;;  %v1966_v4 = vmul.f32 %v6575_v18, %v1934_v34 }
 0x324   : > { %v5919_v40 = vpop.permute.xlu0 %2278 }
 0x325   : > { %6560 = vst [vmem:[#allocation22_spill] sm:$0xff] %v5919_v40  ;;  %v5921_v1 = vpop.permute.xlu1 %2283 }
 0x326   : > { %6561 = vst [vmem:[#allocation23_spill] sm:$0xff] %v5921_v1 }
 0x328   : > { %v5923_v14 = vpop.permute.xlu0 %2288 }
 0x329   : > { %6562 = vst [vmem:[#allocation24_spill] sm:$0xff] %v5923_v14  ;;  %v5925_v0 = vpop.permute.xlu1 %2293 }
 0x32a   : > { %6563 = vst [vmem:[#allocation25_spill] sm:$0xff] %v5925_v0 }
 0x32c   : > { %v5927_v21 = vpop.permute.xlu0 %2298 }
 0x32d   : > { %6564 = vst [vmem:[#allocation26_spill] sm:$0xff] %v5927_v21  ;;  %v5929_v41 = vpop.permute.xlu1 %2303  ;;  %v1960_v21 = vld [vmem:[#allocation3 + $0xd0] sm:$0xff] }
 0x32e   : > { %6565 = vst [vmem:[#allocation27_spill] sm:$0xff] %v5929_v41 }
 0x330   : > { %v5931_v47 = vpop.permute.xlu0 %2308 }
 0x331   : > { %6566 = vst [vmem:[#allocation28_spill] sm:$0xff] %v5931_v47  ;;  %v5933_v5 = vpop.permute.xlu1 %2313  ;;  %v1958_v47 = vld [vmem:[#allocation3 + $0xc0] sm:$0xff] }
 0x332   : > { %6567 = vst [vmem:[#allocation29_spill] sm:$0xff] %v5933_v5 }
 0x334   : > { %2348 = vperm.xlu0 %4101, %v5906_v62   ;;  %v5935_v32 = vpop.permute.xlu0 %2318 }
 0x335   : > { %6568 = vst [vmem:[#allocation30_spill] sm:$0xff] %v5935_v32  ;;  %v5937_v24 = vpop.permute.xlu1 %2323  ;;  %v1956_v32 = vld [vmem:[#allocation3 + $0xb0] sm:$0xff] }
 0x336   : > { %6569 = vst [vmem:[#allocation31_spill] sm:$0xff] %v5937_v24 }
 0x338   : > { %v5939_v16 = vpop.permute.xlu0 %2328 }
 0x339   : > { %6570 = vst [vmem:[#allocation32_spill] sm:$0xff] %v5939_v16  ;;  %v5941_v23 = vpop.permute.xlu1 %2333 }
 0x33a   : > { %6571 = vst [vmem:[#allocation33_spill] sm:$0xff] %v5941_v23 }
 0x33c   : > { %v5943_v50 = vpop.permute.xlu0 %2338 }
 0x33d   : > { %6572 = vst [vmem:[#allocation34_spill] sm:$0xff] %v5943_v50  ;;  %v5946_v48 = vpop.permute.xlu1 %2343 }
 0x33e   : > { %6574 = vst [vmem:[#allocation35_spill] sm:$0xff] %v5946_v48 }
 0x369   : > { %v2003_v11 = vpop.xlane.xlu0 %2002 }
 0x36a   : > { %v2095_v55 = vadd.f32 %v2003_v11, %v1967_v7  ;;  %v1970_v7 = vmul.f32 %v5499_v38, %v1938_v13  ;;  %v1942_v13 = vld [vmem:[#allocation3 + $0x40] sm:$0xff] }
 0x36b   : > { %v5948_v37 = vpop.f32.mrf.mxu1 }
 0x36c   : > { %2128 = vst.msk [vmem:[#allocation3 + $0x8] sm:$0xff] %vm780_vm0, %v2095_v55  ;;  %v1940_v55 = vld [vmem:[#allocation3 + $0x30] sm:$0xff] }
 0x36d   : > { %v5952_v45 = vpop.f32.mrf.mxu1  ;;  %v2006_v10 = vpop.xlane.xlu0 %2005  ;;  %v1972_v38 = vmul.f32 %v5540_v26, %v1940_v55 }
 0x36e   : > { %v2096_v19 = vadd.f32 %v2006_v10, %v1968_v12  ;;  %v2000_v35 = vpop.xlane.xlu1 %1999  ;;  %v1939_v12 = vld [vmem:[#allocation3 + $0x28] sm:$0xff] }
 0x36f   : > { %v5955_v50 = vpop.f32.mrf.mxu1  ;;  %v2094_v48 = vadd.f32 %v2000_v35, %v1966_v4  ;;  %v1971_v44 = vmul.f32 %v5516_v15, %v1939_v12  ;;  %v1973_v15 = vmul.f32 %v5548_v46, %v1941_v56 }
 0x370   : > { %2129 = vst.msk [vmem:[#allocation3 + $0x10] sm:$0xff] %vm780_vm0, %v2096_v19 }
 0x371   : > { %2127 = vst.msk [vmem:[#allocation3] sm:$0xff] %vm780_vm0, %v2094_v48  ;;  %v5960_v11 = vpop.f32.mrf.mxu1  ;;  %v2012_v28 = vpop.xlane.xlu0 %2011 }
 0x372   : > { %v2098_v34 = vadd.f32 %v2012_v28, %v1970_v7  ;;  %v2009_v18 = vpop.xlane.xlu1 %2008 }
 0x373   : > { %v2804_v10 = vld [vmem:[#allocation3 + $0x8] sm:$0xff]  ;;  %v5963_v23 = vpop.f32.mrf.mxu1  ;;  %v2097_v16 = vadd.f32 %v2009_v18, %v1969_v36  ;;  %v1944_v18 = vld [vmem:[#allocation3 + $0x50] sm:$0xff] }
 0x374   : > { %4343 = vrcp.f32 %v2804_v10  ;;  %2131 = vst.msk [vmem:[#allocation3 + $0x20] sm:$0xff] %vm780_vm0, %v2098_v34  ;;  %v1974_v34 = vmul.f32 %v5554_v63, %v1942_v13  ;;  %v1976_v63 = vmul.f32 %v5568_v33, %v1944_v18 }
 0x375   : > { %2130 = vst.msk [vmem:[#allocation3 + $0x18] sm:$0xff] %vm780_vm0, %v2097_v16  ;;  %v5968_v48 = vpop.f32.mrf.mxu1  ;;  %v2018_v4 = vpop.xlane.xlu0 %2017 }
 0x376   : > { %v2100_v19 = vadd.f32 %v2018_v4, %v1972_v38  ;;  %v2015_v35 = vpop.xlane.xlu1 %2014  ;;  %v1943_v38 = vld [vmem:[#allocation3 + $0x48] sm:$0xff] }
 0x377   : > { %v5971_v7 = vpop.f32.mrf.mxu1  ;;  %v2099_v28 = vadd.f32 %v2015_v35, %v1971_v44  ;;  %v2805_v26 = vld [vmem:[#allocation3 + $0x10] sm:$0xff]  ;;  %v1975_v56 = vmul.f32 %v5566_v39, %v1943_v38 }
 0x378   : > { %v2803_v36 = vld [vmem:[#allocation3] sm:$0xff]  ;;  %2133 = vst.msk [vmem:[#allocation3 + $0x30] sm:$0xff] %vm780_vm0, %v2100_v19 }
 0x379   : > { %4345 = vrcp.f32 %v2803_v36  ;;  %2132 = vst.msk [vmem:[#allocation3 + $0x28] sm:$0xff] %vm780_vm0, %v2099_v28  ;;  %v5976_v16 = vpop.f32.mrf.mxu1  ;;  %v2024_v55 = vpop.xlane.xlu0 %2023  ;;  %v1946_v28 = vld [vmem:[#allocation3 + $0x60] sm:$0xff] }
 0x37a   : > { %v2102_v12 = vadd.f32 %v2024_v55, %v1974_v34  ;;  %v2021_v10 = vpop.xlane.xlu1 %2020  ;;  %4347 = vrcp.f32 %v2805_v26  ;;  %v1945_v55 = vld [vmem:[#allocation3 + $0x58] sm:$0xff]  ;;  %v1978_v33 = vmul.f32 %v5578_v54, %v1946_v28 }
 0x37b   : > { %v5979_v4 = vpop.f32.mrf.mxu1  ;;  %v2101_v44 = vadd.f32 %v2021_v10, %v1973_v15  ;;  %v2807_v13 = vld [vmem:[#allocation3 + $0x20] sm:$0xff]  ;;  %v1977_v38 = vmul.f32 %v5574_v27, %v1945_v55 }
 0x37c   : > { %v2806_v19 = vld [vmem:[#allocation3 + $0x18] sm:$0xff]  ;;  %2135 = vst.msk [vmem:[#allocation3 + $0x40] sm:$0xff] %vm780_vm0, %v2102_v12 }
 0x37d   : > { %4349 = vrcp.f32 %v2806_v19  ;;  %2134 = vst.msk [vmem:[#allocation3 + $0x38] sm:$0xff] %vm780_vm0, %v2101_v44  ;;  %v5984_v35 = vpop.f32.mrf.mxu1  ;;  %v2030_v46 = vpop.xlane.xlu0 %2029  ;;  %v1948_v19 = vld [vmem:[#allocation3 + $0x70] sm:$0xff] }
 0x37e   : > { %v2104_v36 = vadd.f32 %v2030_v46, %v1976_v63  ;;  %v2027_v34 = vpop.xlane.xlu1 %2026  ;;  %4351 = vrcp.f32 %v2807_v13  ;;  %v1947_v13 = vld [vmem:[#allocation3 + $0x68] sm:$0xff]  ;;  %v1980_v28 = vmul.f32 %v5592_v30, %v1948_v19 }
 0x37f   : > { %v5987_v15 = vpop.f32.mrf.mxu1  ;;  %v2103_v26 = vadd.f32 %v2027_v34, %v1975_v56  ;;  %v2809_v10 = vld [vmem:[#allocation3 + $0x30] sm:$0xff]  ;;  %v1979_v55 = vmul.f32 %v5588_v20, %v1947_v13 }
 0x380   : > { %v2808_v12 = vld [vmem:[#allocation3 + $0x28] sm:$0xff]  ;;  %2137 = vst.msk [vmem:[#allocation3 + $0x50] sm:$0xff] %vm780_vm0, %v2104_v36 }
 0x381   : > { %v4344_v18 = vpop.eup %4343  ;;  %4353 = vrcp.f32 %v2808_v12  ;;  %2136 = vst.msk [vmem:[#allocation3 + $0x48] sm:$0xff] %vm780_vm0, %v2103_v26  ;;  %v5992_v44 = vpop.f32.mrf.mxu1  ;;  %v1950_v12 = vld [vmem:[#allocation3 + $0x80] sm:$0xff] }
 0x382   : > { %v2036_v39 = vpop.xlane.xlu0 %2035  ;;  %2906 = vperm.xlu0 %4101, %v4344_v18   ;;  %v2033_v46 = vpop.xlane.xlu1 %2032  ;;  %4355 = vrcp.f32 %v2809_v10  ;;  %v1982_v19 = vmul.f32 %v5596_v61, %v1950_v12 }
 0x383   : > { %v2106_v63 = vadd.f32 %v2036_v39, %v1978_v33  ;;  %v5995_v56 = vpop.f32.mrf.mxu1  ;;  %v2105_v36 = vadd.f32 %v2033_v46, %v1977_v38  ;;  %v2811_v34 = vld [vmem:[#allocation3 + $0x40] sm:$0xff]  ;;  %v1949_v38 = vld [vmem:[#allocation3 + $0x78] sm:$0xff] }
 0x384   : > { %v2810_v54 = vld [vmem:[#allocation3 + $0x38] sm:$0xff] }
 0x385   : > { %2139 = vst.msk [vmem:[#allocation3 + $0x60] sm:$0xff] %vm780_vm0, %v2106_v63  ;;  %4357 = vrcp.f32 %v2810_v54  ;;  %2138 = vst.msk [vmem:[#allocation3 + $0x58] sm:$0xff] %vm780_vm0, %v2105_v36  ;;  %v6000_v26 = vpop.f32.mrf.mxu1  ;;  %v1981_v54 = vmul.f32 %v5594_v22, %v1949_v38 }
 0x386   : > { %v2042_v27 = vpop.xlane.xlu0 %2041  ;;  %v4346_v33 = vpop.eup %4345  ;;  %4359 = vrcp.f32 %v2811_v34  ;;  %v1951_v34 = vld [vmem:[#allocation3 + $0x88] sm:$0xff] }
 0x387   : > { %v2108_v18 = vadd.f32 %v2042_v27, %v1980_v28  ;;  %v2039_v39 = vpop.xlane.xlu1 %2038  ;;  %v6003_v10 = vpop.f32.mrf.mxu1  ;;  %2901 = vperm.xlu1 %4102, %v4346_v33   ;;  %v2813_v36 = vld [vmem:[#allocation3 + $0x50] sm:$0xff] }
 0x388   : > { %v2107_v46 = vadd.f32 %v2039_v39, %v1979_v55  ;;  %v2812_v30 = vld [vmem:[#allocation3 + $0x48] sm:$0xff]  ;;  %v4348_v63 = vpop.eup %4347  ;;  %v1952_v28 = vld [vmem:[#allocation3 + $0x90] sm:$0xff] }
 0x389   : > { %2141 = vst.msk [vmem:[#allocation3 + $0x70] sm:$0xff] %vm780_vm0, %v2108_v18  ;;  %4361 = vrcp.f32 %v2812_v30  ;;  %v6008_v20 = vpop.f32.mrf.mxu1  ;;  %v1984_v12 = vmul.f32 %v5618_v17, %v1952_v28  ;;  %v6576_v28 = vld [vmem:[#allocation11_spill] sm:$0xff] }
 0x38a   : > { %2140 = vst.msk [vmem:[#allocation3 + $0x68] sm:$0xff] %vm780_vm0, %v2107_v46  ;;  %v2048_v13 = vpop.xlane.xlu0 %2047  ;;  %v4350_v27 = vpop.eup %4349  ;;  %4363 = vrcp.f32 %v2813_v36  ;;  %v1953_v36 = vld [vmem:[#allocation3 + $0x98] sm:$0xff] }
 0x38b   : > { %v2110_v55 = vadd.f32 %v2048_v13, %v1982_v19  ;;  %v2045_v33 = vpop.xlane.xlu1 %2044  ;;  %v6011_v39 = vpop.f32.mrf.mxu1  ;;  %2911 = vperm.xlu1 %4102, %v4348_v63   ;;  %2916 = vperm.xlu0 %4101, %v4350_v27   ;;  %v1983_v19 = vmul.f32 %v5604_v58, %v1951_v34  ;;  %v1954_v13 = vld [vmem:[#allocation3 + $0xa0] sm:$0xff] }
 0x38c   : > { %v2109_v18 = vadd.f32 %v2045_v33, %v1981_v54  ;;  %v2814_v61 = vld [vmem:[#allocation3 + $0x58] sm:$0xff]  ;;  %v4352_v46 = vpop.eup %4351  ;;  %v2815_v30 = vld [vmem:[#allocation3 + $0x60] sm:$0xff] }
 0x38d   : > { %2143 = vst.msk [vmem:[#allocation3 + $0x80] sm:$0xff] %vm780_vm0, %v2110_v55  ;;  %4365 = vrcp.f32 %v2814_v61  ;;  %v6016_v22 = vpop.f32.mrf.mxu1 }
 0x38e   : > { %2142 = vst.msk [vmem:[#allocation3 + $0x78] sm:$0xff] %vm780_vm0, %v2109_v18  ;;  %v2054_v38 = vpop.xlane.xlu0 %2053  ;;  %v4354_v54 = vpop.eup %4353  ;;  %4367 = vrcp.f32 %v2815_v30  ;;  %v1986_v18 = vmul.f32 %v6576_v28, %v1954_v13  ;;  %v1955_v30 = vld [vmem:[#allocation3 + $0xa8] sm:$0xff] }
 0x38f   : > { %v2112_v63 = vadd.f32 %v2054_v38, %v1984_v12  ;;  %v2051_v27 = vpop.xlane.xlu1 %2050  ;;  %v6019_v33 = vpop.f32.mrf.mxu1  ;;  %2921 = vperm.xlu1 %4102, %v4352_v46   ;;  %2926 = vperm.xlu0 %4101, %v4354_v54   ;;  %v6577_v12 = vld [vmem:[#allocation10_spill] sm:$0xff] }
 0x390   : > { %v2111_v55 = vadd.f32 %v2051_v27, %v1983_v19  ;;  %v4356_v61 = vpop.eup %4355  ;;  %v2817_v24 = vld [vmem:[#allocation3 + $0x70] sm:$0xff]  ;;  %v1985_v38 = vmul.f32 %v6577_v12, %v1953_v36 }
 0x391   : > { %v2816_v17 = vld [vmem:[#allocation3 + $0x68] sm:$0xff]  ;;  %2145 = vst.msk [vmem:[#allocation3 + $0x90] sm:$0xff] %vm780_vm0, %v2112_v63  ;;  %v6024_v58 = vpop.f32.mrf.mxu1 }
 0x392   : > { %4369 = vrcp.f32 %v2816_v17  ;;  %2144 = vst.msk [vmem:[#allocation3 + $0x88] sm:$0xff] %vm780_vm0, %v2111_v55  ;;  %v2060_v34 = vpop.xlane.xlu0 %2059  ;;  %v4358_v19 = vpop.eup %4357  ;;  %v6578_v55 = vld [vmem:[#allocation13_spill] sm:$0xff] }
 0x393   : > { %v2114_v46 = vadd.f32 %v2060_v34, %v1986_v18  ;;  %v2057_v54 = vpop.xlane.xlu1 %2056  ;;  %v6027_v27 = vpop.f32.mrf.mxu1  ;;  %2931 = vperm.xlu1 %4102, %v4356_v61   ;;  %2936 = vperm.xlu0 %4101, %v4358_v19   ;;  %4371 = vrcp.f32 %v2817_v24  ;;  %v1988_v17 = vmul.f32 %v6578_v55, %v1956_v32  ;;  %v6579_v34 = vld [vmem:[#allocation12_spill] sm:$0xff]  ;;  %v1957_v24 = vld [vmem:[#allocation3 + $0xb8] sm:$0xff] }
 0x394   : > { %v2113_v63 = vadd.f32 %v2057_v54, %v1985_v38  ;;  %v4360_v28 = vpop.eup %4359  ;;  %v2819_v5 = vld [vmem:[#allocation3 + $0x80] sm:$0xff]  ;;  %v1987_v12 = vmul.f32 %v6579_v34, %v1955_v30 }
 0x395   : > { %v2818_v13 = vld [vmem:[#allocation3 + $0x78] sm:$0xff]  ;;  %2147 = vst.msk [vmem:[#allocation3 + $0xa0] sm:$0xff] %vm780_vm0, %v2114_v46  ;;  %v6032_v36 = vpop.f32.mrf.mxu1 }
 0x396   : > { %4373 = vrcp.f32 %v2818_v13  ;;  %2146 = vst.msk [vmem:[#allocation3 + $0x98] sm:$0xff] %vm780_vm0, %v2113_v63  ;;  %v2066_v18 = vpop.xlane.xlu0 %2065  ;;  %v4362_v38 = vpop.eup %4361  ;;  %v6580_v63 = vld [vmem:[#allocation15_spill] sm:$0xff] }
 0x397   : > { %v2116_v61 = vadd.f32 %v2066_v18, %v1988_v17  ;;  %v2063_v19 = vpop.xlane.xlu1 %2062  ;;  %v6035_v54 = vpop.f32.mrf.mxu1  ;;  %2941 = vperm.xlu1 %4102, %v4360_v28   ;;  %2946 = vperm.xlu0 %4101, %v4362_v38   ;;  %4375 = vrcp.f32 %v2819_v5  ;;  %v1990_v13 = vmul.f32 %v6580_v63, %v1958_v47  ;;  %v6581_v18 = vld [vmem:[#allocation14_spill] sm:$0xff]  ;;  %v1959_v5 = vld [vmem:[#allocation3 + $0xc8] sm:$0xff] }
 0x398   : > { %v2115_v46 = vadd.f32 %v2063_v19, %v1987_v12  ;;  %v4364_v55 = vpop.eup %4363  ;;  %v2821_v41 = vld [vmem:[#allocation3 + $0x90] sm:$0xff]  ;;  %v1989_v34 = vmul.f32 %v6581_v18, %v1957_v24  ;;  %v1962_v18 = vld [vmem:[#allocation3 + $0xe0] sm:$0xff] }
 0x399   : > { %v2820_v32 = vld [vmem:[#allocation3 + $0x88] sm:$0xff]  ;;  %2149 = vst.msk [vmem:[#allocation3 + $0xb0] sm:$0xff] %vm780_vm0, %v2116_v61  ;;  %v6040_v30 = vpop.f32.mrf.mxu1 }
 0x39a   : > { %4377 = vrcp.f32 %v2820_v32  ;;  %2148 = vst.msk [vmem:[#allocation3 + $0xa8] sm:$0xff] %vm780_vm0, %v2115_v46  ;;  %v2072_v17 = vpop.xlane.xlu0 %2071  ;;  %v4366_v12 = vpop.eup %4365  ;;  %v6582_v46 = vld [vmem:[#allocation17_spill] sm:$0xff] }
 0x39b   : > { %v2118_v28 = vadd.f32 %v2072_v17, %v1990_v13  ;;  %v2069_v38 = vpop.xlane.xlu1 %2068  ;;  %v6043_v19 = vpop.f32.mrf.mxu1  ;;  %2951 = vperm.xlu1 %4102, %v4364_v55   ;;  %2956 = vperm.xlu0 %4101, %v4366_v12   ;;  %4379 = vrcp.f32 %v2821_v41  ;;  %v1992_v32 = vmul.f32 %v6582_v46, %v1960_v21  ;;  %v6583_v13 = vld [vmem:[#allocation16_spill] sm:$0xff]  ;;  %v1961_v55 = vld [vmem:[#allocation3 + $0xd8] sm:$0xff]  ;;  %v6585_v46 = vld [vmem:[#allocation18_spill] sm:$0xff] }
 0x39c   : > { %v2117_v61 = vadd.f32 %v2069_v38, %v1989_v34  ;;  %v4368_v63 = vpop.eup %4367  ;;  %v2823_v0 = vld [vmem:[#allocation3 + $0xa0] sm:$0xff]  ;;  %v1991_v17 = vmul.f32 %v6583_v13, %v1959_v5 }
 0x39d   : > { %v2822_v47 = vld [vmem:[#allocation3 + $0x98] sm:$0xff]  ;;  %2151 = vst.msk [vmem:[#allocation3 + $0xc0] sm:$0xff] %vm780_vm0, %v2118_v28  ;;  %v6049_v12 = vpop.f32.mrf.mxu1  ;;  %v6584_v28 = vld [vmem:[#allocation19_spill] sm:$0xff] }
 0x39e   : > { %4381 = vrcp.f32 %v2822_v47  ;;  %2150 = vst.msk [vmem:[#allocation3 + $0xb8] sm:$0xff] %vm780_vm0, %v2117_v61  ;;  %v2078_v24 = vpop.xlane.xlu0 %2077  ;;  %v1994_v38 = vmul.f32 %v6584_v28, %v1962_v18  ;;  %v6587_v28 = vld [vmem:[#allocation21_spill] sm:$0xff] }
 0x39f   : > { %v4370_v14 = vpop.eup %4369  ;;  %v2120_v1 = vadd.f32 %v2078_v24, %v1992_v32  ;;  %v2075_v34 = vpop.xlane.xlu1 %2074  ;;  %2961 = vperm.xlu1 %4102, %v4368_v63   ;;  %4383 = vrcp.f32 %v2823_v0  ;;  %v1993_v32 = vmul.f32 %v6585_v46, %v1961_v55  ;;  %v6586_v55 = vld [vmem:[#allocation20_spill] sm:$0xff] }
 0x3a0   : > { %v2119_v41 = vadd.f32 %v2075_v34, %v1991_v17  ;;  %2966 = vperm.xlu0 %4101, %v4370_v14   ;;  %v4372_v61 = vpop.eup %4371  ;;  %v2825_v47 = vld [vmem:[#allocation3 + $0xb0] sm:$0xff]  ;;  %v1963_v17 = vld [vmem:[#allocation3 + $0xe8] sm:$0xff]  ;;  %v6055_v63 = vpop.f32.mrf.mxu1 }
 0x3a1   : > { %v2824_v21 = vld [vmem:[#allocation3 + $0xa8] sm:$0xff]  ;;  %2153 = vst.msk [vmem:[#allocation3 + $0xd0] sm:$0xff] %vm780_vm0, %v2120_v1  ;;  %v1964_v1 = vld [vmem:[#allocation3 + $0xf0] sm:$0xff] }
 0x3a2   : > { %4385 = vrcp.f32 %v2824_v21  ;;  %2152 = vst.msk [vmem:[#allocation3 + $0xc8] sm:$0xff] %vm780_vm0, %v2119_v41  ;;  %v2084_v5 = vpop.xlane.xlu0 %2083  ;;  %v1995_v41 = vmul.f32 %v6586_v55, %v1963_v17  ;;  %v6061_v46 = vpop.f32.mrf.mxu1 }
 0x3a3   : > { %v4374_v24 = vpop.eup %4373  ;;  %v2122_v13 = vadd.f32 %v2084_v5, %v1994_v38  ;;  %v2081_v40 = vpop.xlane.xlu1 %2080  ;;  %2971 = vperm.xlu1 %4102, %v4372_v61   ;;  %4387 = vrcp.f32 %v2825_v47  ;;  %v1996_v38 = vmul.f32 %v6587_v28, %v1964_v1  ;;  %v1965_v47 = vld [vmem:[#allocation3 + $0xf8] sm:$0xff] }
 0x3a4   : > { %v2121_v14 = vadd.f32 %v2081_v40, %v1993_v32  ;;  %2976 = vperm.xlu0 %4101, %v4374_v24   ;;  %v4376_v18 = vpop.eup %4375  ;;  %v2827_v34 = vld [vmem:[#allocation3 + $0xc0] sm:$0xff]  ;;  %v6066_v1 = vpop.f32.mrf.mxu1 }
 0x3a5   : > { %v2826_v0 = vld [vmem:[#allocation3 + $0xb8] sm:$0xff]  ;;  %2155 = vst.msk [vmem:[#allocation3 + $0xe0] sm:$0xff] %vm780_vm0, %v2122_v13 }
 0x3a6   : > { %4389 = vrcp.f32 %v2826_v0  ;;  %2154 = vst.msk [vmem:[#allocation3 + $0xd8] sm:$0xff] %vm780_vm0, %v2121_v14  ;;  %v1997_v14 = vmul.f32 %v5906_v62, %v1965_v47 }
 0x3a7   : > { %v4378_v21 = vpop.eup %4377  ;;  %v2087_v5 = vpop.xlane.xlu1 %2086  ;;  %2981 = vperm.xlu1 %4102, %v4376_v18   ;;  %4391 = vrcp.f32 %v2827_v34 }
 0x3a8   : > { %v2090_v40 = vpop.xlane.xlu0 %2089  ;;  %v2123_v61 = vadd.f32 %v2087_v5, %v1995_v41  ;;  %2986 = vperm.xlu0 %4101, %v4378_v21   ;;  %v4380_v13 = vpop.eup %4379  ;;  %v2829_v0 = vld [vmem:[#allocation3 + $0xd0] sm:$0xff] }
 0x3a9   : > { %v2828_v32 = vld [vmem:[#allocation3 + $0xc8] sm:$0xff]  ;;  %v2124_v24 = vadd.f32 %v2090_v40, %v1996_v38  ;;  %v6069_v38 = vpop.f32.mrf.mxu1 }
 0x3aa   : > { %4393 = vrcp.f32 %v2828_v32  ;;  %2156 = vst.msk [vmem:[#allocation3 + $0xe8] sm:$0xff] %vm780_vm0, %v2123_v61 }
 0x3ab   : > { %v4382_v17 = vpop.eup %4381  ;;  %2157 = vst.msk [vmem:[#allocation3 + $0xf0] sm:$0xff] %vm780_vm0, %v2124_v24  ;;  %v2093_v55 = vpop.xlane.xlu1 %2092  ;;  %2991 = vperm.xlu1 %4102, %v4380_v13   ;;  %4395 = vrcp.f32 %v2829_v0 }
 0x3ac   : > { %2996 = vperm.xlu0 %4101, %v4382_v17   ;;  %v2125_v34 = vadd.f32 %v2093_v55, %v1997_v14  ;;  %v4384_v41 = vpop.eup %4383  ;;  %v2831_v21 = vld [vmem:[#allocation3 + $0xe0] sm:$0xff]  ;;  %v6071_v47 = vpop.f32.mrf.mxu1 }
 0x3ad   : > { %v2830_v18 = vld [vmem:[#allocation3 + $0xd8] sm:$0xff] }
 0x3ae   : > { %4397 = vrcp.f32 %v2830_v18  ;;  %2158 = vst.msk [vmem:[#allocation3 + $0xf8] sm:$0xff] %vm780_vm0, %v2125_v34  ;;  %v6073_v0 = vpop.f32.mrf.mxu1 }
 0x3af   : > { %v4386_v28 = vpop.eup %4385  ;;  %3001 = vperm.xlu1 %4102, %v4384_v41   ;;  %4399 = vrcp.f32 %v2831_v21 }
 0x3b0   : > { %3006 = vperm.xlu0 %4101, %v4386_v28   ;;  %v4388_v5 = vpop.eup %4387  ;;  %v6075_v55 = vpop.f32.mrf.mxu1 }
 0x3b1   : > { %v2832_v62 = vld [vmem:[#allocation3 + $0xe8] sm:$0xff] }
 0x3b2   : > { %4401 = vrcp.f32 %v2832_v62  ;;  %v2833_v61 = vld [vmem:[#allocation3 + $0xf0] sm:$0xff]  ;;  %v6077_v41 = vpop.f32.mrf.mxu1 }
 0x3b3   : > { %v4390_v40 = vpop.eup %4389  ;;  %3011 = vperm.xlu1 %4102, %v4388_v5   ;;  %4403 = vrcp.f32 %v2833_v61 }
 0x3b4   : > { %3016 = vperm.xlu0 %4101, %v4390_v40   ;;  %v4392_v32 = vpop.eup %4391  ;;  %v6079_v62 = vpop.f32.mrf.mxu1 }
 0x3b5   : > { %v2834_v24 = vld [vmem:[#allocation3 + $0xf8] sm:$0xff] }
 0x3b6   : > { %4405 = vrcp.f32 %v2834_v24  ;;  %v6081_v5 = vpop.f32.mrf.mxu1 }
 0x3b7   : > { %v4394_v13 = vpop.eup %4393  ;;  %3021 = vperm.xlu1 %4102, %v4392_v32  }
 0x3b8   : > { %3026 = vperm.xlu0 %4101, %v4394_v13   ;;  %v4396_v17 = vpop.eup %4395  ;;  %v6083_v40 = vpop.f32.mrf.mxu1 }
 0x3b9   : > { %6588 = vst [vmem:[#allocation36_spill] sm:$0xff] %v6083_v40 }
 0x3ba   : > { %v6085_v61 = vpop.f32.mrf.mxu1 }
 0x3bb   : > { %v4398_v14 = vpop.eup %4397  ;;  %3031 = vperm.xlu1 %4102, %v4396_v17   ;;  %6589 = vst [vmem:[#allocation37_spill] sm:$0xff] %v6085_v61 }
 0x3bc   : > { %3036 = vperm.xlu0 %4101, %v4398_v14   ;;  %v4400_v18 = vpop.eup %4399  ;;  %v6087_v32 = vpop.f32.mrf.mxu1 }
 0x3bd   : > { %6590 = vst [vmem:[#allocation38_spill] sm:$0xff] %v6087_v32  ;;  %v6109_v32 = vpop.permute.xlu0 %2348 }
 0x3be   : > { %v6089_v24 = vpop.f32.mrf.mxu1  ;;  %6600 = vst [vmem:[#allocation48_spill] sm:$0xff] %v6109_v32 }
 0x3bf   : > { %v4402_v34 = vpop.eup %4401  ;;  %3041 = vperm.xlu1 %4102, %v4400_v18  }
 0x3c0   : > { %3046 = vperm.xlu0 %4101, %v4402_v34   ;;  %v4404_v21 = vpop.eup %4403  ;;  %v6091_v13 = vpop.f32.mrf.mxu1 }
 0x3c1   : > { %6591 = vst [vmem:[#allocation39_spill] sm:$0xff] %v6091_v13  ;;  %v3915_v13 = vadd.f32 %v5952_v45, %v5948_v37  ;;  %v2353_v37 = vmul.f32 0.0, %v5851_v43  ;;  %v2355_v43 = vmul.f32 0.0, %v5873_v42 }
 0x3c2   : > { %v6093_v17 = vpop.f32.mrf.mxu1 }
 0x3c3   : > { %v4406_v28 = vpop.eup %4405  ;;  %3051 = vperm.xlu1 %4102, %v4404_v21   ;;  %6592 = vst [vmem:[#allocation40_spill] sm:$0xff] %v6093_v17 }
 0x3c4   : > { %3056 = vperm.xlu0 %4101, %v4406_v28   ;;  %v6095_v14 = vpop.f32.mrf.mxu1 }
 0x3c5   : > { %6593 = vst [vmem:[#allocation41_spill] sm:$0xff] %v6095_v14  ;;  %v3918_v14 = vadd.f32 %v5960_v11, %v5955_v50  ;;  %v2354_v50 = vmul.f32 0.0, %v5864_v57 }
 0x3c6   : > { %v6097_v18 = vpop.f32.mrf.mxu1 }
 0x3c7   : > { %6594 = vst [vmem:[#allocation42_spill] sm:$0xff] %v6097_v18  ;;  %v2352_v18 = vmul.f32 0.0, %v5825_v31 }
 0x3c8   : > { %v6099_v34 = vpop.f32.mrf.mxu1 }
 0x3c9   : > { %6595 = vst [vmem:[#allocation43_spill] sm:$0xff] %v6099_v34  ;;  %v2351_v34 = vmul.f32 0.0, %v5841_v29  ;;  %v2705_v32 = vadd.f32 %v3918_v14, %v2352_v18  ;;  %v2356_v18 = vmul.f32 0.0, %v5881_v51  ;;  %v2357_v51 = vmul.f32 0.0, %v5894_v49 }
 0x3ca   : > { %v6101_v21 = vpop.f32.mrf.mxu1 }
 0x3cb   : > { %6596 = vst [vmem:[#allocation44_spill] sm:$0xff] %v6101_v21  ;;  %v2704_v21 = vadd.f32 %v3915_v13, %v2351_v34 }
 0x3cc   : > { %v6103_v28 = vpop.f32.mrf.mxu1 }
 0x3cd   : > { %6597 = vst [vmem:[#allocation45_spill] sm:$0xff] %v6103_v28  ;;  %v3921_v28 = vadd.f32 %v5968_v48, %v5963_v23  ;;  %v3927_v23 = vadd.f32 %v5984_v35, %v5979_v4  ;;  %v3930_v48 = vadd.f32 %v5992_v44, %v5987_v15  ;;  %v3933_v35 = vadd.f32 %v6000_v26, %v5995_v56 }
 0x3ce   : > { %v6105_v40 = vpop.f32.mrf.mxu1  ;;  %v3936_v15 = vadd.f32 %v6008_v20, %v6003_v10  ;;  %v3939_v56 = vadd.f32 %v6016_v22, %v6011_v39  ;;  %v3942_v26 = vadd.f32 %v6024_v58, %v6019_v33  ;;  %v3945_v39 = vadd.f32 %v6032_v36, %v6027_v27 }
 0x3cf   : > { %6598 = vst [vmem:[#allocation46_spill] sm:$0xff] %v6105_v40  ;;  %v2708_v42 = vadd.f32 %v3927_v23, %v2355_v43  ;;  %v3948_v22 = vadd.f32 %v6040_v30, %v6035_v54  ;;  %v3951_v27 = vadd.f32 %v6049_v12, %v6043_v19  ;;  %v3954_v36 = vadd.f32 %v6061_v46, %v6055_v63 }
 0x3d0   : > { %v6107_v61 = vpop.f32.mrf.mxu1  ;;  %v3957_v19 = vadd.f32 %v6069_v38, %v6066_v1  ;;  %v3960_v12 = vadd.f32 %v6073_v0, %v6071_v47  ;;  %v3963_v1 = vadd.f32 %v6077_v41, %v6075_v55  ;;  %v3966_v38 = vadd.f32 %v6081_v5, %v6079_v62  ;;  %v6605_v41 = vld [vmem:[#allocation38_spill] sm:$0xff] }
 0x3d1   : > { %6599 = vst [vmem:[#allocation47_spill] sm:$0xff] %v6107_v61  ;;  %v3924_v61 = vadd.f32 %v5976_v16, %v5971_v7  ;;  %v3972_v62 = vadd.f32 %v6089_v24, %v6605_v41  ;;  %v6611_v24 = vld [vmem:[#allocation42_spill] sm:$0xff] }
 0x3d2   : > { %v6117_v17 = vpop.f32.mrf.mxu1 }
 0x3d3   : > { %6601 = vst [vmem:[#allocation49_spill] sm:$0xff] %v6117_v17  ;;  %v2706_v17 = vadd.f32 %v3921_v28, %v2353_v37  ;;  %v2707_v16 = vadd.f32 %v3924_v61, %v2354_v50  ;;  %v2709_v61 = vadd.f32 %v3930_v48, %v2356_v18 }
 0x3d4   : > { %v6125_v31 = vpop.f32.mrf.mxu1 }
 0x3d6   : > { %v6133_v57 = vpop.f32.mrf.mxu1 }
 0x3d8   : > { %v6145_v28 = vpop.f32.mrf.mxu1 }
 0x3fd   : > { %v2907_v40 = vpop.permute.xlu0 %2906 }
 0x3fe   : > { %v3060_v29 = vmul.f32 %v2907_v40, %v2705_v32 }
 0x402   : > { %v2902_v45 = vpop.permute.xlu1 %2901 }
 0x403   : > { %v3059_v11 = vmul.f32 %v2902_v45, %v2704_v21  ;;  %v2358_v21 = vmul.f32 0.0, %v5896_v8  ;;  %v2710_v45 = vadd.f32 %v3933_v35, %v2357_v51  ;;  %v2360_v8 = vmul.f32 0.0, %v5900_v2 }
 0x404   : > { %v2362_v2 = vmul.f32 0.0, %v5904_v60  ;;  %v2363_v35 = vmul.f32 0.0, %v5908_v53  ;;  %v2364_v60 = vmul.f32 0.0, %v5911_v9  ;;  %v2365_v51 = vmul.f32 0.0, %v5913_v25 }
 0x405   : > { %v3757_v7 = vpack.c.bf16 %v3060_v29, %v3059_v11  ;;  %v2711_v20 = vadd.f32 %v3936_v15, %v2358_v21  ;;  %v2359_v29 = vmul.f32 0.0, %v5898_v6  ;;  %v6154_v11 = vpop.f32.mrf.mxu1  ;;  %v2713_v58 = vadd.f32 %v3942_v26, %v2360_v8  ;;  %v6602_v26 = vld [vmem:[#allocation22_spill] sm:$0xff] }
 0x406   : > { %v2917_v13 = vpop.permute.xlu0 %2916  ;;  %v2912_v14 = vpop.permute.xlu1 %2911  ;;  %v2715_v30 = vadd.f32 %v3948_v22, %v2362_v2  ;;  %v2717_v46 = vadd.f32 %v3954_v36, %v2364_v60  ;;  %v2366_v9 = vmul.f32 0.0, %v5915_v52  ;;  %v2368_v52 = vmul.f32 0.0, %v6602_v26  ;;  %v6608_v2 = vld [vmem:[#allocation39_spill] sm:$0xff]  ;;  %v6613_v60 = vld [vmem:[#allocation26_spill] sm:$0xff] }
 0x407   : > { %3758 = vst [vmem:[%s6136_s12] sm:$0xff] %v3757_v7   ;;  %v3062_v40 = vmul.f32 %v2917_v13, %v2707_v16  ;;  %v3061_v4 = vmul.f32 %v2912_v14, %v2706_v17  ;;  %v2712_v7 = vadd.f32 %v3939_v56, %v2359_v29  ;;  %v2361_v16 = vmul.f32 0.0, %v5902_v59  ;;  %v6163_v14 = vpop.f32.mrf.mxu1  ;;  %v6604_v29 = vld [vmem:[#allocation37_spill] sm:$0xff] }
 0x408   : > { %v2719_v0 = vadd.f32 %v3960_v12, %v2366_v9  ;;  %v2367_v56 = vmul.f32 0.0, %v5917_v3  ;;  %v2721_v8 = vadd.f32 %v3966_v38, %v2368_v52 }
 0x409   : > { %v3762_v44 = vpack.c.bf16 %v3062_v40, %v3061_v4  ;;  %v2714_v40 = vadd.f32 %v3945_v39, %v2361_v16  ;;  %v6172_v15 = vpop.f32.mrf.mxu1 }
 0x40a   : > { %v2927_v32 = vpop.permute.xlu0 %2926  ;;  %v2922_v34 = vpop.permute.xlu1 %2921 }
 0x40b   : > { %3834 = vst [vmem:[%s6136_s12 + $0x8] sm:$0xff] %v3762_v44   ;;  %v3064_v17 = vmul.f32 %v2927_v32, %v2709_v61  ;;  %v3063_v37 = vmul.f32 %v2922_v34, %v2708_v42  ;;  %v2716_v42 = vadd.f32 %v3951_v27, %v2363_v35  ;;  %v6181_v34 = vpop.f32.mrf.mxu1 }
 0x40d   : > { %v3767_v10 = vpack.c.bf16 %v3064_v17, %v3063_v37  ;;  %v2718_v37 = vadd.f32 %v3957_v19, %v2365_v51  ;;  %v6616_v51 = vld [vmem:[#allocation45_spill] sm:$0xff] }
 0x40e   : > { %v2937_v49 = vpop.permute.xlu0 %2936  ;;  %v2932_v50 = vpop.permute.xlu1 %2931 }
 0x40f   : > { %3835 = vst [vmem:[%s6136_s12 + $0x10] sm:$0xff] %v3767_v10   ;;  %v3066_v23 = vmul.f32 %v2937_v49, %v2711_v20  ;;  %v3065_v48 = vmul.f32 %v2932_v50, %v2710_v45  ;;  %v6190_v10 = vpop.f32.mrf.mxu1  ;;  %v6603_v50 = vld [vmem:[#allocation36_spill] sm:$0xff] }
 0x410   : > { %v3969_v55 = vadd.f32 %v6604_v29, %v6603_v50  ;;  %v3990_v29 = vadd.f32 %v6133_v57, %v6125_v31 }
 0x411   : > { %v3772_v33 = vpack.c.bf16 %v3066_v23, %v3065_v48  ;;  %v2720_v23 = vadd.f32 %v3963_v1, %v2367_v56  ;;  %v6606_v48 = vld [vmem:[#allocation23_spill] sm:$0xff] }
 0x412   : > { %v2947_v6 = vpop.permute.xlu0 %2946  ;;  %v2942_v13 = vpop.permute.xlu1 %2941  ;;  %v2369_v39 = vmul.f32 0.0, %v6606_v48  ;;  %v6623_v48 = vld [vmem:[#allocation30_spill] sm:$0xff] }
 0x413   : > { %3836 = vst [vmem:[%s6136_s12 + $0x18] sm:$0xff] %v3772_v33   ;;  %v3068_v43 = vmul.f32 %v2947_v6, %v2713_v58  ;;  %v3067_v18 = vmul.f32 %v2942_v13, %v2712_v7  ;;  %v6607_v33 = vld [vmem:[#allocation24_spill] sm:$0xff]  ;;  %v4000_v7 = vpop.f32.mrf.mxu1 }
 0x414   : > { %v2370_v58 = vmul.f32 0.0, %v6607_v33  ;;  %v2722_v13 = vadd.f32 %v3969_v55, %v2369_v39  ;;  %v2376_v39 = vmul.f32 0.0, %v6623_v48 }
 0x415   : > { %v3777_v54 = vpack.c.bf16 %v3068_v43, %v3067_v18  ;;  %v6609_v43 = vld [vmem:[#allocation40_spill] sm:$0xff] }
 0x416   : > { %v2957_v59 = vpop.permute.xlu0 %2956  ;;  %v2952_v4 = vpop.permute.xlu1 %2951  ;;  %v3975_v18 = vadd.f32 %v6609_v43, %v6608_v2  ;;  %v2729_v57 = vadd.f32 %v3990_v29, %v2376_v39  ;;  %v3287_v29 = vld [vmem:[%s6136_s12 + $0xc] sm:$0xf] (%p4631_p13) }
 0x417   : > { %3837 = vst [vmem:[%s6136_s12 + $0x20] sm:$0xff] %v3777_v54   ;;  %v3070_v44 = vmul.f32 %v2957_v59, %v2715_v30  ;;  %v3069_v61 = vmul.f32 %v2952_v4, %v2714_v40  ;;  %v6610_v40 = vld [vmem:[#allocation41_spill] sm:$0xff]  ;;  %v2723_v54 = vadd.f32 %v3972_v62, %v2370_v58  ;;  %v3993_v58 = vadd.f32 %v6154_v11, %v6145_v28 }
 0x418   : > { %v3978_v27 = vadd.f32 %v6611_v24, %v6610_v40  ;;  %v6612_v4 = vld [vmem:[#allocation25_spill] sm:$0xff]  ;;  %v6625_v40 = vld [vmem:[#allocation32_spill] sm:$0xff]  ;;  %v3999_v28 = vadd.f32 %v6190_v10, %v6181_v34  ;;  %3288 = vst [vmem:[%s6252_s10 + $0x18] sm:$0xf] (%p4631_p13), %v3287_v29 }
 0x419   : > { %v3782_v63 = vpack.c.bf16 %v3070_v44, %v3069_v61  ;;  %v2371_v35 = vmul.f32 0.0, %v6612_v4  ;;  %v2372_v44 = vmul.f32 0.0, %v6613_v60  ;;  %v4001_v61 = vpop.f32.mrf.mxu1  ;;  %v2378_v24 = vmul.f32 0.0, %v6625_v40 }
 0x41a   : > { %v2962_v32 = vpop.permute.xlu1 %2961  ;;  %v4002_v11 = vadd.f32 %v4001_v61, %v4000_v7  ;;  %v6628_v61 = vld [vmem:[#allocation35_spill] sm:$0xff] }
 0x41b   : > { %v2967_v53 = vpop.permute.xlu0 %2966  ;;  %3838 = vst [vmem:[%s6136_s12 + $0x28] sm:$0xff] %v3782_v63   ;;  %v3071_v17 = vmul.f32 %v2962_v32, %v2716_v42  ;;  %v6614_v63 = vld [vmem:[#allocation43_spill] sm:$0xff] }
 0x41c   : > { %v3072_v21 = vmul.f32 %v2967_v53, %v2717_v46  ;;  %v6615_v46 = vld [vmem:[#allocation44_spill] sm:$0xff]  ;;  %v6617_v53 = vld [vmem:[#allocation46_spill] sm:$0xff] }
 0x41d   : > { %v3981_v42 = vadd.f32 %v6615_v46, %v6614_v63  ;;  %v3984_v32 = vadd.f32 %v6617_v53, %v6616_v51 }
 0x41e   : > { %v3787_v47 = vpack.c.bf16 %v3072_v21, %v3071_v17  ;;  %v2972_v45 = vpop.permute.xlu1 %2971  ;;  %v2725_v21 = vadd.f32 %v3978_v27, %v2372_v44  ;;  %v2724_v17 = vadd.f32 %v3975_v18, %v2371_v35  ;;  %v6626_v35 = vld [vmem:[#allocation33_spill] sm:$0xff]  ;;  %v6627_v44 = vld [vmem:[#allocation34_spill] sm:$0xff] }
 0x41f   : > { %v2977_v25 = vpop.permute.xlu0 %2976  ;;  %v3073_v49 = vmul.f32 %v2972_v45, %v2718_v37  ;;  %v6618_v37 = vld [vmem:[#allocation27_spill] sm:$0xff]  ;;  %v4003_v45 = vpop.f32.mrf.mxu1  ;;  %v2379_v60 = vmul.f32 0.0, %v6626_v35 }
 0x420   : > { %3839 = vst [vmem:[%s6136_s12 + $0x30] sm:$0xff] %v3787_v47   ;;  %v3074_v20 = vmul.f32 %v2977_v25, %v2719_v0  ;;  %v2373_v1 = vmul.f32 0.0, %v6618_v37  ;;  %v6619_v0 = vld [vmem:[#allocation28_spill] sm:$0xff] }
 0x421   : > { %v2374_v25 = vmul.f32 0.0, %v6619_v0  ;;  %v6629_v37 = vld [vmem:[#allocation48_spill] sm:$0xff] }
 0x422   : > { %v3792_v5 = vpack.c.bf16 %v3074_v20, %v3073_v49  ;;  %v2982_v22 = vpop.permute.xlu1 %2981  ;;  %v2726_v52 = vadd.f32 %v3981_v42, %v2373_v1  ;;  %v6620_v20 = vld [vmem:[#allocation47_spill] sm:$0xff]  ;;  %v6621_v49 = vld [vmem:[#allocation49_spill] sm:$0xff]  ;;  %v2382_v1 = vmul.f32 0.0, %v6629_v37 }
 0x423   : > { %v2987_v3 = vpop.permute.xlu0 %2986  ;;  %v3075_v6 = vmul.f32 %v2982_v22, %v2720_v23  ;;  %v3987_v50 = vadd.f32 %v6621_v49, %v6620_v20  ;;  %v2727_v41 = vadd.f32 %v3984_v32, %v2374_v25  ;;  %v2732_v32 = vadd.f32 %v3999_v28, %v2379_v60  ;;  %v3281_v20 = vld [vmem:[%s6136_s12] sm:$0xf] (%p4631_p13)  ;;  %v3283_v49 = vld [vmem:[%s6136_s12 + $0x4] sm:$0xf] (%p4631_p13)  ;;  %v3301_v48 = vld [vmem:[%s6136_s12 + $0x28] sm:$0xf] (%p4631_p13) }
 0x424   : > { %3840 = vst [vmem:[%s6136_s12 + $0x38] sm:$0xff] %v3792_v5   ;;  %v3076_v16 = vmul.f32 %v2987_v3, %v2721_v8  ;;  %v6622_v8 = vld [vmem:[#allocation29_spill] sm:$0xff]  ;;  %v4004_v3 = vpop.f32.mrf.mxu1  ;;  %3282 = vst [vmem:[%s6252_s10] sm:$0xf] (%p4631_p13), %v3281_v20  ;;  %v3303_v39 = vld [vmem:[%s6136_s12 + $0x2c] sm:$0xf] (%p4631_p13) }
 0x425   : > { %v2375_v23 = vmul.f32 0.0, %v6622_v8  ;;  %v4005_v42 = vadd.f32 %v4004_v3, %v4003_v45  ;;  %v3297_v8 = vld [vmem:[%s6136_s12 + $0x20] sm:$0xf] (%p4631_p13)  ;;  %3284 = vst [vmem:[%s6252_s10 + $0x8] sm:$0xf] (%p4631_p13), %v3283_v49 }
 0x426   : > { %v3797_v36 = vpack.c.bf16 %v3076_v16, %v3075_v6  ;;  %v2992_v59 = vpop.permute.xlu1 %2991  ;;  %v3996_v16 = vadd.f32 %v6172_v15, %v6163_v14  ;;  %v4006_v27 = vpop.f32.mrf.mxu1  ;;  %3298 = vst [vmem:[%s6252_s10 + $0x40] sm:$0xf] (%p4631_p13), %v3297_v8  ;;  %3302 = vst [vmem:[%s6252_s10 + $0x50] sm:$0xf] (%p4631_p13), %v3301_v48 }
 0x427   : > { %v2997_v30 = vpop.permute.xlu0 %2996  ;;  %v3077_v12 = vmul.f32 %v2992_v59, %v2722_v13  ;;  %v2728_v6 = vadd.f32 %v3987_v50, %v2375_v23  ;;  %v6624_v13 = vld [vmem:[#allocation31_spill] sm:$0xff]  ;;  %v3299_v23 = vld [vmem:[%s6136_s12 + $0x24] sm:$0xf] (%p4631_p13)  ;;  %v3305_v3 = vld [vmem:[%s6136_s12 + $0x30] sm:$0xf] (%p4631_p13) }
 0x428   : > { %3841 = vst [vmem:[%s6136_s12 + $0x40] sm:$0xff] %v3797_v36   ;;  %v3078_v19 = vmul.f32 %v2997_v30, %v2723_v54  ;;  %v2377_v2 = vmul.f32 0.0, %v6624_v13  ;;  %v2731_v15 = vadd.f32 %v3996_v16, %v2378_v24  ;;  %v3285_v50 = vld [vmem:[%s6136_s12 + $0x8] sm:$0xf] (%p4631_p13)  ;;  %3300 = vst [vmem:[%s6252_s10 + $0x48] sm:$0xf] (%p4631_p13), %v3299_v23 }
 0x429   : > { %3286 = vst [vmem:[%s6252_s10 + $0x10] sm:$0xf] (%p4631_p13), %v3285_v50  ;;  %3304 = vst [vmem:[%s6252_s10 + $0x58] sm:$0xf] (%p4631_p13), %v3303_v39 }
 0x42a   : > { %v3802_v9 = vpack.c.bf16 %v3078_v19, %v3077_v12  ;;  %v3002_v47 = vpop.permute.xlu1 %3001  ;;  %v2730_v30 = vadd.f32 %v3993_v58, %v2377_v2  ;;  %v2380_v19 = vmul.f32 0.0, %v6627_v44  ;;  %v4007_v12 = vpop.f32.mrf.mxu1  ;;  %3306 = vst [vmem:[%s6252_s10 + $0x60] sm:$0xf] (%p4631_p13), %v3305_v3 }
 0x42b   : > { %v3007_v38 = vpop.permute.xlu0 %3006  ;;  %v3079_v26 = vmul.f32 %v3002_v47, %v2724_v17  ;;  %v4008_v34 = vadd.f32 %v4007_v12, %v4006_v27  ;;  %v3311_v58 = vld [vmem:[%s6136_s12 + $0x3c] sm:$0xf] (%p4631_p13) }
 0x42c   : > { %3842 = vst [vmem:[%s6136_s12 + $0x48] sm:$0xff] %v3802_v9   ;;  %v3080_v56 = vmul.f32 %v3007_v38, %v2725_v21  ;;  %v2733_v53 = vadd.f32 %v4002_v11, %v2380_v19  ;;  %v2381_v9 = vmul.f32 0.0, %v6628_v61  ;;  %3312 = vst [vmem:[%s6252_s10 + $0x78] sm:$0xf] (%p4631_p13), %v3311_v58 }
 0x42d   : > { %v2735_v0 = vadd.f32 %v4008_v34, %v2382_v1 }
 0x42e   : > { %v3807_v55 = vpack.c.bf16 %v3080_v56, %v3079_v26  ;;  %v3012_v5 = vpop.permute.xlu1 %3011  ;;  %v2734_v47 = vadd.f32 %v4005_v42, %v2381_v9 }
 0x42f   : > { %v3017_v62 = vpop.permute.xlu0 %3016  ;;  %v3081_v33 = vmul.f32 %v3012_v5, %v2726_v52  ;;  %v3295_v5 = vld [vmem:[%s6136_s12 + $0x1c] sm:$0xf] (%p4631_p13)  ;;  %v3313_v16 = vld [vmem:[%s6136_s12 + $0x40] sm:$0xf] (%p4631_p13) }
 0x430   : > { %3843 = vst [vmem:[%s6136_s12 + $0x50] sm:$0xff] %v3807_v55   ;;  %v3082_v22 = vmul.f32 %v3017_v62, %v2727_v41  ;;  %v3289_v55 = vld [vmem:[%s6136_s12 + $0x10] sm:$0xf] (%p4631_p13)  ;;  %v3291_v41 = vld [vmem:[%s6136_s12 + $0x14] sm:$0xf] (%p4631_p13) }
 0x431   : > { %v3293_v62 = vld [vmem:[%s6136_s12 + $0x18] sm:$0xf] (%p4631_p13)  ;;  %3290 = vst [vmem:[%s6252_s10 + $0x20] sm:$0xf] (%p4631_p13), %v3289_v55  ;;  %3292 = vst [vmem:[%s6252_s10 + $0x28] sm:$0xf] (%p4631_p13), %v3291_v41 }
 0x432   : > { %v3812_v31 = vpack.c.bf16 %v3082_v22, %v3081_v33  ;;  %v3022_v18 = vpop.permute.xlu1 %3021  ;;  %3294 = vst [vmem:[%s6252_s10 + $0x30] sm:$0xf] (%p4631_p13), %v3293_v62  ;;  %3296 = vst [vmem:[%s6252_s10 + $0x38] sm:$0xf] (%p4631_p13), %v3295_v5  ;;  %v3307_v22 = vld [vmem:[%s6136_s12 + $0x34] sm:$0xf] (%p4631_p13) }
 0x433   : > { %v3027_v43 = vpop.permute.xlu0 %3026  ;;  %v3083_v54 = vmul.f32 %v3022_v18, %v2728_v6  ;;  %v3309_v33 = vld [vmem:[%s6136_s12 + $0x38] sm:$0xf] (%p4631_p13)  ;;  %3308 = vst [vmem:[%s6252_s10 + $0x68] sm:$0xf] (%p4631_p13), %v3307_v22  ;;  %3314 = vst [vmem:[%s6252_s10 + $0x80] sm:$0xf] (%p4631_p13), %v3313_v16 }
 0x434   : > { %3844 = vst [vmem:[%s6136_s12 + $0x58] sm:$0xff] %v3812_v31   ;;  %v3084_v36 = vmul.f32 %v3027_v43, %v2729_v57  ;;  %3310 = vst [vmem:[%s6252_s10 + $0x70] sm:$0xf] (%p4631_p13), %v3309_v33  ;;  %v3315_v31 = vld [vmem:[%s6136_s12 + $0x44] sm:$0xf] (%p4631_p13) }
 0x435   : > { %v3317_v57 = vld [vmem:[%s6136_s12 + $0x48] sm:$0xf] (%p4631_p13)  ;;  %3316 = vst [vmem:[%s6252_s10 + $0x88] sm:$0xf] (%p4631_p13), %v3315_v31  ;;  %v3319_v6 = vld [vmem:[%s6136_s12 + $0x4c] sm:$0xf] (%p4631_p13) }
 0x436   : > { %v3817_v14 = vpack.c.bf16 %v3084_v36, %v3083_v54  ;;  %v3032_v4 = vpop.permute.xlu1 %3031  ;;  %3318 = vst [vmem:[%s6252_s10 + $0x90] sm:$0xf] (%p4631_p13), %v3317_v57  ;;  %3320 = vst [vmem:[%s6252_s10 + $0x98] sm:$0xf] (%p4631_p13), %v3319_v6 }
 0x437   : > { %v3037_v59 = vpop.permute.xlu0 %3036  ;;  %v3085_v46 = vmul.f32 %v3032_v4, %v2730_v30  ;;  %v3321_v13 = vld [vmem:[%s6136_s12 + $0x50] sm:$0xf] (%p4631_p13)  ;;  %v3323_v2 = vld [vmem:[%s6136_s12 + $0x54] sm:$0xf] (%p4631_p13) }
 0x438   : > { %3845 = vst [vmem:[%s6136_s12 + $0x60] sm:$0xff] %v3817_v14   ;;  %v3086_v63 = vmul.f32 %v3037_v59, %v2731_v15  ;;  %3322 = vst [vmem:[%s6252_s10 + $0xa0] sm:$0xf] (%p4631_p13), %v3321_v13 }
 0x439   : > { %3324 = vst [vmem:[%s6252_s10 + $0xa8] sm:$0xf] (%p4631_p13), %v3323_v2 }
 0x43a   : > { %v3822_v51 = vpack.c.bf16 %v3086_v63, %v3085_v46  ;;  %v3042_v7 = vpop.permute.xlu1 %3041 }
 0x43b   : > { %v3047_v10 = vpop.permute.xlu0 %3046  ;;  %v3087_v17 = vmul.f32 %v3042_v7, %v2732_v32  ;;  %v3325_v43 = vld [vmem:[%s6136_s12 + $0x58] sm:$0xf] (%p4631_p13)  ;;  %v3327_v18 = vld [vmem:[%s6136_s12 + $0x5c] sm:$0xf] (%p4631_p13) }
 0x43c   : > { %3846 = vst [vmem:[%s6136_s12 + $0x68] sm:$0xff] %v3822_v51   ;;  %v3088_v21 = vmul.f32 %v3047_v10, %v2733_v53  ;;  %3326 = vst [vmem:[%s6252_s10 + $0xb0] sm:$0xf] (%p4631_p13), %v3325_v43 }
 0x43d   : > { %3328 = vst [vmem:[%s6252_s10 + $0xb8] sm:$0xf] (%p4631_p13), %v3327_v18 }
 0x43e   : > { %v3827_v38 = vpack.c.bf16 %v3088_v21, %v3087_v17  ;;  %v3052_v25 = vpop.permute.xlu1 %3051 }
 0x43f   : > { %v3057_v45 = vpop.permute.xlu0 %3056  ;;  %v3089_v56 = vmul.f32 %v3052_v25, %v2734_v47  ;;  %v3329_v40 = vld [vmem:[%s6136_s12 + $0x60] sm:$0xf] (%p4631_p13)  ;;  %v3331_v24 = vld [vmem:[%s6136_s12 + $0x64] sm:$0xf] (%p4631_p13) }
 0x440   : > { %3847 = vst [vmem:[%s6136_s12 + $0x70] sm:$0xff] %v3827_v38   ;;  %v3090_v26 = vmul.f32 %v3057_v45, %v2735_v0  ;;  %3257 = sbr.rel (!%p4631_p13) target bundleno = 1101 (0x44d), region = 167  ;;  %3330 = vst [vmem:[%s6252_s10 + $0xc0] sm:$0xf] (%p4631_p13), %v3329_v40 }
 0x441   : > { %3332 = vst [vmem:[%s6252_s10 + $0xc8] sm:$0xf] (%p4631_p13), %v3331_v24 }
 0x442   : > { %v3832_v52 = vpack.c.bf16 %v3090_v26, %v3089_v56 }
 0x443   : > { %v3333_v27 = vld [vmem:[%s6136_s12 + $0x68] sm:$0xf] (%p4631_p13)  ;;  %v3335_v36 = vld [vmem:[%s6136_s12 + $0x6c] sm:$0xf] (%p4631_p13) }
 0x444   : > { %3848 = vst [vmem:[%s6136_s12 + $0x78] sm:$0xff] %v3832_v52   ;;  %3334 = vst [vmem:[%s6252_s10 + $0xd0] sm:$0xf] (%p4631_p13), %v3333_v27 }
 0x445   : > { %3336 = vst [vmem:[%s6252_s10 + $0xd8] sm:$0xf] %v3335_v36 }
 0x447   : > { %v3337_v54 = vld [vmem:[%s6136_s12 + $0x70] sm:$0xf]  ;;  %v3339_v30 = vld [vmem:[%s6136_s12 + $0x74] sm:$0xf] }
 0x448   : > { %3338 = vst [vmem:[%s6252_s10 + $0xe0] sm:$0xf] %v3337_v54  ;;  %3340 = vst [vmem:[%s6252_s10 + $0xe8] sm:$0xf] %v3339_v30 }
 0x44b   : > { %v3341_v28 = vld [vmem:[%s6136_s12 + $0x78] sm:$0xf]  ;;  %v3343_v11 = vld [vmem:[%s6136_s12 + $0x7c] sm:$0xf] }
 0x44c   : > { %3342 = vst [vmem:[%s6252_s10 + $0xf0] sm:$0xf] %v3341_v28  ;;  %3344 = vst [vmem:[%s6252_s10 + $0xf8] sm:$0xf] %v3343_v11 }
 0x44d PF: > { %s13_s22 = sadd.s32 1, %s4493_s22   ;;  %s6631_s30 = sld [smem:[#allocation9_spill]] }
 0x44e   : > { %p10_p4 = scmp.ge.s32.totalorder %s13_s22, 6   ;;  %s6632_s12 = smov %s4457_s13 }
 0x44f   : > { %s6633_s13 = smov %s4636_s26  ;;  %s6634_s14 = smov %s4465_s15 }
 0x450   : > { %s6635_s15 = smov %s4614_s28  ;;  %s6636_s16 = smov %s4473_s17 }
 0x451   : > { %s6637_s17 = smov %s4611_s11  ;;  %s6638_s18 = smov %s4485_s20 }
 0x452   : > { %s6639_s19 = smov %s4489_s21  ;;  %s6640_s20 = smov %s6643_s24 }
 0x453   : > { %s6641_s21 = smov %s6631_s30  ;;  %12 = sbr.rel (!%p10_p4) target bundleno = 8 (0x8), region = 255 }

</bundles_post_ra>
